<compile_context>
chip_gen: v7x
topology: tpu7x:2x2x1
jax: 0.10.0
libtpu: 0.0.40
codegen_flags: <defaults>
</compile_context>

<pallas_src>
import functools

import jax
import jax.numpy as jnp
from jax.experimental import pallas as pl
from jax.experimental.pallas import tpu as pltpu

# ----------------------------- hyper-parameters ------------------------------
C_IN = 24               # fixed by the module (Conv1d(in_channels=24, ...))
C1, C2, C3 = 8, 16, 32  # conv1_channels, conv2_channels, conv3_channels (>0 path)
L_HIDDEN = 32           # l_hidden (>0 path)
OUTPUT_SIZE = 10
SEQ_LEN = 58            # 58 -conv7-> 52 -pool(4,2)-> 25 -conv7-> 19 -pool(5,2)-> 8
                        #    -conv5-> 4  -pool(4,2)-> 1   (so reshape(-1, C3) holds)
NEG_SLOPE = 0.01        # F.leaky_relu default negative_slope
MAX_BATCH_TILE = 256    # batch-lane tile cap (multiple of 128); VMEM-safe on v5e/v6e/v7x
VMEM_LIMIT_BYTES = 32 * 1024 * 1024

K1, K2, K3 = 7, 7, 5
L1, P1 = 52, 25         # conv1 / pool1 lengths
L2, P2 = 19, 8          # conv2 / pool2 lengths
L3, P3 = 4, 1           # conv3 / pool3 lengths


# ------------------------------ kernel helpers -------------------------------
def _leaky_relu(x):
    return jnp.where(x >= 0, x, NEG_SLOPE * x)


def _conv1d_lanes(h, w_flat, b, k, tn):
    """Valid 1-D conv in the batch-on-lanes layout, as one 2-D MXU matmul.

    h:      (Ci, L*tn)   bf16, last axis = (L-major, batch-minor)
    w_flat: (Co, K*Ci)   bf16, column index = t*Ci + c  (== torch w[o, c, t])
    b:      (Co, 1)      f32
    ->      (Co, (L-K+1)*tn) f32
    """
    ci, lt = h.shape
    l_in = lt // tn
    l_out = l_in - k + 1
    # im2col: K tap-shifted, lane-tile-aligned slices stacked on the sublane axis.
    cols = jnp.concatenate([h[:, t * tn:(t + l_out) * tn] for t in range(k)], axis=0)
    return jnp.dot(w_flat, cols, preferred_element_type=jnp.float32) + b


def _maxpool1d_lanes(h, ks, stride, tn):
    """MaxPool1d over the L positions of a (C, L*tn) slab."""
    c, lt = h.shape
    l_in = lt // tn
    l_out = (l_in - ks) // stride + 1
    span = stride * (l_out - 1) + 1
    # ks shifted maxima on contiguous, lane-aligned slices ...
    m = functools.reduce(jnp.maximum,
                         [h[:, j * tn:(j + span) * tn] for j in range(ks)])
    if l_out == 1:
        return m
    # ... then one subsample pass: keep every `stride`-th tn-lane block.
    return jnp.concatenate(
        [m[:, l * stride * tn:(l * stride + 1) * tn] for l in range(l_out)], axis=1)


# --------------------------------- the kernel --------------------------------
def conv_model_kernel(x_ref, w1_ref, b1_ref, w2_ref, b2_ref, w3_ref, b3_ref,
                      wl_ref, bl_ref, wo_ref, bo_ref, out_ref):
    tn = out_ref.shape[-1]
    h = x_ref[...]                                                  # (24, 58*tn) bf16

    # conv -> leaky_relu -> maxpool, three times (dropout == identity).
    h = _maxpool1d_lanes(
        _leaky_relu(_conv1d_lanes(h, w1_ref[...], b1_ref[...], K1, tn)), 4, 2, tn)
    h = _maxpool1d_lanes(
        _leaky_relu(_conv1d_lanes(h.astype(jnp.bfloat16),
                                  w2_ref[...], b2_ref[...], K2, tn)), 5, 2, tn)
    h = _maxpool1d_lanes(
        _leaky_relu(_conv1d_lanes(h.astype(jnp.bfloat16),
                                  w3_ref[...], b3_ref[...], K3, tn)), 4, 2, tn)
    # h: (C3, tn) f32 — transposed view of torch's reshape(-1, conv_size).

    # linear (l_hidden) + leaky_relu: (L_HIDDEN, C3) @ (C3, tn)
    h = _leaky_relu(jnp.dot(wl_ref[...], h.astype(jnp.bfloat16),
                            preferred_element_type=jnp.float32) + bl_ref[...])

    # l_out + log_softmax over classes (axis 0 here): (10, L_HIDDEN) @ (L_HIDDEN, tn)
    logits = jnp.dot(wo_ref[...], h.astype(jnp.bfloat16),
                     preferred_element_type=jnp.float32) + bo_ref[...]
    m = jnp.max(logits, axis=0, keepdims=True)
    z = logits - m
    out_ref[...] = z - jnp.log(jnp.sum(jnp.exp(z), axis=0, keepdims=True))


# --------------------------------- wrapper -----------------------------------
def _prep_weights(params):
    """Wrapper-side layout plumbing: flatten conv weights to (Co, K*Ci) bf16,
    keep nn.Linear weights in their native (out, in) layout (bf16), and make
    biases (Co, 1) f32 columns so they broadcast along the batch-lane axis."""
    def conv_w(w):  # torch (Co, Ci, K) -> (Co, K*Ci), column = t*Ci + c
        co, ci, k = w.shape
        return jnp.transpose(w, (0, 2, 1)).reshape(co, k * ci).astype(jnp.bfloat16)

    def col_bias(b):
        return b.reshape(-1, 1).astype(jnp.float32)

    return (
        conv_w(params["w1"]), col_bias(params["b1"]),
        conv_w(params["w2"]), col_bias(params["b2"]),
        conv_w(params["w3"]), col_bias(params["b3"]),
        params["wl"].astype(jnp.bfloat16), col_bias(params["bl"]),
        params["wo"].astype(jnp.bfloat16), col_bias(params["bo"]),
    )


def _round_up(a, b):
    return -(-a // b) * b


@jax.jit
def conv_model_forward(x_ncl, params):
    """x_ncl: (N, 24, SEQ_LEN) float32, same (N, C, L) convention as PyTorch."""
    n, c_in, seq_len = x_ncl.shape
    assert c_in == C_IN and seq_len == SEQ_LEN

    # Batch tile: multiple of 128 (lane-dense), capped at MAX_BATCH_TILE, and at
    # least 2 grid steps whenever N > 128 so both v7x TensorCores get work.
    n128 = _round_up(n, 128)
    if n128 <= 128:
        tn = 128
    else:
        tn = min(MAX_BATCH_TILE, _round_up(n128 // 2, 128))
    n_pad = _round_up(n128, tn)
    n_tiles = n_pad // tn

    # Wrapper-side plumbing (one pass over the small input in HBM):
    # (N, C, L) f32 -> bf16 -> (n_tiles, C, L*tn), last axis L-major / batch-minor.
    x = jnp.transpose(x_ncl.astype(jnp.bfloat16), (1, 2, 0))          # (C, L, N)
    if n_pad != n:
        x = jnp.pad(x, ((0, 0), (0, 0), (0, n_pad - n)))
    x = x.reshape(C_IN, SEQ_LEN, n_tiles, tn)
    x = jnp.transpose(x, (2, 0, 1, 3)).reshape(n_tiles, C_IN, SEQ_LEN * tn)

    w_args = _prep_weights(params)

    in_specs = [pl.BlockSpec((None, C_IN, SEQ_LEN * tn), lambda i: (i, 0, 0))]
    # Grid-invariant weights/biases: whole-array blocks, same block every step
    # (Pallas skips the re-fetch when the block index does not change).
    in_specs += [pl.BlockSpec(a.shape, lambda i: (0, 0)) for a in w_args]
    out_spec = pl.BlockSpec((OUTPUT_SIZE, tn), lambda i: (0, i))

    # Advisory cost hint for the XLA scheduler (kernel is overhead/relayout-bound).
    flops = 2 * n_pad * (C1 * K1 * C_IN * L1 + C2 * K2 * C1 * L2
                         + C3 * K3 * C2 * L3 + L_HIDDEN * C3
                         + OUTPUT_SIZE * L_HIDDEN)
    transcendentals = n_pad * (OUTPUT_SIZE + 1)
    weight_bytes = sum(a.size * a.dtype.itemsize for a in w_args)
    bytes_accessed = n_pad * (C_IN * SEQ_LEN * 2 + OUTPUT_SIZE * 4) + weight_bytes

    out = pl.pallas_call(
        conv_model_kernel,
        out_shape=jax.ShapeDtypeStruct((OUTPUT_SIZE, n_pad), jnp.float32),
        grid=(n_tiles,),
        in_specs=in_specs,
        out_specs=out_spec,
        compiler_params=pltpu.CompilerParams(
            dimension_semantics=("parallel",),
            vmem_limit_bytes=VMEM_LIMIT_BYTES),
        cost_estimate=pl.CostEstimate(
            flops=flops, transcendentals=transcendentals,
            bytes_accessed=bytes_accessed),
    )(x, *w_args)

    return jnp.transpose(out)[:n]                                     # (N, 10)


# -------------------------- pure-JAX reference (f32) --------------------------
def reference_forward(x_ncl, params):
    x = jnp.transpose(x_ncl, (0, 2, 1)).astype(jnp.float32)           # (N, L, C)

    def lrelu(v):
        return jnp.where(v >= 0, v, NEG_SLOPE * v)

    def conv(h, w, b):
        k = w.shape[2]
        lo = h.shape[1] - k + 1
        y = sum(jnp.einsum('nlc,oc->nlo', h[:, t:t + lo, :], w[:, :, t])
                for t in range(k))
        return y + b

    def pool(h, ks, st):
        lo = (h.shape[1] - ks) // st + 1
        span = st * (lo - 1) + 1
        return functools.reduce(jnp.maximum,
                                [h[:, j:j + span:st, :] for j in range(ks)])

    h = pool(lrelu(conv(x, params["w1"], params["b1"])), 4, 2)
    h = pool(lrelu(conv(h, params["w2"], params["b2"])), 5, 2)
    h = pool(lrelu(conv(h, params["w3"], params["b3"])), 4, 2)
    h = h.reshape(h.shape[0], -1)                                      # (N, C3)
    h = lrelu(h @ params["wl"].T + params["bl"])
    logits = h @ params["wo"].T + params["bo"]
    return jax.nn.log_softmax(logits, axis=1)


# ------------------------------- parameter init ------------------------------
def _xavier_uniform(key, shape, fan_in, fan_out):
    bound = (6.0 / (fan_in + fan_out)) ** 0.5
    return jax.random.uniform(key, shape, jnp.float32, -bound, bound)


def _bias_uniform(key, shape, fan_in):
    bound = 1.0 / (fan_in ** 0.5)   # PyTorch default bias init range
    return jax.random.uniform(key, shape, jnp.float32, -bound, bound)


def init_params(key):
    ks = jax.random.split(key, 10)
    return {
        # conv weights in PyTorch layout (C_out, C_in, K); biases 1-D (C_out,)
        "w1": _xavier_uniform(ks[0], (C1, C_IN, K1), C_IN * K1, C1 * K1),
        "b1": _bias_uniform(ks[1], (C1,), C_IN * K1),
        "w2": _xavier_uniform(ks[2], (C2, C1, K2), C1 * K2, C2 * K2),
        "b2": _bias_uniform(ks[3], (C2,), C1 * K2),
        "w3": _xavier_uniform(ks[4], (C3, C2, K3), C2 * K3, C3 * K3),
        "b3": _bias_uniform(ks[5], (C3,), C2 * K3),
        # linear weights in nn.Linear layout (out_features, in_features)
        "wl": _xavier_uniform(ks[6], (L_HIDDEN, C3), C3, L_HIDDEN),
        "bl": _bias_uniform(ks[7], (L_HIDDEN,), C3),
        "wo": _xavier_uniform(ks[8], (OUTPUT_SIZE, L_HIDDEN), L_HIDDEN, OUTPUT_SIZE),
        "bo": _bias_uniform(ks[9], (OUTPUT_SIZE,), L_HIDDEN),
    }


# ----------------------------------- main ------------------------------------
if __name__ == "__main__":
    key = jax.random.PRNGKey(0)
    pkey, xkey = jax.random.split(key)
    params = init_params(pkey)

    N = 8
    x = jax.random.normal(xkey, (N, C_IN, SEQ_LEN), jnp.float32)

    out = jax.block_until_ready(conv_model_forward(x, params))

    assert out.shape == (N, OUTPUT_SIZE), out.shape
    # log_softmax sanity: exp(rows) must sum to 1
    assert bool(jnp.allclose(jnp.sum(jnp.exp(out), axis=1), 1.0, atol=1e-3))
    # structural check against a pure-JAX f32 reference (bf16 MXU tolerance)
    ref = reference_forward(x, params)
    max_err = float(jnp.max(jnp.abs(out - ref)))
    assert max_err < 0.15, max_err
    print("KERNEL_OK")
</pallas_src>

<mosaic_0001>
module attributes {stable_mosaic.version = 11 : i64} {
  func.func @conv_model_kernel(%arg0: i32, %arg1: memref<1x24x7424xbf16, #tpu.memory_space<vmem>>, %arg2: memref<8x168xbf16, #tpu.memory_space<vmem>>, %arg3: memref<8x1xf32, #tpu.memory_space<vmem>>, %arg4: memref<16x56xbf16, #tpu.memory_space<vmem>>, %arg5: memref<16x1xf32, #tpu.memory_space<vmem>>, %arg6: memref<32x80xbf16, #tpu.memory_space<vmem>>, %arg7: memref<32x1xf32, #tpu.memory_space<vmem>>, %arg8: memref<32x32xbf16, #tpu.memory_space<vmem>>, %arg9: memref<32x1xf32, #tpu.memory_space<vmem>>, %arg10: memref<10x32xbf16, #tpu.memory_space<vmem>>, %arg11: memref<10x1xf32, #tpu.memory_space<vmem>>, %arg12: memref<10x128xf32, #tpu.memory_space<vmem>>) attributes {dimension_semantics = [#tpu.dimension_semantics<parallel>], iteration_bounds = array<i64: 1>, scalar_prefetch = 0 : i64, scratch_operands = 0 : i64, tpu.core_type = #tpu.core_type<tc>, window_params = [{transform_indices = @transform_0, window_bounds = array<i64: 1, 24, 7424>}, {pipeline_mode = #tpu.pipeline_mode<synchronous>, transform_indices = @transform_1, window_bounds = array<i64: 8, 168>}, {pipeline_mode = #tpu.pipeline_mode<synchronous>, transform_indices = @transform_2, window_bounds = array<i64: 8, 1>}, {pipeline_mode = #tpu.pipeline_mode<synchronous>, transform_indices = @transform_3, window_bounds = array<i64: 16, 56>}, {pipeline_mode = #tpu.pipeline_mode<synchronous>, transform_indices = @transform_4, window_bounds = array<i64: 16, 1>}, {pipeline_mode = #tpu.pipeline_mode<synchronous>, transform_indices = @transform_5, window_bounds = array<i64: 32, 80>}, {pipeline_mode = #tpu.pipeline_mode<synchronous>, transform_indices = @transform_6, window_bounds = array<i64: 32, 1>}, {pipeline_mode = #tpu.pipeline_mode<synchronous>, transform_indices = @transform_7, window_bounds = array<i64: 32, 32>}, {pipeline_mode = #tpu.pipeline_mode<synchronous>, transform_indices = @transform_8, window_bounds = array<i64: 32, 1>}, {pipeline_mode = #tpu.pipeline_mode<synchronous>, transform_indices = @transform_9, window_bounds = array<i64: 10, 32>}, {pipeline_mode = #tpu.pipeline_mode<synchronous>, transform_indices = @transform_10, window_bounds = array<i64: 10, 1>}, {transform_indices = @transform_11, window_bounds = array<i64: 10, 128>}]} {
    %c0 = arith.constant 0 : index
    %c0_0 = arith.constant 0 : index
    %c0_1 = arith.constant 0 : index
    %0 = vector.load %arg1[%c0, %c0_0, %c0_1] : memref<1x24x7424xbf16, #tpu.memory_space<vmem>>, vector<1x24x7424xbf16>
    %1 = vector.shape_cast %0 : vector<1x24x7424xbf16> to vector<24x7424xbf16>
    %c0_2 = arith.constant 0 : index
    %c0_3 = arith.constant 0 : index
    %2 = vector.load %arg2[%c0_2, %c0_3] : memref<8x168xbf16, #tpu.memory_space<vmem>>, vector<8x168xbf16>
    %c0_4 = arith.constant 0 : index
    %c0_5 = arith.constant 0 : index
    %3 = vector.load %arg3[%c0_4, %c0_5] : memref<8x1xf32, #tpu.memory_space<vmem>>, vector<8x1xf32>
    %4 = vector.extract_strided_slice %1 {offsets = [0, 0], sizes = [24, 6656], strides = [1, 1]} : vector<24x7424xbf16> to vector<24x6656xbf16>
    %5 = vector.extract_strided_slice %1 {offsets = [0, 128], sizes = [24, 6656], strides = [1, 1]} : vector<24x7424xbf16> to vector<24x6656xbf16>
    %6 = vector.extract_strided_slice %1 {offsets = [0, 256], sizes = [24, 6656], strides = [1, 1]} : vector<24x7424xbf16> to vector<24x6656xbf16>
    %7 = vector.extract_strided_slice %1 {offsets = [0, 384], sizes = [24, 6656], strides = [1, 1]} : vector<24x7424xbf16> to vector<24x6656xbf16>
    %8 = vector.extract_strided_slice %1 {offsets = [0, 512], sizes = [24, 6656], strides = [1, 1]} : vector<24x7424xbf16> to vector<24x6656xbf16>
    %9 = vector.extract_strided_slice %1 {offsets = [0, 640], sizes = [24, 6656], strides = [1, 1]} : vector<24x7424xbf16> to vector<24x6656xbf16>
    %10 = vector.extract_strided_slice %1 {offsets = [0, 768], sizes = [24, 6656], strides = [1, 1]} : vector<24x7424xbf16> to vector<24x6656xbf16>
    %11 = tpu.concatenate %4, %5, %6, %7, %8, %9, %10 in 0 : vector<24x6656xbf16>, vector<24x6656xbf16>, vector<24x6656xbf16>, vector<24x6656xbf16>, vector<24x6656xbf16>, vector<24x6656xbf16>, vector<24x6656xbf16> -> vector<168x6656xbf16>
    %cst = arith.constant dense<0.000000e+00> : vector<8x6656xf32>
    %12 = tpu.matmul %2, %11, %cst {dimension_numbers = #tpu.dot_dimension_numbers<[1], [0], [0], [1], [0, 0, 1, 1], [], []>} : vector<8x168xbf16>, vector<168x6656xbf16>, vector<8x6656xf32> -> vector<8x6656xf32>
    %13 = vector.broadcast %3 : vector<8x1xf32> to vector<8x6656xf32>
    %14 = arith.addf %12, %13 : vector<8x6656xf32>
    %cst_6 = arith.constant 0.000000e+00 : f32
    %15 = vector.broadcast %cst_6 : f32 to vector<8x6656xf32>
    %16 = arith.cmpf oge, %14, %15 : vector<8x6656xf32>
    %cst_7 = arith.constant 0.00999999977 : f32
    %17 = vector.broadcast %cst_7 : f32 to vector<8x6656xf32>
    %18 = arith.mulf %17, %14 : vector<8x6656xf32>
    %19 = arith.select %16, %14, %18 : vector<8x6656xi1>, vector<8x6656xf32>
    %20 = vector.extract_strided_slice %19 {offsets = [0, 0], sizes = [8, 6272], strides = [1, 1]} : vector<8x6656xf32> to vector<8x6272xf32>
    %21 = vector.extract_strided_slice %19 {offsets = [0, 128], sizes = [8, 6272], strides = [1, 1]} : vector<8x6656xf32> to vector<8x6272xf32>
    %22 = vector.extract_strided_slice %19 {offsets = [0, 256], sizes = [8, 6272], strides = [1, 1]} : vector<8x6656xf32> to vector<8x6272xf32>
    %23 = vector.extract_strided_slice %19 {offsets = [0, 384], sizes = [8, 6272], strides = [1, 1]} : vector<8x6656xf32> to vector<8x6272xf32>
    %24 = arith.maximumf %20, %21 : vector<8x6272xf32>
    %25 = arith.maximumf %24, %22 : vector<8x6272xf32>
    %26 = arith.maximumf %25, %23 : vector<8x6272xf32>
    %27 = vector.extract_strided_slice %26 {offsets = [0, 0], sizes = [8, 128], strides = [1, 1]} : vector<8x6272xf32> to vector<8x128xf32>
    %28 = vector.extract_strided_slice %26 {offsets = [0, 256], sizes = [8, 128], strides = [1, 1]} : vector<8x6272xf32> to vector<8x128xf32>
    %29 = vector.extract_strided_slice %26 {offsets = [0, 512], sizes = [8, 128], strides = [1, 1]} : vector<8x6272xf32> to vector<8x128xf32>
    %30 = vector.extract_strided_slice %26 {offsets = [0, 768], sizes = [8, 128], strides = [1, 1]} : vector<8x6272xf32> to vector<8x128xf32>
    %31 = vector.extract_strided_slice %26 {offsets = [0, 1024], sizes = [8, 128], strides = [1, 1]} : vector<8x6272xf32> to vector<8x128xf32>
    %32 = vector.extract_strided_slice %26 {offsets = [0, 1280], sizes = [8, 128], strides = [1, 1]} : vector<8x6272xf32> to vector<8x128xf32>
    %33 = vector.extract_strided_slice %26 {offsets = [0, 1536], sizes = [8, 128], strides = [1, 1]} : vector<8x6272xf32> to vector<8x128xf32>
    %34 = vector.extract_strided_slice %26 {offsets = [0, 1792], sizes = [8, 128], strides = [1, 1]} : vector<8x6272xf32> to vector<8x128xf32>
    %35 = vector.extract_strided_slice %26 {offsets = [0, 2048], sizes = [8, 128], strides = [1, 1]} : vector<8x6272xf32> to vector<8x128xf32>
    %36 = vector.extract_strided_slice %26 {offsets = [0, 2304], sizes = [8, 128], strides = [1, 1]} : vector<8x6272xf32> to vector<8x128xf32>
    %37 = vector.extract_strided_slice %26 {offsets = [0, 2560], sizes = [8, 128], strides = [1, 1]} : vector<8x6272xf32> to vector<8x128xf32>
    %38 = vector.extract_strided_slice %26 {offsets = [0, 2816], sizes = [8, 128], strides = [1, 1]} : vector<8x6272xf32> to vector<8x128xf32>
    %39 = vector.extract_strided_slice %26 {offsets = [0, 3072], sizes = [8, 128], strides = [1, 1]} : vector<8x6272xf32> to vector<8x128xf32>
    %40 = vector.extract_strided_slice %26 {offsets = [0, 3328], sizes = [8, 128], strides = [1, 1]} : vector<8x6272xf32> to vector<8x128xf32>
    %41 = vector.extract_strided_slice %26 {offsets = [0, 3584], sizes = [8, 128], strides = [1, 1]} : vector<8x6272xf32> to vector<8x128xf32>
    %42 = vector.extract_strided_slice %26 {offsets = [0, 3840], sizes = [8, 128], strides = [1, 1]} : vector<8x6272xf32> to vector<8x128xf32>
    %43 = vector.extract_strided_slice %26 {offsets = [0, 4096], sizes = [8, 128], strides = [1, 1]} : vector<8x6272xf32> to vector<8x128xf32>
    %44 = vector.extract_strided_slice %26 {offsets = [0, 4352], sizes = [8, 128], strides = [1, 1]} : vector<8x6272xf32> to vector<8x128xf32>
    %45 = vector.extract_strided_slice %26 {offsets = [0, 4608], sizes = [8, 128], strides = [1, 1]} : vector<8x6272xf32> to vector<8x128xf32>
    %46 = vector.extract_strided_slice %26 {offsets = [0, 4864], sizes = [8, 128], strides = [1, 1]} : vector<8x6272xf32> to vector<8x128xf32>
    %47 = vector.extract_strided_slice %26 {offsets = [0, 5120], sizes = [8, 128], strides = [1, 1]} : vector<8x6272xf32> to vector<8x128xf32>
    %48 = vector.extract_strided_slice %26 {offsets = [0, 5376], sizes = [8, 128], strides = [1, 1]} : vector<8x6272xf32> to vector<8x128xf32>
    %49 = vector.extract_strided_slice %26 {offsets = [0, 5632], sizes = [8, 128], strides = [1, 1]} : vector<8x6272xf32> to vector<8x128xf32>
    %50 = vector.extract_strided_slice %26 {offsets = [0, 5888], sizes = [8, 128], strides = [1, 1]} : vector<8x6272xf32> to vector<8x128xf32>
    %51 = vector.extract_strided_slice %26 {offsets = [0, 6144], sizes = [8, 128], strides = [1, 1]} : vector<8x6272xf32> to vector<8x128xf32>
    %52 = tpu.concatenate %27, %28, %29, %30, %31, %32, %33, %34, %35, %36, %37, %38, %39, %40, %41, %42 in 1 : vector<8x128xf32>, vector<8x128xf32>, vector<8x128xf32>, vector<8x128xf32>, vector<8x128xf32>, vector<8x128xf32>, vector<8x128xf32>, vector<8x128xf32>, vector<8x128xf32>, vector<8x128xf32>, vector<8x128xf32>, vector<8x128xf32>, vector<8x128xf32>, vector<8x128xf32>, vector<8x128xf32>, vector<8x128xf32> -> vector<8x2048xf32>
    %53 = tpu.concatenate %43, %44, %45, %46, %47, %48, %49, %50, %51 in 1 : vector<8x128xf32>, vector<8x128xf32>, vector<8x128xf32>, vector<8x128xf32>, vector<8x128xf32>, vector<8x128xf32>, vector<8x128xf32>, vector<8x128xf32>, vector<8x128xf32> -> vector<8x1152xf32>
    %54 = tpu.concatenate %52, %53 in 1 : vector<8x2048xf32>, vector<8x1152xf32> -> vector<8x3200xf32>
    %55 = arith.truncf %54 : vector<8x3200xf32> to vector<8x3200xbf16>
    %c0_8 = arith.constant 0 : index
    %c0_9 = arith.constant 0 : index
    %56 = vector.load %arg4[%c0_8, %c0_9] : memref<16x56xbf16, #tpu.memory_space<vmem>>, vector<16x56xbf16>
    %c0_10 = arith.constant 0 : index
    %c0_11 = arith.constant 0 : index
    %57 = vector.load %arg5[%c0_10, %c0_11] : memref<16x1xf32, #tpu.memory_space<vmem>>, vector<16x1xf32>
    %58 = vector.extract_strided_slice %55 {offsets = [0, 0], sizes = [8, 2432], strides = [1, 1]} : vector<8x3200xbf16> to vector<8x2432xbf16>
    %59 = vector.extract_strided_slice %55 {offsets = [0, 128], sizes = [8, 2432], strides = [1, 1]} : vector<8x3200xbf16> to vector<8x2432xbf16>
    %60 = vector.extract_strided_slice %55 {offsets = [0, 256], sizes = [8, 2432], strides = [1, 1]} : vector<8x3200xbf16> to vector<8x2432xbf16>
    %61 = vector.extract_strided_slice %55 {offsets = [0, 384], sizes = [8, 2432], strides = [1, 1]} : vector<8x3200xbf16> to vector<8x2432xbf16>
    %62 = vector.extract_strided_slice %55 {offsets = [0, 512], sizes = [8, 2432], strides = [1, 1]} : vector<8x3200xbf16> to vector<8x2432xbf16>
    %63 = vector.extract_strided_slice %55 {offsets = [0, 640], sizes = [8, 2432], strides = [1, 1]} : vector<8x3200xbf16> to vector<8x2432xbf16>
    %64 = vector.extract_strided_slice %55 {offsets = [0, 768], sizes = [8, 2432], strides = [1, 1]} : vector<8x3200xbf16> to vector<8x2432xbf16>
    %65 = tpu.concatenate %58, %59, %60, %61, %62, %63, %64 in 0 : vector<8x2432xbf16>, vector<8x2432xbf16>, vector<8x2432xbf16>, vector<8x2432xbf16>, vector<8x2432xbf16>, vector<8x2432xbf16>, vector<8x2432xbf16> -> vector<56x2432xbf16>
    %cst_12 = arith.constant dense<0.000000e+00> : vector<16x2432xf32>
    %66 = tpu.matmul %56, %65, %cst_12 {dimension_numbers = #tpu.dot_dimension_numbers<[1], [0], [0], [1], [0, 0, 1, 1], [], []>} : vector<16x56xbf16>, vector<56x2432xbf16>, vector<16x2432xf32> -> vector<16x2432xf32>
    %67 = vector.broadcast %57 : vector<16x1xf32> to vector<16x2432xf32>
    %68 = arith.addf %66, %67 : vector<16x2432xf32>
    %cst_13 = arith.constant 0.000000e+00 : f32
    %69 = vector.broadcast %cst_13 : f32 to vector<16x2432xf32>
    %70 = arith.cmpf oge, %68, %69 : vector<16x2432xf32>
    %cst_14 = arith.constant 0.00999999977 : f32
    %71 = vector.broadcast %cst_14 : f32 to vector<16x2432xf32>
    %72 = arith.mulf %71, %68 : vector<16x2432xf32>
    %73 = arith.select %70, %68, %72 : vector<16x2432xi1>, vector<16x2432xf32>
    %74 = vector.extract_strided_slice %73 {offsets = [0, 0], sizes = [16, 1920], strides = [1, 1]} : vector<16x2432xf32> to vector<16x1920xf32>
    %75 = vector.extract_strided_slice %73 {offsets = [0, 128], sizes = [16, 1920], strides = [1, 1]} : vector<16x2432xf32> to vector<16x1920xf32>
    %76 = vector.extract_strided_slice %73 {offsets = [0, 256], sizes = [16, 1920], strides = [1, 1]} : vector<16x2432xf32> to vector<16x1920xf32>
    %77 = vector.extract_strided_slice %73 {offsets = [0, 384], sizes = [16, 1920], strides = [1, 1]} : vector<16x2432xf32> to vector<16x1920xf32>
    %78 = vector.extract_strided_slice %73 {offsets = [0, 512], sizes = [16, 1920], strides = [1, 1]} : vector<16x2432xf32> to vector<16x1920xf32>
    %79 = arith.maximumf %74, %75 : vector<16x1920xf32>
    %80 = arith.maximumf %79, %76 : vector<16x1920xf32>
    %81 = arith.maximumf %80, %77 : vector<16x1920xf32>
    %82 = arith.maximumf %81, %78 : vector<16x1920xf32>
    %83 = vector.extract_strided_slice %82 {offsets = [0, 0], sizes = [16, 128], strides = [1, 1]} : vector<16x1920xf32> to vector<16x128xf32>
    %84 = vector.extract_strided_slice %82 {offsets = [0, 256], sizes = [16, 128], strides = [1, 1]} : vector<16x1920xf32> to vector<16x128xf32>
    %85 = vector.extract_strided_slice %82 {offsets = [0, 512], sizes = [16, 128], strides = [1, 1]} : vector<16x1920xf32> to vector<16x128xf32>
    %86 = vector.extract_strided_slice %82 {offsets = [0, 768], sizes = [16, 128], strides = [1, 1]} : vector<16x1920xf32> to vector<16x128xf32>
    %87 = vector.extract_strided_slice %82 {offsets = [0, 1024], sizes = [16, 128], strides = [1, 1]} : vector<16x1920xf32> to vector<16x128xf32>
    %88 = vector.extract_strided_slice %82 {offsets = [0, 1280], sizes = [16, 128], strides = [1, 1]} : vector<16x1920xf32> to vector<16x128xf32>
    %89 = vector.extract_strided_slice %82 {offsets = [0, 1536], sizes = [16, 128], strides = [1, 1]} : vector<16x1920xf32> to vector<16x128xf32>
    %90 = vector.extract_strided_slice %82 {offsets = [0, 1792], sizes = [16, 128], strides = [1, 1]} : vector<16x1920xf32> to vector<16x128xf32>
    %91 = tpu.concatenate %83, %84, %85, %86, %87, %88, %89, %90 in 1 : vector<16x128xf32>, vector<16x128xf32>, vector<16x128xf32>, vector<16x128xf32>, vector<16x128xf32>, vector<16x128xf32>, vector<16x128xf32>, vector<16x128xf32> -> vector<16x1024xf32>
    %92 = arith.truncf %91 : vector<16x1024xf32> to vector<16x1024xbf16>
    %c0_15 = arith.constant 0 : index
    %c0_16 = arith.constant 0 : index
    %93 = vector.load %arg6[%c0_15, %c0_16] : memref<32x80xbf16, #tpu.memory_space<vmem>>, vector<32x80xbf16>
    %c0_17 = arith.constant 0 : index
    %c0_18 = arith.constant 0 : index
    %94 = vector.load %arg7[%c0_17, %c0_18] : memref<32x1xf32, #tpu.memory_space<vmem>>, vector<32x1xf32>
    %95 = vector.extract_strided_slice %92 {offsets = [0, 0], sizes = [16, 512], strides = [1, 1]} : vector<16x1024xbf16> to vector<16x512xbf16>
    %96 = vector.extract_strided_slice %92 {offsets = [0, 128], sizes = [16, 512], strides = [1, 1]} : vector<16x1024xbf16> to vector<16x512xbf16>
    %97 = vector.extract_strided_slice %92 {offsets = [0, 256], sizes = [16, 512], strides = [1, 1]} : vector<16x1024xbf16> to vector<16x512xbf16>
    %98 = vector.extract_strided_slice %92 {offsets = [0, 384], sizes = [16, 512], strides = [1, 1]} : vector<16x1024xbf16> to vector<16x512xbf16>
    %99 = vector.extract_strided_slice %92 {offsets = [0, 512], sizes = [16, 512], strides = [1, 1]} : vector<16x1024xbf16> to vector<16x512xbf16>
    %100 = tpu.concatenate %95, %96, %97, %98, %99 in 0 : vector<16x512xbf16>, vector<16x512xbf16>, vector<16x512xbf16>, vector<16x512xbf16>, vector<16x512xbf16> -> vector<80x512xbf16>
    %cst_19 = arith.constant dense<0.000000e+00> : vector<32x512xf32>
    %101 = tpu.matmul %93, %100, %cst_19 {dimension_numbers = #tpu.dot_dimension_numbers<[1], [0], [0], [1], [0, 0, 1, 1], [], []>} : vector<32x80xbf16>, vector<80x512xbf16>, vector<32x512xf32> -> vector<32x512xf32>
    %102 = vector.broadcast %94 : vector<32x1xf32> to vector<32x512xf32>
    %103 = arith.addf %101, %102 : vector<32x512xf32>
    %cst_20 = arith.constant 0.000000e+00 : f32
    %104 = vector.broadcast %cst_20 : f32 to vector<32x512xf32>
    %105 = arith.cmpf oge, %103, %104 : vector<32x512xf32>
    %cst_21 = arith.constant 0.00999999977 : f32
    %106 = vector.broadcast %cst_21 : f32 to vector<32x512xf32>
    %107 = arith.mulf %106, %103 : vector<32x512xf32>
    %108 = arith.select %105, %103, %107 : vector<32x512xi1>, vector<32x512xf32>
    %109 = vector.extract_strided_slice %108 {offsets = [0, 0], sizes = [32, 128], strides = [1, 1]} : vector<32x512xf32> to vector<32x128xf32>
    %110 = vector.extract_strided_slice %108 {offsets = [0, 128], sizes = [32, 128], strides = [1, 1]} : vector<32x512xf32> to vector<32x128xf32>
    %111 = vector.extract_strided_slice %108 {offsets = [0, 256], sizes = [32, 128], strides = [1, 1]} : vector<32x512xf32> to vector<32x128xf32>
    %112 = vector.extract_strided_slice %108 {offsets = [0, 384], sizes = [32, 128], strides = [1, 1]} : vector<32x512xf32> to vector<32x128xf32>
    %113 = arith.maximumf %109, %110 : vector<32x128xf32>
    %114 = arith.maximumf %113, %111 : vector<32x128xf32>
    %115 = arith.maximumf %114, %112 : vector<32x128xf32>
    %c0_22 = arith.constant 0 : index
    %c0_23 = arith.constant 0 : index
    %116 = vector.load %arg8[%c0_22, %c0_23] : memref<32x32xbf16, #tpu.memory_space<vmem>>, vector<32x32xbf16>
    %117 = arith.truncf %115 : vector<32x128xf32> to vector<32x128xbf16>
    %cst_24 = arith.constant dense<0.000000e+00> : vector<32x128xf32>
    %118 = tpu.matmul %116, %117, %cst_24 {dimension_numbers = #tpu.dot_dimension_numbers<[1], [0], [0], [1], [0, 0, 1, 1], [], []>} : vector<32x32xbf16>, vector<32x128xbf16>, vector<32x128xf32> -> vector<32x128xf32>
    %c0_25 = arith.constant 0 : index
    %c0_26 = arith.constant 0 : index
    %119 = vector.load %arg9[%c0_25, %c0_26] : memref<32x1xf32, #tpu.memory_space<vmem>>, vector<32x1xf32>
    %120 = vector.broadcast %119 : vector<32x1xf32> to vector<32x128xf32>
    %121 = arith.addf %118, %120 : vector<32x128xf32>
    %cst_27 = arith.constant 0.000000e+00 : f32
    %122 = vector.broadcast %cst_27 : f32 to vector<32x128xf32>
    %123 = arith.cmpf oge, %121, %122 : vector<32x128xf32>
    %cst_28 = arith.constant 0.00999999977 : f32
    %124 = vector.broadcast %cst_28 : f32 to vector<32x128xf32>
    %125 = arith.mulf %124, %121 : vector<32x128xf32>
    %126 = arith.select %123, %121, %125 : vector<32x128xi1>, vector<32x128xf32>
    %c0_29 = arith.constant 0 : index
    %c0_30 = arith.constant 0 : index
    %127 = vector.load %arg10[%c0_29, %c0_30] : memref<10x32xbf16, #tpu.memory_space<vmem>>, vector<10x32xbf16>
    %128 = arith.truncf %126 : vector<32x128xf32> to vector<32x128xbf16>
    %cst_31 = arith.constant dense<0.000000e+00> : vector<10x128xf32>
    %129 = tpu.matmul %127, %128, %cst_31 {dimension_numbers = #tpu.dot_dimension_numbers<[1], [0], [0], [1], [0, 0, 1, 1], [], []>} : vector<10x32xbf16>, vector<32x128xbf16>, vector<10x128xf32> -> vector<10x128xf32>
    %c0_32 = arith.constant 0 : index
    %c0_33 = arith.constant 0 : index
    %130 = vector.load %arg11[%c0_32, %c0_33] : memref<10x1xf32, #tpu.memory_space<vmem>>, vector<10x1xf32>
    %131 = vector.broadcast %130 : vector<10x1xf32> to vector<10x128xf32>
    %132 = arith.addf %129, %131 : vector<10x128xf32>
    %cst_34 = arith.constant dense<0xFF800000> : vector<128xf32>
    %133 = vector.multi_reduction <maximumf>, %132, %cst_34 [0] : vector<10x128xf32> to vector<128xf32>
    %134 = vector.shape_cast %133 : vector<128xf32> to vector<1x128xf32>
    %135 = vector.broadcast %134 : vector<1x128xf32> to vector<10x128xf32>
    %136 = arith.subf %132, %135 : vector<10x128xf32>
    %137 = math.exp %136 : vector<10x128xf32>
    %cst_35 = arith.constant dense<0.000000e+00> : vector<128xf32>
    %138 = vector.multi_reduction <add>, %137, %cst_35 [0] : vector<10x128xf32> to vector<128xf32>
    %139 = vector.shape_cast %138 : vector<128xf32> to vector<1x128xf32>
    %140 = math.log %139 : vector<1x128xf32>
    %141 = vector.broadcast %140 : vector<1x128xf32> to vector<10x128xf32>
    %142 = arith.subf %136, %141 : vector<10x128xf32>
    %c0_36 = arith.constant 0 : index
    %c0_37 = arith.constant 0 : index
    %143 = vector.load %arg12[%c0_36, %c0_37] : memref<10x128xf32, #tpu.memory_space<vmem>>, vector<10x128xf32>
    tpu.vector_store %arg12[%c0_36, %c0_37], %142 {strides = array<i32>} : memref<10x128xf32, #tpu.memory_space<vmem>>, vector<10x128xf32>,
    return
  }
  func.func @transform_0(%arg0: i32) -> (i32, i32, i32) {
    %c0_i32 = arith.constant 0 : i32
    %c0_i32_0 = arith.constant 0 : i32
    %c0_i32_1 = arith.constant 0 : i32
    return %arg0, %c0_i32, %c0_i32_0 : i32, i32, i32
  }
  func.func @transform_1(%arg0: i32) -> (i32, i32) {
    %c0_i32 = arith.constant 0 : i32
    %c0_i32_0 = arith.constant 0 : i32
    %c0_i32_1 = arith.constant 0 : i32
    return %c0_i32, %c0_i32_0 : i32, i32
  }
  func.func @transform_2(%arg0: i32) -> (i32, i32) {
    %c0_i32 = arith.constant 0 : i32
    %c0_i32_0 = arith.constant 0 : i32
    %c0_i32_1 = arith.constant 0 : i32
    return %c0_i32, %c0_i32_0 : i32, i32
  }
  func.func @transform_3(%arg0: i32) -> (i32, i32) {
    %c0_i32 = arith.constant 0 : i32
    %c0_i32_0 = arith.constant 0 : i32
    %c0_i32_1 = arith.constant 0 : i32
    return %c0_i32, %c0_i32_0 : i32, i32
  }
  func.func @transform_4(%arg0: i32) -> (i32, i32) {
    %c0_i32 = arith.constant 0 : i32
    %c0_i32_0 = arith.constant 0 : i32
    %c0_i32_1 = arith.constant 0 : i32
    return %c0_i32, %c0_i32_0 : i32, i32
  }
  func.func @transform_5(%arg0: i32) -> (i32, i32) {
    %c0_i32 = arith.constant 0 : i32
    %c0_i32_0 = arith.constant 0 : i32
    %c0_i32_1 = arith.constant 0 : i32
    return %c0_i32, %c0_i32_0 : i32, i32
  }
  func.func @transform_6(%arg0: i32) -> (i32, i32) {
    %c0_i32 = arith.constant 0 : i32
    %c0_i32_0 = arith.constant 0 : i32
    %c0_i32_1 = arith.constant 0 : i32
    return %c0_i32, %c0_i32_0 : i32, i32
  }
  func.func @transform_7(%arg0: i32) -> (i32, i32) {
    %c0_i32 = arith.constant 0 : i32
    %c0_i32_0 = arith.constant 0 : i32
    %c0_i32_1 = arith.constant 0 : i32
    return %c0_i32, %c0_i32_0 : i32, i32
  }
  func.func @transform_8(%arg0: i32) -> (i32, i32) {
    %c0_i32 = arith.constant 0 : i32
    %c0_i32_0 = arith.constant 0 : i32
    %c0_i32_1 = arith.constant 0 : i32
    return %c0_i32, %c0_i32_0 : i32, i32
  }
  func.func @transform_9(%arg0: i32) -> (i32, i32) {
    %c0_i32 = arith.constant 0 : i32
    %c0_i32_0 = arith.constant 0 : i32
    %c0_i32_1 = arith.constant 0 : i32
    return %c0_i32, %c0_i32_0 : i32, i32
  }
  func.func @transform_10(%arg0: i32) -> (i32, i32) {
    %c0_i32 = arith.constant 0 : i32
    %c0_i32_0 = arith.constant 0 : i32
    %c0_i32_1 = arith.constant 0 : i32
    return %c0_i32, %c0_i32_0 : i32, i32
  }
  func.func @transform_11(%arg0: i32) -> (i32, i32) {
    %c0_i32 = arith.constant 0 : i32
    %c0_i32_0 = arith.constant 0 : i32
    return %c0_i32, %arg0 : i32, i32
  }
}

</mosaic_0001>

<bundles_post_ra>
// kernel: conv_model_forward.1
= control target key start
LH: loop header
LB: loop body
LE: loop exit
PB: predicated region body
PF: predicated region fallthrough
CT: control target
= control target key end

     0   :  { %vm731_vm0 = vcmask 1043456   ;;  %v4232_v27 = vmov 0   ;;  %vm967_vm1 = vcmask 326656   ;;  %s6021_s0 = inlined_call_operand.vmem [shape: bf16[1,24,7424], index: 0, kind: input, shape index: {}]   ;;  %s6022_s2 = inlined_call_operand.vmem [shape: f32[8,1], index: 2, kind: input, shape index: {}]   ;;  %s6023_s1 = inlined_call_operand.vmem [shape: bf16[8,168], index: 1, kind: input, shape index: {}]   ;;  %s6024_s4 = inlined_call_operand.vmem [shape: f32[16,1], index: 4, kind: input, shape index: {}]   ;;  %s6025_s6 = inlined_call_operand.vmem [shape: f32[32,1], index: 6, kind: input, shape index: {}]   ;;  %s6026_s8 = inlined_call_operand.vmem [shape: f32[32,1], index: 8, kind: input, shape index: {}]   ;;  %s6027_s10 = inlined_call_operand.vmem [shape: f32[10,1], index: 10, kind: input, shape index: {}]   ;;  %s6028_s3 = inlined_call_operand.vmem [shape: bf16[16,56], index: 3, kind: input, shape index: {}]   ;;  %s6029_s5 = inlined_call_operand.vmem [shape: bf16[32,80], index: 5, kind: input, shape index: {}]   ;;  %s6030_s7 = inlined_call_operand.vmem [shape: bf16[32,32], index: 7, kind: input, shape index: {}]   ;;  %s6031_s9 = inlined_call_operand.vmem [shape: bf16[10,32], index: 9, kind: input, shape index: {}]   ;;  %s6032_s11 = inlined_call_operand.vmem [shape: f32[10,128], index: 11, kind: output, shape index: {}]  }
   0x1   :  { %v39_v0 = vld [vmem:[%s6021_s0] sm:$0xff]  ;;  %v68_v1 = vld [vmem:[%s6021_s0 + $0xe8] sm:$0xff]  ;;  %v69_v5 = vld [vmem:[%s6021_s0 + $0xf0] sm:$0xff]  ;;  %3988 = vset.pattern.permute.xlu0 %v4232_v27  ;;  %3989 = vset.pattern.permute.xlu1 %v4232_v27 }
   0x2   :  { %v40_v2 = vld [vmem:[%s6021_s0 + $0x8] sm:$0xff]  ;;  %v3632_v3 = vcombine.high %v39_v0, %v68_v1  ;;  %v3735_v4 = vcombine.high %v39_v0, %v39_v0  ;;  %v3631_v6 = vcombine.low %v39_v0, %v68_v1  ;;  %v97_v7 = vld [vmem:[%s6021_s0 + $0x1d0] sm:$0xff]  ;;  %v98_v13 = vld [vmem:[%s6021_s0 + $0x1d8] sm:$0xff] }
   0x3   :  { %v3736_v8 = vcombine.low %v40_v2, %v40_v2  ;;  %v41_v9 = vld [vmem:[%s6021_s0 + $0x10] sm:$0xff]  ;;  %v3634_v10 = vcombine.high %v40_v2, %v69_v5  ;;  %v3633_v11 = vcombine.low %v40_v2, %v69_v5  ;;  %v3684_v12 = vcombine.high %v97_v7, %v97_v7  ;;  %v70_v19 = vld [vmem:[%s6021_s0 + $0xf8] sm:$0xff]  ;;  %v99_v20 = vld [vmem:[%s6021_s0 + $0x1e0] sm:$0xff] }
   0x4   :  { %v3738_v14 = vcombine.low %v41_v9, %v41_v9  ;;  %1077 = vmatprep.subr.bf16.mxu0 %v3632_v3  ;;  %v3686_v15 = vcombine.high %v98_v13, %v98_v13  ;;  %v3683_v16 = vcombine.low %v97_v7, %v97_v7  ;;  %v3685_v17 = vcombine.low %v98_v13, %v98_v13  ;;  %v42_v29 = vld [vmem:[%s6021_s0 + $0x18] sm:$0xff]  ;;  %v127_v31 = vld [vmem:[%s6022_s2] sm:$0xff]  ;;  %v100_v42 = vld [vmem:[%s6021_s0 + $0x1e8] sm:$0xff] }
   0x5   :  { %v3737_v18 = vcombine.high %v40_v2, %v40_v2  ;;  %1118 = vmatprep.subr.bf16.mxu1 %v3634_v10  ;;  %1078 = vmatpush1.bf16.msra.mxu0 %v3631_v6  ;;  %v738_v21 = vsel %vm731_vm0, %v3684_v12, %v3736_v8  ;;  %v3788_v24 = vcombine.low %v69_v5, %v98_v13  ;;  %v4338_v33 = vld [vmem:[%s6023_s1] sm:$0xff]  ;;  %v4376_v54 = vld [vmem:[%s6021_s0 + $0x108] sm:$0xff]  ;;  %v4381_v55 = vld [vmem:[%s6021_s0 + $0x1f0] sm:$0xff] }
   0x6   :  { %1119 = vmatpush1.bf16.msra.mxu1 %v3633_v11  ;;  %1079 = vmatprep.subr.bf16.mxu0 %v738_v21  ;;  %v746_v22 = vsel %vm731_vm0, %v3686_v15, %v3738_v14  ;;  %v734_v23 = vsel %vm731_vm0, %v3683_v16, %v3735_v4  ;;  %v3790_v26 = vcombine.low %v70_v19, %v99_v20  ;;  %v71_v41 = vld [vmem:[%s6021_s0 + $0x100] sm:$0xff]  ;;  %v44_v2 = vld [vmem:[%s6021_s0 + $0x28] sm:$0xff]  ;;  %v73_v6 = vld [vmem:[%s6021_s0 + $0x110] sm:$0xff] }
   0x7   :  { %1120 = vmatprep.subr.bf16.mxu1 %v746_v22  ;;  %v742_v25 = vsel %vm731_vm0, %v3685_v17, %v3737_v18  ;;  %v3787_v28 = vcombine.high %v68_v1, %v97_v7  ;;  %v3789_v30 = vcombine.high %v69_v5, %v98_v13  ;;  %v4333_v32 = vcombine.high %v41_v9, %v70_v19  ;;  %v4367_v45 = vld [vmem:[%s6021_s0 + $0x20] sm:$0xff]  ;;  %v102_v7 = vld [vmem:[%s6021_s0 + $0x1f8] sm:$0xff] }
   0x8   :  { %v3688_v34 = vcombine.high %v99_v20, %v99_v20  ;;  %v3740_v35 = vcombine.low %v42_v29, %v42_v29  ;;  %958 = vperm.xlu0 %3988, %v127_v31   ;;  %v4341_v36 = vcombine.low %v41_v9, %v70_v19  ;;  %v4345_v37 = vcombine.high %v4338_v33, %v4338_v33  ;;  %v46_v31 = vld [vmem:[%s6021_s0 + $0x38] sm:$0xff] }
   0x9   :  { %1080 = vmatpush1.bf16.msra.mxu0 %v734_v23  ;;  %v3687_v38 = vcombine.low %v99_v20, %v99_v20  ;;  %v3739_v39 = vcombine.high %v41_v9, %v41_v9  ;;  %v3792_v44 = vcombine.low %v71_v41, %v100_v42  ;;  %v3791_v46 = vcombine.high %v70_v19, %v99_v20  ;;  %v4448_v19 = vld [vmem:[%s6021_s0 + $0x118] sm:$0xff]  ;;  %v103_v20 = vld [vmem:[%s6021_s0 + $0x200] sm:$0xff] }
   0xa   :  { %1121 = vmatpush1.bf16.msra.mxu1 %v742_v25  ;;  %1081 = vmatprep.subr.bf16.mxu0 %v3788_v24  ;;  %v4349_v40 = vsel %vm731_vm0, %v3688_v34, %v3740_v35  ;;  %v3638_v47 = vcombine.high %v42_v29, %v71_v41  ;;  %v3690_v48 = vcombine.high %v100_v42, %v100_v42  ;;  %v75_v35 = vld [vmem:[%s6021_s0 + $0x120] sm:$0xff] }
   0xb   :  { %1122 = vmatprep.subr.bf16.mxu1 %v3790_v26  ;;  %3862 = vmatprep.mubr.msk.bf16.mxu0 %vm967_vm1, %v4345_v37  ;;  %v750_v43 = vsel %vm731_vm0, %v3687_v38, %v3739_v39  ;;  %v3742_v49 = vcombine.low %v4367_v45, %v4367_v45  ;;  %v3637_v50 = vcombine.low %v42_v29, %v71_v41 }
   0xc   :  { %3864 = vmatprep.mubr.msk.bf16.mxu1 %vm967_vm1, %v4345_v37  ;;  %v3689_v51 = vcombine.low %v100_v42, %v100_v42  ;;  %v3741_v52 = vcombine.high %v42_v29, %v42_v29  ;;  %v3794_v57 = vcombine.low %v4376_v54, %v4381_v55  ;;  %v3793_v58 = vcombine.high %v71_v41, %v100_v42 }
   0xd   :  { %1082 = vmatpush1.bf16.msra.mxu0 %v3787_v28  ;;  %v762_v53 = vsel %vm731_vm0, %v3690_v48, %v3742_v49  ;;  %v4390_v59 = vcombine.high %v4367_v45, %v4376_v54  ;;  %v4394_v60 = vcombine.low %v4367_v45, %v4376_v54  ;;  %v3692_v61 = vcombine.high %v4381_v55, %v4381_v55  ;;  %v4506_v49 = vld [vmem:[%s6021_s0 + $0x128] sm:$0xff] }
   0xe   :  { %1123 = vmatpush1.bf16.msra.mxu1 %v3789_v30  ;;  %1083 = vmatprep.subr.bf16.mxu0 %v3634_v10  ;;  %v758_v56 = vsel %vm731_vm0, %v3689_v51, %v3741_v52  ;;  %v3691_v62 = vcombine.low %v4381_v55, %v4381_v55  ;;  %v971_v63 = vsel %vm731_vm0, %v3689_v51, 0  ;;  %v4408_v1 = vcombine.low %v4338_v33, %v4338_v33  ;;  %v4437_v10 = vld [vmem:[%s6021_s0 + $0x30] sm:$0xff] }
   0xf   :  { %1124 = vmatprep.subr.bf16.mxu1 %v4333_v32  ;;  %v3744_v3 = vcombine.low %v44_v2, %v44_v2  ;;  %v3743_v4 = vcombine.high %v4367_v45, %v4367_v45  ;;  %v3796_v9 = vcombine.low %v73_v6, %v102_v7  ;;  %v3642_v12 = vcombine.high %v44_v2, %v73_v6 }
  0x10   :  { %v975_v0 = vsel %vm731_vm0, %v3691_v62, 0  ;;  %v3694_v13 = vcombine.high %v102_v7, %v102_v7  ;;  %v3746_v14 = vcombine.low %v4437_v10, %v4437_v10  ;;  %v3641_v15 = vcombine.low %v44_v2, %v73_v6 }
  0x11   :  { %1084 = vmatpush1.bf16.msra.mxu0 %v3633_v11  ;;  %v770_v5 = vsel %vm731_vm0, %v3692_v61, %v3744_v3  ;;  %v766_v8 = vsel %vm731_vm0, %v3691_v62, %v3743_v4  ;;  %v3795_v11 = vcombine.high %v4376_v54, %v4381_v55  ;;  %v3693_v16 = vcombine.low %v102_v7, %v102_v7 }
  0x12   :  { %1125 = vmatpush1.bf16.msra.mxu1 %v4341_v36  ;;  %1085 = vmatprep.subr.bf16.mxu0 %v746_v22  ;;  %v3745_v17 = vcombine.high %v44_v2, %v44_v2  ;;  %v778_v18 = vsel %vm731_vm0, %v3694_v13, %v3746_v14  ;;  %v3798_v22 = vcombine.low %v4448_v19, %v103_v20  ;;  %v106_v2 = vld [vmem:[%s6021_s0 + $0x218] sm:$0xff] }
  0x13   :  { %1126 = vmatprep.subr.bf16.mxu1 %v4349_v40  ;;  %v3797_v23 = vcombine.high %v73_v6, %v102_v7  ;;  %v4458_v24 = vcombine.high %v4437_v10, %v4448_v19  ;;  %v3695_v28 = vcombine.low %v103_v20, %v103_v20  ;;  %v979_v29 = vsel %vm731_vm0, %v3693_v16, 0  ;;  %v4564_v14 = vld [vmem:[%s6021_s0 + $0x138] sm:$0xff] }
  0x14   :  { %v774_v21 = vsel %vm731_vm0, %v3693_v16, %v3745_v17  ;;  %v3747_v33 = vcombine.high %v4437_v10, %v4437_v10  ;;  %v3799_v41 = vcombine.high %v4448_v19, %v103_v20  ;;  %v3646_v42 = vcombine.high %v46_v31, %v75_v35 }
  0x15   :  { %1086 = vmatpush1.bf16.msra.mxu0 %v742_v25  ;;  %v4462_v25 = vcombine.low %v4437_v10, %v4448_v19  ;;  %v3645_v45 = vcombine.low %v46_v31, %v75_v35 }
  0x16   :  { %1127 = vmatpush1.bf16.msra.mxu1 %v750_v43  ;;  %1087 = vmatprep.subr.bf16.mxu0 %v3790_v26  ;;  %v3696_v26 = vcombine.high %v103_v20, %v103_v20  ;;  %v782_v38 = vsel %vm731_vm0, %v3695_v28, %v3747_v33 }
  0x17   :  { %1128 = vmatprep.subr.bf16.mxu1 %v3792_v44 }
  0x19   :  { %1088 = vmatpush1.bf16.msra.mxu0 %v3789_v30  ;;  %v983_v30 = vsel %vm731_vm0, %v3695_v28, 0 }
  0x1a   :  { %1129 = vmatpush1.bf16.msra.mxu1 %v3791_v46  ;;  %1089 = vmatprep.subr.bf16.mxu0 %v4333_v32 }
  0x1b   :  { %1130 = vmatprep.subr.bf16.mxu1 %v3638_v47 }
  0x1d   :  { %1090 = vmatpush1.bf16.msra.mxu0 %v4341_v36 }
  0x1e   :  { %1131 = vmatpush1.bf16.msra.mxu1 %v3637_v50  ;;  %1091 = vmatprep.subr.bf16.mxu0 %v4349_v40 }
  0x1f   :  { %1132 = vmatprep.subr.bf16.mxu1 %v762_v53 }
  0x21   :  { %1092 = vmatpush1.bf16.msra.mxu0 %v750_v43 }
  0x22   :  { %1133 = vmatpush1.bf16.msra.mxu1 %v758_v56  ;;  %1093 = vmatprep.subr.bf16.mxu0 %v3792_v44 }
  0x23   :  { %1134 = vmatprep.subr.bf16.mxu1 %v3794_v57 }
  0x25   :  { %1094 = vmatpush1.bf16.msra.mxu0 %v3791_v46 }
  0x26   :  { %1135 = vmatpush1.bf16.msra.mxu1 %v3793_v58  ;;  %1095 = vmatprep.subr.bf16.mxu0 %v3638_v47 }
  0x27   :  { %1136 = vmatprep.subr.bf16.mxu1 %v4390_v59 }
  0x29   :  { %1096 = vmatpush1.bf16.msra.mxu0 %v3637_v50 }
  0x2a   :  { %1137 = vmatpush1.bf16.msra.mxu1 %v4394_v60  ;;  %3861 = vmatprep.subr.msk.bf16.mxu0 %vm731_vm0, %v3690_v48 }
  0x2b   :  { %3863 = vmatprep.subr.msk.bf16.mxu1 %vm731_vm0, %v3692_v61 }
  0x2d   :  { %1098 = vmatpush1.bf16.msra.mxu0 %v971_v63 }
  0x2e   :  { %1139 = vmatpush1.bf16.msra.mxu1 %v975_v0  ;;  %1159 = vmatprep.subr.bf16.mxu0 %v4333_v32  ;;  %v3748_v32 = vcombine.low %v46_v31, %v46_v31  ;;  %v77_v0 = vld [vmem:[%s6021_s0 + $0x130] sm:$0xff] }
  0x2f   :  { %1200 = vmatprep.subr.bf16.mxu1 %v3638_v47  ;;  %v3804_v4 = vcombine.low %v77_v0, %v106_v2 }
  0x30   :  { %1110 = vmatmul.mubr.bf16.vlgmr.msra.gmra.mrb[0].mxu0 %v4408_v1  ;;  %v786_v34 = vsel %vm731_vm0, %v3696_v26, %v3748_v32 }
  0x31   :  { %1151 = vmatmul.mubr.bf16.vlgmr.msra.gmra.mrb[0].mxu1 %v4408_v1  ;;  %1160 = vmatpush1.bf16.msra.mxu0 %v4341_v36  ;;  %v104_v36 = vld [vmem:[%s6021_s0 + $0x208] sm:$0xff] }
  0x32   :  { %1201 = vmatpush1.bf16.msra.mxu1 %v3637_v50  ;;  %1161 = vmatprep.subr.bf16.mxu0 %v4349_v40  ;;  %v3800_v39 = vcombine.low %v75_v35, %v104_v36  ;;  %v4496_v40 = vld [vmem:[%s6021_s0 + $0x40] sm:$0xff] }
  0x33   :  { %1202 = vmatprep.subr.bf16.mxu1 %v762_v53  ;;  %3866 = vmatprep.mubr.msk.bf16.mxu0 %vm967_vm1, %v4345_v37  ;;  %v4516_v54 = vcombine.high %v4496_v40, %v4506_v49  ;;  %v4520_v55 = vcombine.low %v4496_v40, %v4506_v49  ;;  %v3751_v62 = vcombine.high %v4496_v40, %v4496_v40 }
  0x34   :  { %3868 = vmatprep.mubr.msk.bf16.mxu1 %vm967_vm1, %v4345_v37 }
  0x35   :  { %1162 = vmatpush1.bf16.msra.mxu0 %v750_v43  ;;  %v3698_v43 = vcombine.high %v104_v36, %v104_v36 }
  0x36   :  { %1203 = vmatpush1.bf16.msra.mxu1 %v758_v56  ;;  %1163 = vmatprep.subr.bf16.mxu0 %v3792_v44  ;;  %v3750_v44 = vcombine.low %v4496_v40, %v4496_v40 }
  0x37   :  { %1204 = vmatprep.subr.bf16.mxu1 %v3794_v57 }
  0x38   :  { %v794_v48 = vsel %vm731_vm0, %v3698_v43, %v3750_v44  ;;  %v4622_v44 = vld [vmem:[%s6021_s0 + $0x148] sm:$0xff] }
  0x39   :  { %1164 = vmatpush1.bf16.msra.mxu0 %v3791_v46  ;;  %v3697_v46 = vcombine.low %v104_v36, %v104_v36 }
  0x3a   :  { %1205 = vmatpush1.bf16.msra.mxu1 %v3793_v58  ;;  %1165 = vmatprep.subr.bf16.mxu0 %v3638_v47  ;;  %v3749_v47 = vcombine.high %v46_v31, %v46_v31  ;;  %v108_v31 = vld [vmem:[%s6021_s0 + $0x228] sm:$0xff] }
  0x3b   :  { %1206 = vmatprep.subr.bf16.mxu1 %v4390_v59 }
  0x3c   :  { %v790_v51 = vsel %vm731_vm0, %v3697_v46, %v3749_v47 }
  0x3d   :  { %1166 = vmatpush1.bf16.msra.mxu0 %v3637_v50  ;;  %v105_v50 = vld [vmem:[%s6021_s0 + $0x210] sm:$0xff] }
  0x3e   :  { %1207 = vmatpush1.bf16.msra.mxu1 %v4394_v60  ;;  %1167 = vmatprep.subr.bf16.mxu0 %v762_v53  ;;  %v3802_v52 = vcombine.low %v4506_v49, %v105_v50  ;;  %v3801_v53 = vcombine.high %v75_v35, %v104_v36  ;;  %v3803_v6 = vcombine.high %v4506_v49, %v105_v50 }
  0x3f   :  { %1208 = vmatprep.subr.bf16.mxu1 %v770_v5 }
  0x41   :  { %1168 = vmatpush1.bf16.msra.mxu0 %v758_v56  ;;  %v3700_v56 = vcombine.high %v105_v50, %v105_v50 }
  0x42   :  { %1209 = vmatpush1.bf16.msra.mxu1 %v766_v8  ;;  %1169 = vmatprep.subr.bf16.mxu0 %v3794_v57  ;;  %v3699_v57 = vcombine.low %v105_v50, %v105_v50 }
  0x43   :  { %1210 = vmatprep.subr.bf16.mxu1 %v3796_v9 }
  0x44   :  { %v798_v3 = vsel %vm731_vm0, %v3699_v57, %v3751_v62 }
  0x45   :  { %1170 = vmatpush1.bf16.msra.mxu0 %v3793_v58  ;;  %v987_v58 = vsel %vm731_vm0, %v3697_v46, 0 }
  0x46   :  { %1211 = vmatpush1.bf16.msra.mxu1 %v3795_v11  ;;  %1171 = vmatprep.subr.bf16.mxu0 %v4390_v59 }
  0x47   :  { %1212 = vmatprep.subr.bf16.mxu1 %v3642_v12 }
  0x49   :  { %1172 = vmatpush1.bf16.msra.mxu0 %v4394_v60 }
  0x4a   :  { %1213 = vmatpush1.bf16.msra.mxu1 %v3641_v15  ;;  %1173 = vmatprep.subr.bf16.mxu0 %v770_v5 }
  0x4b   :  { %1214 = vmatprep.subr.bf16.mxu1 %v778_v18 }
  0x4d   :  { %1174 = vmatpush1.bf16.msra.mxu0 %v766_v8 }
  0x4e   :  { %1215 = vmatpush1.bf16.msra.mxu1 %v774_v21  ;;  %1175 = vmatprep.subr.bf16.mxu0 %v3796_v9 }
  0x4f   :  { %1216 = vmatprep.subr.bf16.mxu1 %v3798_v22 }
  0x51   :  { %1176 = vmatpush1.bf16.msra.mxu0 %v3795_v11 }
  0x52   :  { %1217 = vmatpush1.bf16.msra.mxu1 %v3797_v23  ;;  %1177 = vmatprep.subr.bf16.mxu0 %v3642_v12 }
  0x53   :  { %1218 = vmatprep.subr.bf16.mxu1 %v4458_v24 }
  0x55   :  { %1178 = vmatpush1.bf16.msra.mxu0 %v3641_v15 }
  0x56   :  { %1219 = vmatpush1.bf16.msra.mxu1 %v4462_v25  ;;  %3865 = vmatprep.subr.msk.bf16.mxu0 %vm731_vm0, %v3694_v13 }
  0x57   :  { %3867 = vmatprep.subr.msk.bf16.mxu1 %vm731_vm0, %v3696_v26 }
  0x59   :  { %1180 = vmatpush1.bf16.msra.mxu0 %v979_v29 }
  0x5a   :  { %1221 = vmatpush1.bf16.msra.mxu1 %v983_v30  ;;  %1241 = vmatprep.subr.bf16.mxu0 %v4390_v59  ;;  %v991_v59 = vsel %vm731_vm0, %v3699_v57, 0  ;;  %v79_v30 = vld [vmem:[%s6021_s0 + $0x140] sm:$0xff] }
  0x5b   :  { %1282 = vmatprep.subr.bf16.mxu1 %v3642_v12  ;;  %v3808_v33 = vcombine.low %v79_v30, %v108_v31 }
  0x5c   :  { %1192 = vmatmul.mubr.bf16.vlgmr.msra.gmra.mrb[4].mxu0 %v4408_v1 }
  0x5d   :  { %1233 = vmatmul.mubr.bf16.vlgmr.msra.gmra.mrb[4].mxu1 %v4408_v1  ;;  %1242 = vmatpush1.bf16.msra.mxu0 %v4394_v60  ;;  %v48_v60 = vld [vmem:[%s6021_s0 + $0x48] sm:$0xff] }
  0x5e   :  { %1283 = vmatpush1.bf16.msra.mxu1 %v3641_v15  ;;  %1243 = vmatprep.subr.bf16.mxu0 %v770_v5  ;;  %v3752_v61 = vcombine.low %v48_v60, %v48_v60  ;;  %v4554_v5 = vld [vmem:[%s6021_s0 + $0x50] sm:$0xff]  ;;  %v3650_v7 = vcombine.high %v48_v60, %v77_v0  ;;  %v3649_v10 = vcombine.low %v48_v60, %v77_v0 }
  0x5f   :  { %1284 = vmatprep.subr.bf16.mxu1 %v778_v18  ;;  %3870 = vmatprep.mubr.msk.bf16.mxu0 %vm967_vm1, %v4345_v37  ;;  %v4574_v19 = vcombine.high %v4554_v5, %v4564_v14  ;;  %v4578_v20 = vcombine.low %v4554_v5, %v4564_v14  ;;  %v3755_v28 = vcombine.high %v4554_v5, %v4554_v5 }
  0x60   :  { %3872 = vmatprep.mubr.msk.bf16.mxu1 %vm967_vm1, %v4345_v37  ;;  %v802_v63 = vsel %vm731_vm0, %v3700_v56, %v3752_v61 }
  0x61   :  { %1244 = vmatpush1.bf16.msra.mxu0 %v766_v8  ;;  %v3702_v8 = vcombine.high %v106_v2, %v106_v2 }
  0x62   :  { %1285 = vmatpush1.bf16.msra.mxu1 %v774_v21  ;;  %1245 = vmatprep.subr.bf16.mxu0 %v3796_v9  ;;  %v3754_v9 = vcombine.low %v4554_v5, %v4554_v5 }
  0x63   :  { %1286 = vmatprep.subr.bf16.mxu1 %v3798_v22 }
  0x64   :  { %v810_v13 = vsel %vm731_vm0, %v3702_v8, %v3754_v9  ;;  %v4699_v9 = vld [vmem:[%s6021_s0 + $0x158] sm:$0xff] }
  0x65   :  { %1246 = vmatpush1.bf16.msra.mxu0 %v3795_v11  ;;  %v3701_v11 = vcombine.low %v106_v2, %v106_v2 }
  0x66   :  { %1287 = vmatpush1.bf16.msra.mxu1 %v3797_v23  ;;  %1247 = vmatprep.subr.bf16.mxu0 %v3642_v12  ;;  %v3753_v12 = vcombine.high %v48_v60, %v48_v60  ;;  %v110_v60 = vld [vmem:[%s6021_s0 + $0x238] sm:$0xff] }
  0x67   :  { %1288 = vmatprep.subr.bf16.mxu1 %v4458_v24 }
  0x68   :  { %v806_v16 = vsel %vm731_vm0, %v3701_v11, %v3753_v12 }
  0x69   :  { %1248 = vmatpush1.bf16.msra.mxu0 %v3641_v15  ;;  %v107_v15 = vld [vmem:[%s6021_s0 + $0x220] sm:$0xff] }
  0x6a   :  { %1289 = vmatpush1.bf16.msra.mxu1 %v4462_v25  ;;  %1249 = vmatprep.subr.bf16.mxu0 %v778_v18  ;;  %v3806_v17 = vcombine.low %v4564_v14, %v107_v15  ;;  %v3805_v18 = vcombine.high %v77_v0, %v106_v2  ;;  %v3807_v35 = vcombine.high %v4564_v14, %v107_v15 }
  0x6b   :  { %1290 = vmatprep.subr.bf16.mxu1 %v786_v34 }
  0x6d   :  { %1250 = vmatpush1.bf16.msra.mxu0 %v774_v21  ;;  %v3704_v21 = vcombine.high %v107_v15, %v107_v15 }
  0x6e   :  { %1291 = vmatpush1.bf16.msra.mxu1 %v782_v38  ;;  %1251 = vmatprep.subr.bf16.mxu0 %v3798_v22  ;;  %v3703_v22 = vcombine.low %v107_v15, %v107_v15 }
  0x6f   :  { %1292 = vmatprep.subr.bf16.mxu1 %v3800_v39 }
  0x70   :  { %v814_v32 = vsel %vm731_vm0, %v3703_v22, %v3755_v28 }
  0x71   :  { %1252 = vmatpush1.bf16.msra.mxu0 %v3797_v23  ;;  %v995_v23 = vsel %vm731_vm0, %v3701_v11, 0 }
  0x72   :  { %1293 = vmatpush1.bf16.msra.mxu1 %v3799_v41  ;;  %1253 = vmatprep.subr.bf16.mxu0 %v4458_v24 }
  0x73   :  { %1294 = vmatprep.subr.bf16.mxu1 %v3646_v42 }
  0x75   :  { %1254 = vmatpush1.bf16.msra.mxu0 %v4462_v25 }
  0x76   :  { %1295 = vmatpush1.bf16.msra.mxu1 %v3645_v45  ;;  %1255 = vmatprep.subr.bf16.mxu0 %v786_v34 }
  0x77   :  { %1296 = vmatprep.subr.bf16.mxu1 %v794_v48 }
  0x79   :  { %1256 = vmatpush1.bf16.msra.mxu0 %v782_v38 }
  0x7a   :  { %1297 = vmatpush1.bf16.msra.mxu1 %v790_v51  ;;  %1257 = vmatprep.subr.bf16.mxu0 %v3800_v39 }
  0x7b   :  { %1298 = vmatprep.subr.bf16.mxu1 %v3802_v52 }
  0x7d   :  { %1258 = vmatpush1.bf16.msra.mxu0 %v3799_v41 }
  0x7e   :  { %1299 = vmatpush1.bf16.msra.mxu1 %v3801_v53  ;;  %1259 = vmatprep.subr.bf16.mxu0 %v3646_v42 }
  0x7f   :  { %1300 = vmatprep.subr.bf16.mxu1 %v4516_v54 }
  0x81   :  { %1260 = vmatpush1.bf16.msra.mxu0 %v3645_v45 }
  0x82   :  { %1301 = vmatpush1.bf16.msra.mxu1 %v4520_v55  ;;  %3869 = vmatprep.subr.msk.bf16.mxu0 %vm731_vm0, %v3698_v43 }
  0x83   :  { %3871 = vmatprep.subr.msk.bf16.mxu1 %vm731_vm0, %v3700_v56 }
  0x85   :  { %1262 = vmatpush1.bf16.msra.mxu0 %v987_v58 }
  0x86   :  { %1303 = vmatpush1.bf16.msra.mxu1 %v991_v59  ;;  %1323 = vmatprep.subr.bf16.mxu0 %v4458_v24  ;;  %v999_v24 = vsel %vm731_vm0, %v3703_v22, 0  ;;  %v81_v59 = vld [vmem:[%s6021_s0 + $0x150] sm:$0xff] }
  0x87   :  { %1364 = vmatprep.subr.bf16.mxu1 %v3646_v42  ;;  %v4672_v62 = vcombine.low %v81_v59, %v110_v60  ;;  %v4728_v15 = vpop.permute.xlu0 %958 }
  0x88   :  { %1274 = vmatmul.mubr.bf16.vlgmr.msra.gmra.mrb[8].mxu0 %v4408_v1 }
  0x89   :  { %1315 = vmatmul.mubr.bf16.vlgmr.msra.gmra.mrb[8].mxu1 %v4408_v1  ;;  %1324 = vmatpush1.bf16.msra.mxu0 %v4462_v25  ;;  %v50_v25 = vld [vmem:[%s6021_s0 + $0x58] sm:$0xff] }
  0x8a   :  { %1365 = vmatpush1.bf16.msra.mxu1 %v3645_v45  ;;  %1325 = vmatprep.subr.bf16.mxu0 %v786_v34  ;;  %v3756_v26 = vcombine.low %v50_v25, %v50_v25  ;;  %v4612_v34 = vld [vmem:[%s6021_s0 + $0x60] sm:$0xff]  ;;  %v3654_v36 = vcombine.high %v50_v25, %v79_v30  ;;  %v3653_v40 = vcombine.low %v50_v25, %v79_v30 }
  0x8b   :  { %1366 = vmatprep.subr.bf16.mxu1 %v794_v48  ;;  %3874 = vmatprep.mubr.msk.bf16.mxu0 %vm967_vm1, %v4345_v37  ;;  %v4632_v49 = vcombine.high %v4612_v34, %v4622_v44  ;;  %v4636_v50 = vcombine.low %v4612_v34, %v4622_v44  ;;  %v3759_v57 = vcombine.high %v4612_v34, %v4612_v34 }
  0x8c   :  { %3876 = vmatprep.mubr.msk.bf16.mxu1 %vm967_vm1, %v4345_v37  ;;  %v818_v29 = vsel %vm731_vm0, %v3704_v21, %v3756_v26 }
  0x8d   :  { %1326 = vmatpush1.bf16.msra.mxu0 %v782_v38  ;;  %v3706_v38 = vcombine.high %v108_v31, %v108_v31 }
  0x8e   :  { %1367 = vmatpush1.bf16.msra.mxu1 %v790_v51  ;;  %1327 = vmatprep.subr.bf16.mxu0 %v3800_v39  ;;  %v3758_v39 = vcombine.low %v4612_v34, %v4612_v34 }
  0x8f   :  { %1368 = vmatprep.subr.bf16.mxu1 %v3802_v52 }
  0x90   :  { %v826_v43 = vsel %vm731_vm0, %v3706_v38, %v3758_v39 }
  0x91   :  { %1328 = vmatpush1.bf16.msra.mxu0 %v3799_v41  ;;  %v3705_v41 = vcombine.low %v108_v31, %v108_v31 }
  0x92   :  { %1369 = vmatpush1.bf16.msra.mxu1 %v3801_v53  ;;  %1329 = vmatprep.subr.bf16.mxu0 %v3646_v42  ;;  %v3757_v42 = vcombine.high %v50_v25, %v50_v25 }
  0x93   :  { %1370 = vmatprep.subr.bf16.mxu1 %v4516_v54 }
  0x94   :  { %v822_v46 = vsel %vm731_vm0, %v3705_v41, %v3757_v42 }
  0x95   :  { %1330 = vmatpush1.bf16.msra.mxu0 %v3645_v45  ;;  %v109_v45 = vld [vmem:[%s6021_s0 + $0x230] sm:$0xff] }
  0x96   :  { %1371 = vmatpush1.bf16.msra.mxu1 %v4520_v55  ;;  %1331 = vmatprep.subr.bf16.mxu0 %v794_v48  ;;  %v3810_v47 = vcombine.low %v4622_v44, %v109_v45  ;;  %v3809_v48 = vcombine.high %v79_v30, %v108_v31  ;;  %v4681_v0 = vcombine.high %v4622_v44, %v109_v45 }
  0x97   :  { %1372 = vmatprep.subr.bf16.mxu1 %v802_v63 }
  0x99   :  { %1332 = vmatpush1.bf16.msra.mxu0 %v790_v51  ;;  %v3708_v51 = vcombine.high %v109_v45, %v109_v45 }
  0x9a   :  { %1373 = vmatpush1.bf16.msra.mxu1 %v798_v3  ;;  %1333 = vmatprep.subr.bf16.mxu0 %v3802_v52  ;;  %v3707_v52 = vcombine.low %v109_v45, %v109_v45 }
  0x9b   :  { %1374 = vmatprep.subr.bf16.mxu1 %v3804_v4 }
  0x9c   :  { %v4670_v61 = vsel %vm731_vm0, %v3707_v52, %v3759_v57 }
  0x9d   :  { %1334 = vmatpush1.bf16.msra.mxu0 %v3801_v53  ;;  %v1003_v53 = vsel %vm731_vm0, %v3705_v41, 0 }
  0x9e   :  { %1375 = vmatpush1.bf16.msra.mxu1 %v3803_v6  ;;  %1335 = vmatprep.subr.bf16.mxu0 %v4516_v54 }
  0x9f   :  { %1376 = vmatprep.subr.bf16.mxu1 %v3650_v7 }
  0xa1   :  { %1336 = vmatpush1.bf16.msra.mxu0 %v4520_v55 }
  0xa2   :  { %1377 = vmatpush1.bf16.msra.mxu1 %v3649_v10  ;;  %1337 = vmatprep.subr.bf16.mxu0 %v802_v63 }
  0xa3   :  { %1378 = vmatprep.subr.bf16.mxu1 %v810_v13 }
  0xa5   :  { %1338 = vmatpush1.bf16.msra.mxu0 %v798_v3 }
  0xa6   :  { %1379 = vmatpush1.bf16.msra.mxu1 %v806_v16  ;;  %1339 = vmatprep.subr.bf16.mxu0 %v3804_v4 }
  0xa7   :  { %1380 = vmatprep.subr.bf16.mxu1 %v3806_v17 }
  0xa9   :  { %1340 = vmatpush1.bf16.msra.mxu0 %v3803_v6 }
  0xaa   :  { %1381 = vmatpush1.bf16.msra.mxu1 %v3805_v18  ;;  %1341 = vmatprep.subr.bf16.mxu0 %v3650_v7 }
  0xab   :  { %1382 = vmatprep.subr.bf16.mxu1 %v4574_v19 }
  0xad   :  { %1342 = vmatpush1.bf16.msra.mxu0 %v3649_v10 }
  0xae   :  { %1383 = vmatpush1.bf16.msra.mxu1 %v4578_v20  ;;  %3873 = vmatprep.subr.msk.bf16.mxu0 %vm731_vm0, %v3702_v8 }
  0xaf   :  { %3875 = vmatprep.subr.msk.bf16.mxu1 %vm731_vm0, %v3704_v21 }
  0xb1   :  { %1344 = vmatpush1.bf16.msra.mxu0 %v995_v23 }
  0xb2   :  { %1385 = vmatpush1.bf16.msra.mxu1 %v999_v24  ;;  %1405 = vmatprep.subr.bf16.mxu0 %v4516_v54  ;;  %v1007_v54 = vsel %vm731_vm0, %v3707_v52, 0  ;;  %v112_v52 = vld [vmem:[%s6021_s0 + $0x248] sm:$0xff] }
  0xb3   :  { %1446 = vmatprep.subr.bf16.mxu1 %v3650_v7 }
  0xb4   :  { %1356 = vmatmul.mubr.bf16.vlgmr.msra.gmra.mrb[12].mxu0 %v4408_v1 }
  0xb5   :  { %1397 = vmatmul.mubr.bf16.vlgmr.msra.gmra.mrb[12].mxu1 %v4408_v1  ;;  %1406 = vmatpush1.bf16.msra.mxu0 %v4520_v55  ;;  %v52_v55 = vld [vmem:[%s6021_s0 + $0x68] sm:$0xff] }
  0xb6   :  { %1447 = vmatpush1.bf16.msra.mxu1 %v3649_v10  ;;  %1407 = vmatprep.subr.bf16.mxu0 %v802_v63  ;;  %v3760_v56 = vcombine.low %v52_v55, %v52_v55  ;;  %v4677_v63 = vld [vmem:[%s6021_s0 + $0x70] sm:$0xff]  ;;  %v4684_v2 = vcombine.high %v52_v55, %v81_v59  ;;  %v4690_v5 = vcombine.low %v52_v55, %v81_v59 }
  0xb7   :  { %1448 = vmatprep.subr.bf16.mxu1 %v810_v13  ;;  %3878 = vmatprep.mubr.msk.bf16.mxu0 %vm967_vm1, %v4345_v37  ;;  %v4725_v14 = vcombine.high %v4677_v63, %v4699_v9 }
  0xb8   :  { %3880 = vmatprep.mubr.msk.bf16.mxu1 %vm967_vm1, %v4345_v37  ;;  %v4659_v58 = vsel %vm731_vm0, %v3708_v51, %v3760_v56 }
  0xb9   :  { %1408 = vmatpush1.bf16.msra.mxu0 %v798_v3  ;;  %v3710_v3 = vcombine.high %v110_v60, %v110_v60 }
  0xba   :  { %1449 = vmatpush1.bf16.msra.mxu1 %v806_v16  ;;  %1409 = vmatprep.subr.bf16.mxu0 %v3804_v4  ;;  %v3762_v4 = vcombine.low %v4677_v63, %v4677_v63 }
  0xbb   :  { %1450 = vmatprep.subr.bf16.mxu1 %v3806_v17 }
  0xbc   :  { %v4694_v8 = vsel %vm731_vm0, %v3710_v3, %v3762_v4 }
  0xbd   :  { %1410 = vmatpush1.bf16.msra.mxu0 %v3803_v6  ;;  %v3709_v6 = vcombine.low %v110_v60, %v110_v60 }
  0xbe   :  { %1451 = vmatpush1.bf16.msra.mxu1 %v3805_v18  ;;  %1411 = vmatprep.subr.bf16.mxu0 %v3650_v7  ;;  %v3761_v7 = vcombine.high %v52_v55, %v52_v55  ;;  %v4812_v55 = vld [vmem:[%s6021_s0 + $0x80] sm:$0xff] }
  0xbf   :  { %1452 = vmatprep.subr.bf16.mxu1 %v4574_v19  ;;  %v1011_v28 = vsel %vm731_vm0, %v3709_v6, 0 }
  0xc0   :  { %v4711_v11 = vsel %vm731_vm0, %v3709_v6, %v3761_v7 }
  0xc1   :  { %1412 = vmatpush1.bf16.msra.mxu0 %v3649_v10  ;;  %v4704_v10 = vld [vmem:[%s6021_s0 + $0x240] sm:$0xff] }
  0xc2   :  { %1453 = vmatpush1.bf16.msra.mxu1 %v4578_v20  ;;  %1413 = vmatprep.subr.bf16.mxu0 %v810_v13  ;;  %v4715_v12 = vcombine.low %v4699_v9, %v4704_v10  ;;  %v4720_v13 = vcombine.high %v81_v59, %v110_v60  ;;  %v4818_v56 = vcombine.high %v4699_v9, %v4704_v10 }
  0xc3   :  { %1454 = vmatprep.subr.bf16.mxu1 %v818_v29  ;;  %v3766_v59 = vcombine.low %v4812_v55, %v4812_v55 }
  0xc5   :  { %1414 = vmatpush1.bf16.msra.mxu0 %v806_v16  ;;  %v4734_v16 = vcombine.low %v4677_v63, %v4699_v9 }
  0xc6   :  { %1455 = vmatpush1.bf16.msra.mxu1 %v814_v32  ;;  %1415 = vmatprep.subr.bf16.mxu0 %v3806_v17  ;;  %v4738_v17 = vcombine.low %v4704_v10, %v4704_v10 }
  0xc7   :  { %1456 = vmatprep.subr.bf16.mxu1 %v3808_v33 }
  0xc9   :  { %1416 = vmatpush1.bf16.msra.mxu0 %v3805_v18 }
  0xca   :  { %1457 = vmatpush1.bf16.msra.mxu1 %v3807_v35  ;;  %1417 = vmatprep.subr.bf16.mxu0 %v4574_v19 }
  0xcb   :  { %1458 = vmatprep.subr.bf16.mxu1 %v3654_v36 }
  0xcd   :  { %1418 = vmatpush1.bf16.msra.mxu0 %v4578_v20 }
  0xce   :  { %1459 = vmatpush1.bf16.msra.mxu1 %v3653_v40  ;;  %1419 = vmatprep.subr.bf16.mxu0 %v818_v29 }
  0xcf   :  { %1460 = vmatprep.subr.bf16.mxu1 %v826_v43 }
  0xd1   :  { %1420 = vmatpush1.bf16.msra.mxu0 %v814_v32 }
  0xd2   :  { %1461 = vmatpush1.bf16.msra.mxu1 %v822_v46  ;;  %1421 = vmatprep.subr.bf16.mxu0 %v3808_v33 }
  0xd3   :  { %1462 = vmatprep.subr.bf16.mxu1 %v3810_v47 }
  0xd5   :  { %1422 = vmatpush1.bf16.msra.mxu0 %v3807_v35 }
  0xd6   :  { %1463 = vmatpush1.bf16.msra.mxu1 %v3809_v48  ;;  %1423 = vmatprep.subr.bf16.mxu0 %v3654_v36 }
  0xd7   :  { %1464 = vmatprep.subr.bf16.mxu1 %v4632_v49 }
  0xd9   :  { %1424 = vmatpush1.bf16.msra.mxu0 %v3653_v40 }
  0xda   :  { %1465 = vmatpush1.bf16.msra.mxu1 %v4636_v50  ;;  %3877 = vmatprep.subr.msk.bf16.mxu0 %vm731_vm0, %v3706_v38 }
  0xdb   :  { %3879 = vmatprep.subr.msk.bf16.mxu1 %vm731_vm0, %v3708_v51  ;;  %v83_v51 = vld [vmem:[%s6021_s0 + $0x160] sm:$0xff] }
  0xdd   :  { %1426 = vmatpush1.bf16.msra.mxu0 %v1003_v53 }
  0xde   :  { %1467 = vmatpush1.bf16.msra.mxu1 %v1007_v54  ;;  %1487 = vmatprep.subr.bf16.mxu0 %v4574_v19  ;;  %v3712_v19 = vcombine.high %v4704_v10, %v4704_v10  ;;  %v4806_v54 = vcombine.low %v83_v51, %v112_v52 }
  0xdf   :  { %1528 = vmatprep.subr.bf16.mxu1 %v3654_v36 }
  0xe0   :  { %1438 = vmatmul.mubr.bf16.vlgmr.msra.gmra.mrb[16].mxu0 %v4408_v1 }
  0xe1   :  { %1479 = vmatmul.mubr.bf16.vlgmr.msra.gmra.mrb[16].mxu1 %v4408_v1  ;;  %1488 = vmatpush1.bf16.msra.mxu0 %v4578_v20 }
  0xe2   :  { %1529 = vmatpush1.bf16.msra.mxu1 %v3653_v40  ;;  %1489 = vmatprep.subr.bf16.mxu0 %v818_v29 }
  0xe3   :  { %1530 = vmatprep.subr.bf16.mxu1 %v826_v43  ;;  %3882 = vmatprep.mubr.msk.bf16.mxu0 %vm967_vm1, %v4345_v37 }
  0xe4   :  { %3884 = vmatprep.mubr.msk.bf16.mxu1 %vm967_vm1, %v4345_v37 }
  0xe5   :  { %1490 = vmatpush1.bf16.msra.mxu0 %v814_v32 }
  0xe6   :  { %1531 = vmatpush1.bf16.msra.mxu1 %v822_v46  ;;  %1491 = vmatprep.subr.bf16.mxu0 %v3808_v33  ;;  %v1015_v33 = vsel %vm731_vm0, %v4738_v17, 0 }
  0xe7   :  { %1532 = vmatprep.subr.bf16.mxu1 %v3810_v47 }
  0xe9   :  { %1492 = vmatpush1.bf16.msra.mxu0 %v3807_v35 }
  0xea   :  { %1533 = vmatpush1.bf16.msra.mxu1 %v3809_v48  ;;  %1493 = vmatprep.subr.bf16.mxu0 %v3654_v36 }
  0xeb   :  { %1534 = vmatprep.subr.bf16.mxu1 %v4632_v49 }
  0xed   :  { %1494 = vmatpush1.bf16.msra.mxu0 %v3653_v40 }
  0xee   :  { %1535 = vmatpush1.bf16.msra.mxu1 %v4636_v50  ;;  %1495 = vmatprep.subr.bf16.mxu0 %v826_v43 }
  0xef   :  { %1536 = vmatprep.subr.bf16.mxu1 %v4659_v58 }
  0xf1   :  { %1496 = vmatpush1.bf16.msra.mxu0 %v822_v46 }
  0xf2   :  { %1537 = vmatpush1.bf16.msra.mxu1 %v4670_v61  ;;  %1497 = vmatprep.subr.bf16.mxu0 %v3810_v47  ;;  %v54_v47 = vld [vmem:[%s6021_s0 + $0x78] sm:$0xff] }
  0xf3   :  { %1538 = vmatprep.subr.bf16.mxu1 %v4672_v62  ;;  %v4821_v57 = vcombine.high %v54_v47, %v83_v51  ;;  %v4828_v60 = vcombine.low %v54_v47, %v83_v51 }
  0xf5   :  { %1498 = vmatpush1.bf16.msra.mxu0 %v3809_v48  ;;  %v3764_v48 = vcombine.low %v54_v47, %v54_v47 }
  0xf6   :  { %1539 = vmatpush1.bf16.msra.mxu1 %v4681_v0  ;;  %1499 = vmatprep.subr.bf16.mxu0 %v4632_v49 }
  0xf7   :  { %1540 = vmatprep.subr.bf16.mxu1 %v4684_v2 }
  0xf9   :  { %1500 = vmatpush1.bf16.msra.mxu0 %v4636_v50 }
  0xfa   :  { %1541 = vmatpush1.bf16.msra.mxu1 %v4690_v5  ;;  %1501 = vmatprep.subr.bf16.mxu0 %v4659_v58 }
  0xfb   :  { %1542 = vmatprep.subr.bf16.mxu1 %v4694_v8 }
  0xfd   :  { %1502 = vmatpush1.bf16.msra.mxu0 %v4670_v61 }
  0xfe   :  { %1543 = vmatpush1.bf16.msra.mxu1 %v4711_v11  ;;  %1503 = vmatprep.subr.bf16.mxu0 %v4672_v62 }
  0xff   :  { %1544 = vmatprep.subr.bf16.mxu1 %v4715_v12 }
 0x101   :  { %1504 = vmatpush1.bf16.msra.mxu0 %v4681_v0 }
 0x102   :  { %1545 = vmatpush1.bf16.msra.mxu1 %v4720_v13  ;;  %1505 = vmatprep.subr.bf16.mxu0 %v4684_v2 }
 0x103   :  { %v1111_v18 = vpop.f32.mrb[0].mxu0  ;;  %1546 = vmatprep.subr.bf16.mxu1 %v4725_v14 }
 0x104   :  { %v1112_v20 = vadd.f32 %v1111_v18, %v4728_v15  ;;  %v1113_v21 = vpop.f32.mrb[1].mxu0  ;;  %v1152_v22 = vpop.f32.mrb[0].mxu1 }
 0x105   :  { %v1114_v23 = vadd.f32 %v1113_v21, %v4728_v15  ;;  %v1115_v24 = vpop.f32.mrb[2].mxu0  ;;  %1506 = vmatpush1.bf16.msra.mxu0 %v4690_v5  ;;  %v1153_v25 = vadd.f32 %v1152_v22, %v4728_v15  ;;  %v1154_v26 = vpop.f32.mrb[1].mxu1 }
 0x106   :  { %vm2143_vm2 = vcmp.ge.f32.partialorder %v1112_v20, 0.0  ;;  %v2195_v29 = vmul.f32 0.01, %v1112_v20  ;;  %1547 = vmatpush1.bf16.msra.mxu1 %v4734_v16  ;;  %v1116_v30 = vpop.f32.mrb[3].mxu0  ;;  %v1155_v31 = vadd.f32 %v1154_v26, %v4728_v15  ;;  %3881 = vmatprep.subr.msk.bf16.mxu0 %vm731_vm0, %v3710_v3  ;;  %v1156_v32 = vpop.f32.mrb[2].mxu1 }
 0x107   :  { %vm2144_vm3 = vcmp.ge.f32.partialorder %v1114_v23, 0.0  ;;  %v2196_v34 = vmul.f32 0.01, %v1114_v23  ;;  %vm2145_vm4 = vcmp.ge.f32.partialorder %v1153_v25, 0.0  ;;  %v2197_v35 = vmul.f32 0.01, %v1153_v25  ;;  %3883 = vmatprep.subr.msk.bf16.mxu1 %vm731_vm0, %v3712_v19 }
 0x108   :  { %v2247_v36 = vsel %vm2143_vm2, %v1112_v20, %v2195_v29  ;;  %vm2146_vm5 = vcmp.ge.f32.partialorder %v1155_v31, 0.0  ;;  %v2198_v38 = vmul.f32 0.01, %v1155_v31  ;;  %v1157_v39 = vpop.f32.mrb[3].mxu1 }
 0x109   :  { %v2248_v40 = vsel %vm2144_vm3, %v1114_v23, %v2196_v34  ;;  %v4754_v41 = vsel %vm2145_vm4, %v1153_v25, %v2197_v35  ;;  %1508 = vmatpush1.bf16.msra.mxu0 %v1011_v28 }
 0x10a   :  { %v2299_v42 = vmax.f32 %v2247_v36, %v2248_v40  ;;  %v4756_v43 = vsel %vm2146_vm5, %v1155_v31, %v2198_v38  ;;  %1549 = vmatpush1.bf16.msra.mxu1 %v1015_v33  ;;  %1569 = vmatprep.subr.bf16.mxu0 %v4632_v49  ;;  %v3763_v49 = vcombine.high %v4677_v63, %v4677_v63 }
 0x10b   :  { %v2300_v44 = vmax.f32 %v4754_v41, %v4756_v43  ;;  %1610 = vmatprep.subr.bf16.mxu1 %v4684_v2 }
 0x10c   :  { %v2324_v45 = vmax.f32 %v2299_v42, %v4754_v41  ;;  %1520 = vmatmul.mubr.bf16.vlgmr.msra.gmra.mrb[20].mxu0 %v4408_v1  ;;  %v4804_v53 = vsel %vm731_vm0, %v4738_v17, %v3763_v49 }
 0x10d   :  { %1561 = vmatmul.mubr.bf16.vlgmr.msra.gmra.mrb[20].mxu1 %v4408_v1  ;;  %1570 = vmatpush1.bf16.msra.mxu0 %v4636_v50  ;;  %v4790_v50 = vsel %vm731_vm0, %v3712_v19, %v3764_v48 }
 0x10e   :  { %v4767_v46 = vmax.f32 %v2324_v45, %v4756_v43  ;;  %1611 = vmatpush1.bf16.msra.mxu1 %v4690_v5  ;;  %1571 = vmatprep.subr.bf16.mxu0 %v4659_v58  ;;  %v3714_v58 = vcombine.high %v112_v52, %v112_v52 }
 0x10f   :  { %1612 = vmatprep.subr.bf16.mxu1 %v4694_v8  ;;  %3886 = vmatprep.mubr.msk.bf16.mxu0 %vm967_vm1, %v4345_v37 }
 0x110   :  { %3888 = vmatprep.mubr.msk.bf16.mxu1 %vm967_vm1, %v4345_v37  ;;  %v4832_v63 = vsel %vm731_vm0, %v3714_v58, %v3766_v59 }
 0x111   :  { %1572 = vmatpush1.bf16.msra.mxu0 %v4670_v61  ;;  %v3713_v61 = vcombine.low %v112_v52, %v112_v52 }
 0x112   :  { %1613 = vmatpush1.bf16.msra.mxu1 %v4711_v11  ;;  %1573 = vmatprep.subr.bf16.mxu0 %v4672_v62  ;;  %v3765_v62 = vcombine.high %v54_v47, %v54_v47 }
 0x113   :  { %1614 = vmatprep.subr.bf16.mxu1 %v4715_v12  ;;  %v1019_v21 = vsel %vm731_vm0, %v3713_v61, 0 }
 0x114   :  { %v4849_v3 = vsel %vm731_vm0, %v3713_v61, %v3765_v62 }
 0x115   :  { %1574 = vmatpush1.bf16.msra.mxu0 %v4681_v0  ;;  %v4837_v0 = vld [vmem:[%s6021_s0 + $0x168] sm:$0xff] }
 0x116   :  { %1615 = vmatpush1.bf16.msra.mxu1 %v4720_v13  ;;  %1575 = vmatprep.subr.bf16.mxu0 %v4684_v2  ;;  %v4842_v2 = vld [vmem:[%s6021_s0 + $0x250] sm:$0xff]  ;;  %v4863_v6 = vcombine.high %v4812_v55, %v4837_v0  ;;  %v4870_v7 = vcombine.low %v4812_v55, %v4837_v0 }
 0x117   :  { %1616 = vmatprep.subr.bf16.mxu1 %v4725_v14  ;;  %v4853_v4 = vcombine.low %v4837_v0, %v4842_v2  ;;  %v4879_v10 = vcombine.high %v4842_v2, %v4842_v2 }
 0x119   :  { %1576 = vmatpush1.bf16.msra.mxu0 %v4690_v5  ;;  %v4858_v5 = vcombine.high %v83_v51, %v112_v52  ;;  %v85_v52 = vld [vmem:[%s6021_s0 + $0x170] sm:$0xff] }
 0x11a   :  { %1617 = vmatpush1.bf16.msra.mxu1 %v4734_v16  ;;  %1577 = vmatprep.subr.bf16.mxu0 %v4694_v8  ;;  %v4874_v8 = vcombine.low %v4842_v2, %v4842_v2 }
 0x11b   :  { %1618 = vmatprep.subr.bf16.mxu1 %v4790_v50 }
 0x11c   :  { %v1023_v26 = vsel %vm731_vm0, %v4874_v8, 0 }
 0x11d   :  { %1578 = vmatpush1.bf16.msra.mxu0 %v4711_v11 }
 0x11e   :  { %1619 = vmatpush1.bf16.msra.mxu1 %v4804_v53  ;;  %1579 = vmatprep.subr.bf16.mxu0 %v4715_v12 }
 0x11f   :  { %1620 = vmatprep.subr.bf16.mxu1 %v4806_v54 }
 0x121   :  { %1580 = vmatpush1.bf16.msra.mxu0 %v4720_v13 }
 0x122   :  { %1621 = vmatpush1.bf16.msra.mxu1 %v4818_v56  ;;  %1581 = vmatprep.subr.bf16.mxu0 %v4725_v14 }
 0x123   :  { %1622 = vmatprep.subr.bf16.mxu1 %v4821_v57 }
 0x125   :  { %1582 = vmatpush1.bf16.msra.mxu0 %v4734_v16 }
 0x126   :  { %1623 = vmatpush1.bf16.msra.mxu1 %v4828_v60  ;;  %1583 = vmatprep.subr.bf16.mxu0 %v4790_v50 }
 0x127   :  { %1624 = vmatprep.subr.bf16.mxu1 %v4832_v63 }
 0x129   :  { %1584 = vmatpush1.bf16.msra.mxu0 %v4804_v53 }
 0x12a   :  { %1625 = vmatpush1.bf16.msra.mxu1 %v4849_v3  ;;  %1585 = vmatprep.subr.bf16.mxu0 %v4806_v54 }
 0x12b   :  { %1626 = vmatprep.subr.bf16.mxu1 %v4853_v4 }
 0x12d   :  { %1586 = vmatpush1.bf16.msra.mxu0 %v4818_v56 }
 0x12e   :  { %1627 = vmatpush1.bf16.msra.mxu1 %v4858_v5  ;;  %1587 = vmatprep.subr.bf16.mxu0 %v4821_v57 }
 0x12f   :  { %v1193_v9 = vpop.f32.mrb[4].mxu0  ;;  %1628 = vmatprep.subr.bf16.mxu1 %v4863_v6 }
 0x130   :  { %v1194_v11 = vadd.f32 %v1193_v9, %v4728_v15  ;;  %v1195_v12 = vpop.f32.mrb[5].mxu0  ;;  %v1234_v13 = vpop.f32.mrb[4].mxu1 }
 0x131   :  { %v1196_v17 = vadd.f32 %v1195_v12, %v4728_v15  ;;  %v1197_v18 = vpop.f32.mrb[6].mxu0  ;;  %1588 = vmatpush1.bf16.msra.mxu0 %v4828_v60  ;;  %v1235_v19 = vadd.f32 %v1234_v13, %v4728_v15  ;;  %v1236_v20 = vpop.f32.mrb[5].mxu1 }
 0x132   :  { %vm2147_vm6 = vcmp.ge.f32.partialorder %v1194_v11, 0.0  ;;  %v2199_v22 = vmul.f32 0.01, %v1194_v11  ;;  %1629 = vmatpush1.bf16.msra.mxu1 %v4870_v7  ;;  %v1198_v23 = vpop.f32.mrb[7].mxu0  ;;  %v1237_v24 = vadd.f32 %v1236_v20, %v4728_v15  ;;  %3885 = vmatprep.subr.msk.bf16.mxu0 %vm731_vm0, %v3714_v58  ;;  %v1238_v25 = vpop.f32.mrb[6].mxu1 }
 0x133   :  { %vm2148_vm7 = vcmp.ge.f32.partialorder %v1196_v17, 0.0  ;;  %v2200_v28 = vmul.f32 0.01, %v1196_v17  ;;  %vm2149_vm8 = vcmp.ge.f32.partialorder %v1235_v19, 0.0  ;;  %v2201_v29 = vmul.f32 0.01, %v1235_v19  ;;  %3887 = vmatprep.subr.msk.bf16.mxu1 %vm731_vm0, %v4879_v10 }
 0x134   :  { %v2251_v30 = vsel %vm2147_vm6, %v1194_v11, %v2199_v22  ;;  %vm2150_vm9 = vcmp.ge.f32.partialorder %v1237_v24, 0.0  ;;  %v2202_v31 = vmul.f32 0.01, %v1237_v24  ;;  %v1239_v32 = vpop.f32.mrb[7].mxu1 }
 0x135   :  { %v2325_v33 = vmax.f32 %v2300_v44, %v2251_v30  ;;  %v2252_v34 = vsel %vm2148_vm7, %v1196_v17, %v2200_v28  ;;  %v4896_v35 = vsel %vm2149_vm8, %v1235_v19, %v2201_v29  ;;  %1590 = vmatpush1.bf16.msra.mxu0 %v1019_v21 }
 0x136   :  { %v2301_v36 = vmax.f32 %v2251_v30, %v2252_v34  ;;  %v4898_v38 = vsel %vm2150_vm9, %v1237_v24, %v2202_v31  ;;  %1631 = vmatpush1.bf16.msra.mxu1 %v1023_v26  ;;  %1651 = vmatprep.subr.bf16.mxu0 %v4725_v14  ;;  %v2374_v14 = vpack.c.bf16 %v4767_v46, %v4767_v46 }
 0x137   :  { %v2350_v39 = vmax.f32 %v2325_v33, %v2252_v34  ;;  %v2302_v40 = vmax.f32 %v4896_v35, %v4898_v38  ;;  %1692 = vmatprep.subr.bf16.mxu1 %v4821_v57 }
 0x138   :  { %v2326_v42 = vmax.f32 %v2301_v36, %v4896_v35  ;;  %1602 = vmatmul.mubr.bf16.vlgmr.msra.gmra.mrb[24].mxu0 %v4408_v1 }
 0x139   :  { %1643 = vmatmul.mubr.bf16.vlgmr.msra.gmra.mrb[24].mxu1 %v4408_v1  ;;  %1652 = vmatpush1.bf16.msra.mxu0 %v4734_v16  ;;  %v2375_v41 = vpack.c.bf16 %v2350_v39, %v2350_v39  ;;  %v56_v16 = vld [vmem:[%s6021_s0 + $0x88] sm:$0xff] }
 0x13a   :  { %v2351_v43 = vmax.f32 %v2326_v42, %v4898_v38  ;;  %1693 = vmatpush1.bf16.msra.mxu1 %v4828_v60  ;;  %1653 = vmatprep.subr.bf16.mxu0 %v4790_v50  ;;  %v3768_v48 = vcombine.low %v56_v16, %v56_v16  ;;  %v3767_v50 = vcombine.high %v4812_v55, %v4812_v55 }
 0x13b   :  { %1694 = vmatprep.subr.bf16.mxu1 %v4832_v63  ;;  %3890 = vmatprep.mubr.msk.bf16.mxu0 %vm967_vm1, %v4345_v37  ;;  %v2422_v44 = vrot.slane %v2375_v41, 4  ;;  %v4973_v58 = vcombine.high %v56_v16, %v85_v52  ;;  %v4980_v61 = vcombine.low %v56_v16, %v85_v52 }
 0x13c   :  { %v4916_v45 = vpack.c.bf16 %v2351_v43, %v2351_v43  ;;  %3892 = vmatprep.mubr.msk.bf16.mxu1 %vm967_vm1, %v4345_v37  ;;  %v4942_v51 = vsel %vm731_vm0, %v4879_v10, %v3768_v48 }
 0x13d   :  { %1654 = vmatpush1.bf16.msra.mxu0 %v4804_v53  ;;  %v4925_v47 = vsel %vm731_vm0, %v2374_v14, %v2422_v44  ;;  %v114_v53 = vld [vmem:[%s6021_s0 + $0x258] sm:$0xff] }
 0x13e   :  { %1695 = vmatpush1.bf16.msra.mxu1 %v4849_v3  ;;  %1655 = vmatprep.subr.bf16.mxu0 %v4806_v54  ;;  %v2423_v46 = vrot.slane %v4916_v45, 4  ;;  %v4956_v54 = vsel %vm731_vm0, %v4874_v8, %v3767_v50  ;;  %v4958_v55 = vcombine.low %v85_v52, %v114_v53  ;;  %v3718_v59 = vcombine.high %v114_v53, %v114_v53 }
 0x13f   :  { %1696 = vmatprep.subr.bf16.mxu1 %v4853_v4  ;;  %v3717_v62 = vcombine.low %v114_v53, %v114_v53  ;;  %v5010_v8 = vcombine.high %v85_v52, %v114_v53 }
 0x140   :  { %v4932_v49 = vsel %vm731_vm0, %v2375_v41, %v2423_v46 }
 0x141   :  { %1656 = vmatpush1.bf16.msra.mxu0 %v4818_v56  ;;  %v4964_v56 = vld [vmem:[%s6021_s0 + $0x90] sm:$0xff]  ;;  %v1027_v24 = vsel %vm731_vm0, %v3717_v62, 0 }
 0x142   :  { %1697 = vmatpush1.bf16.msra.mxu1 %v4858_v5  ;;  %1657 = vmatprep.subr.bf16.mxu0 %v4821_v57  ;;  %v4970_v57 = vcombine.high %v4837_v0, %v4842_v2  ;;  %v4989_v2 = vld [vmem:[%s6021_s0 + $0x178] sm:$0xff] }
 0x143   :  { %1698 = vmatprep.subr.bf16.mxu1 %v4863_v6  ;;  %v5015_v9 = vcombine.high %v4964_v56, %v4989_v2  ;;  %v5022_v10 = vcombine.low %v4964_v56, %v4989_v2 }
 0x145   :  { %1658 = vmatpush1.bf16.msra.mxu0 %v4828_v60  ;;  %v3770_v60 = vcombine.low %v4964_v56, %v4964_v56 }
 0x146   :  { %1699 = vmatpush1.bf16.msra.mxu1 %v4870_v7  ;;  %1659 = vmatprep.subr.bf16.mxu0 %v4832_v63  ;;  %v3769_v63 = vcombine.high %v56_v16, %v56_v16 }
 0x147   :  { %1700 = vmatprep.subr.bf16.mxu1 %v4942_v51  ;;  %v4984_v0 = vsel %vm731_vm0, %v3718_v59, %v3770_v60 }
 0x149   :  { %1660 = vmatpush1.bf16.msra.mxu0 %v4849_v3  ;;  %v4994_v3 = vld [vmem:[%s6021_s0 + $0x260] sm:$0xff] }
 0x14a   :  { %1701 = vmatpush1.bf16.msra.mxu1 %v4956_v54  ;;  %1661 = vmatprep.subr.bf16.mxu0 %v4853_v4  ;;  %v5001_v4 = vsel %vm731_vm0, %v3717_v62, %v3769_v63  ;;  %v5026_v11 = vcombine.low %v4994_v3, %v4994_v3  ;;  %v5031_v13 = vcombine.high %v4994_v3, %v4994_v3 }
 0x14b   :  { %1702 = vmatprep.subr.bf16.mxu1 %v4958_v55 }
 0x14c   :  { %v1031_v30 = vsel %vm731_vm0, %v5026_v11, 0 }
 0x14d   :  { %1662 = vmatpush1.bf16.msra.mxu0 %v4858_v5  ;;  %v5005_v5 = vcombine.low %v4989_v2, %v4994_v3 }
 0x14e   :  { %1703 = vmatpush1.bf16.msra.mxu1 %v4970_v57  ;;  %1663 = vmatprep.subr.bf16.mxu0 %v4863_v6 }
 0x14f   :  { %1704 = vmatprep.subr.bf16.mxu1 %v4973_v58 }
 0x151   :  { %1664 = vmatpush1.bf16.msra.mxu0 %v4870_v7 }
 0x152   :  { %1705 = vmatpush1.bf16.msra.mxu1 %v4980_v61  ;;  %1665 = vmatprep.subr.bf16.mxu0 %v4942_v51 }
 0x153   :  { %1706 = vmatprep.subr.bf16.mxu1 %v4984_v0 }
 0x155   :  { %1666 = vmatpush1.bf16.msra.mxu0 %v4956_v54 }
 0x156   :  { %1707 = vmatpush1.bf16.msra.mxu1 %v5001_v4  ;;  %1667 = vmatprep.subr.bf16.mxu0 %v4958_v55 }
 0x157   :  { %1708 = vmatprep.subr.bf16.mxu1 %v5005_v5 }
 0x159   :  { %1668 = vmatpush1.bf16.msra.mxu0 %v4970_v57 }
 0x15a   :  { %1709 = vmatpush1.bf16.msra.mxu1 %v5010_v8  ;;  %1669 = vmatprep.subr.bf16.mxu0 %v4973_v58 }
 0x15b   :  { %v1275_v12 = vpop.f32.mrb[8].mxu0  ;;  %1710 = vmatprep.subr.bf16.mxu1 %v5015_v9 }
 0x15c   :  { %v1276_v17 = vadd.f32 %v1275_v12, %v4728_v15  ;;  %v1277_v18 = vpop.f32.mrb[9].mxu0  ;;  %v1316_v19 = vpop.f32.mrb[8].mxu1 }
 0x15d   :  { %v1278_v20 = vadd.f32 %v1277_v18, %v4728_v15  ;;  %v1279_v21 = vpop.f32.mrb[10].mxu0  ;;  %1670 = vmatpush1.bf16.msra.mxu0 %v4980_v61  ;;  %v1317_v22 = vadd.f32 %v1316_v19, %v4728_v15  ;;  %v1318_v23 = vpop.f32.mrb[9].mxu1 }
 0x15e   :  { %vm2151_vm10 = vcmp.ge.f32.partialorder %v1276_v17, 0.0  ;;  %v2203_v25 = vmul.f32 0.01, %v1276_v17  ;;  %1711 = vmatpush1.bf16.msra.mxu1 %v5022_v10  ;;  %v1280_v26 = vpop.f32.mrb[11].mxu0  ;;  %v1319_v28 = vadd.f32 %v1318_v23, %v4728_v15  ;;  %3889 = vmatprep.subr.msk.bf16.mxu0 %vm731_vm0, %v3718_v59  ;;  %v1320_v29 = vpop.f32.mrb[10].mxu1  ;;  %v5121_v59 = vcombine.high %v4989_v2, %v4994_v3 }
 0x15f   :  { %vm2152_vm11 = vcmp.ge.f32.partialorder %v1278_v20, 0.0  ;;  %v2204_v31 = vmul.f32 0.01, %v1278_v20  ;;  %vm2153_vm12 = vcmp.ge.f32.partialorder %v1317_v22, 0.0  ;;  %v2205_v32 = vmul.f32 0.01, %v1317_v22  ;;  %3891 = vmatprep.subr.msk.bf16.mxu1 %vm731_vm0, %v5031_v13 }
 0x160   :  { %v2255_v33 = vsel %vm2151_vm10, %v1276_v17, %v2203_v25  ;;  %vm2154_vm13 = vcmp.ge.f32.partialorder %v1319_v28, 0.0  ;;  %v2206_v34 = vmul.f32 0.01, %v1319_v28  ;;  %v1321_v36 = vpop.f32.mrb[11].mxu1 }
 0x161   :  { %v2327_v39 = vmax.f32 %v2302_v40, %v2255_v33  ;;  %v2256_v42 = vsel %vm2152_vm11, %v1278_v20, %v2204_v31  ;;  %v5048_v41 = vsel %vm2153_vm12, %v1317_v22, %v2205_v32  ;;  %1672 = vmatpush1.bf16.msra.mxu0 %v1027_v24 }
 0x162   :  { %v2303_v43 = vmax.f32 %v2255_v33, %v2256_v42  ;;  %v5050_v14 = vsel %vm2154_vm13, %v1319_v28, %v2206_v34  ;;  %1713 = vmatpush1.bf16.msra.mxu1 %v1031_v30  ;;  %1733 = vmatprep.subr.bf16.mxu0 %v4863_v6 }
 0x163   :  { %v2352_v44 = vmax.f32 %v2327_v39, %v2256_v42  ;;  %v2304_v16 = vmax.f32 %v5048_v41, %v5050_v14  ;;  %1774 = vmatprep.subr.bf16.mxu1 %v4973_v58 }
 0x164   :  { %v2328_v46 = vmax.f32 %v2303_v43, %v5048_v41  ;;  %1684 = vmatmul.mubr.bf16.vlgmr.msra.gmra.mrb[28].mxu0 %v4408_v1 }
 0x165   :  { %1725 = vmatmul.mubr.bf16.vlgmr.msra.gmra.mrb[28].mxu1 %v4408_v1  ;;  %1734 = vmatpush1.bf16.msra.mxu0 %v4870_v7  ;;  %v2377_v35 = vpack.c.bf16 %v2352_v44, %v2352_v44  ;;  %v58_v7 = vld [vmem:[%s6021_s0 + $0x98] sm:$0xff] }
 0x166   :  { %v2353_v38 = vmax.f32 %v2328_v46, %v5050_v14  ;;  %1775 = vmatpush1.bf16.msra.mxu1 %v4980_v61  ;;  %1735 = vmatprep.subr.bf16.mxu0 %v4942_v51  ;;  %v3772_v51 = vcombine.low %v58_v7, %v58_v7  ;;  %v3773_v2 = vcombine.high %v58_v7, %v58_v7 }
 0x167   :  { %1776 = vmatprep.subr.bf16.mxu1 %v4984_v0  ;;  %3894 = vmatprep.mubr.msk.bf16.mxu0 %vm967_vm1, %v4345_v37  ;;  %v2424_v6 = vrot.slane %v2377_v35, 4 }
 0x168   :  { %v5066_v40 = vpack.c.bf16 %v2353_v38, %v2353_v38  ;;  %3896 = vmatprep.mubr.msk.bf16.mxu1 %vm967_vm1, %v4345_v37  ;;  %v5093_v53 = vsel %vm731_vm0, %v5031_v13, %v3772_v51 }
 0x169   :  { %1736 = vmatpush1.bf16.msra.mxu0 %v4956_v54  ;;  %v5076_v48 = vsel %vm731_vm0, %v4916_v45, %v2424_v6  ;;  %v3771_v45 = vcombine.high %v4964_v56, %v4964_v56  ;;  %v87_v54 = vld [vmem:[%s6021_s0 + $0x180] sm:$0xff] }
 0x16a   :  { %1777 = vmatpush1.bf16.msra.mxu1 %v5001_v4  ;;  %1737 = vmatprep.subr.bf16.mxu0 %v4958_v55  ;;  %v2425_v50 = vrot.slane %v5066_v40, 4  ;;  %v116_v55 = vld [vmem:[%s6021_s0 + $0x268] sm:$0xff]  ;;  %v5124_v60 = vcombine.high %v58_v7, %v87_v54  ;;  %v5131_v63 = vcombine.low %v58_v7, %v87_v54 }
 0x16b   :  { %1778 = vmatprep.subr.bf16.mxu1 %v5005_v5  ;;  %v5107_v56 = vsel %vm731_vm0, %v5026_v11, %v3771_v45  ;;  %v5161_v12 = vcombine.high %v87_v54, %v116_v55 }
 0x16c   :  { %v5083_v52 = vsel %vm731_vm0, %v2377_v35, %v2425_v50 }
 0x16d   :  { %1738 = vmatpush1.bf16.msra.mxu0 %v4970_v57  ;;  %v5109_v57 = vcombine.low %v87_v54, %v116_v55 }
 0x16e   :  { %1779 = vmatpush1.bf16.msra.mxu1 %v5010_v8  ;;  %1739 = vmatprep.subr.bf16.mxu0 %v4973_v58  ;;  %v5115_v58 = vld [vmem:[%s6021_s0 + $0xa0] sm:$0xff] }
 0x16f   :  { %1780 = vmatprep.subr.bf16.mxu1 %v5015_v9  ;;  %v3774_v62 = vcombine.low %v5115_v58, %v5115_v58 }
 0x171   :  { %1740 = vmatpush1.bf16.msra.mxu0 %v4980_v61  ;;  %v3722_v61 = vcombine.high %v116_v55, %v116_v55 }
 0x172   :  { %1781 = vmatpush1.bf16.msra.mxu1 %v5022_v10  ;;  %1741 = vmatprep.subr.bf16.mxu0 %v4984_v0  ;;  %v3721_v0 = vcombine.low %v116_v55, %v116_v55 }
 0x173   :  { %1782 = vmatprep.subr.bf16.mxu1 %v5093_v53  ;;  %v5135_v3 = vsel %vm731_vm0, %v3722_v61, %v3774_v62  ;;  %v5266_v62 = vld [vmem:[%s6021_s0 + $0xb0] sm:$0xff] }
 0x174   :  { %v1035_v29 = vsel %vm731_vm0, %v3721_v0, 0 }
 0x175   :  { %1742 = vmatpush1.bf16.msra.mxu0 %v5001_v4  ;;  %v5140_v4 = vld [vmem:[%s6021_s0 + $0x188] sm:$0xff] }
 0x176   :  { %1783 = vmatpush1.bf16.msra.mxu1 %v5107_v56  ;;  %1743 = vmatprep.subr.bf16.mxu0 %v5005_v5  ;;  %v5145_v5 = vld [vmem:[%s6021_s0 + $0x270] sm:$0xff]  ;;  %v5166_v13 = vcombine.high %v5115_v58, %v5140_v4  ;;  %v5173_v17 = vcombine.low %v5115_v58, %v5140_v4 }
 0x177   :  { %1784 = vmatprep.subr.bf16.mxu1 %v5109_v57  ;;  %v5156_v11 = vcombine.low %v5140_v4, %v5145_v5  ;;  %v5177_v18 = vcombine.low %v5145_v5, %v5145_v5  ;;  %v5182_v20 = vcombine.high %v5145_v5, %v5145_v5 }
 0x179   :  { %1744 = vmatpush1.bf16.msra.mxu0 %v5010_v8  ;;  %v5152_v8 = vsel %vm731_vm0, %v3721_v0, %v3773_v2  ;;  %v1039_v34 = vsel %vm731_vm0, %v5177_v18, 0 }
 0x17a   :  { %1785 = vmatpush1.bf16.msra.mxu1 %v5121_v59  ;;  %1745 = vmatprep.subr.bf16.mxu0 %v5015_v9 }
 0x17b   :  { %1786 = vmatprep.subr.bf16.mxu1 %v5124_v60 }
 0x17d   :  { %1746 = vmatpush1.bf16.msra.mxu0 %v5022_v10 }
 0x17e   :  { %1787 = vmatpush1.bf16.msra.mxu1 %v5131_v63  ;;  %1747 = vmatprep.subr.bf16.mxu0 %v5093_v53 }
 0x17f   :  { %1788 = vmatprep.subr.bf16.mxu1 %v5135_v3 }
 0x181   :  { %1748 = vmatpush1.bf16.msra.mxu0 %v5107_v56 }
 0x182   :  { %1789 = vmatpush1.bf16.msra.mxu1 %v5152_v8  ;;  %1749 = vmatprep.subr.bf16.mxu0 %v5109_v57 }
 0x183   :  { %1790 = vmatprep.subr.bf16.mxu1 %v5156_v11 }
 0x185   :  { %1750 = vmatpush1.bf16.msra.mxu0 %v5121_v59 }
 0x186   :  { %1791 = vmatpush1.bf16.msra.mxu1 %v5161_v12  ;;  %1751 = vmatprep.subr.bf16.mxu0 %v5124_v60 }
 0x187   :  { %v1357_v19 = vpop.f32.mrb[12].mxu0  ;;  %1792 = vmatprep.subr.bf16.mxu1 %v5166_v13 }
 0x188   :  { %v1358_v21 = vadd.f32 %v1357_v19, %v4728_v15  ;;  %v1359_v22 = vpop.f32.mrb[13].mxu0  ;;  %v1398_v23 = vpop.f32.mrb[12].mxu1 }
 0x189   :  { %v1360_v24 = vadd.f32 %v1359_v22, %v4728_v15  ;;  %v1361_v25 = vpop.f32.mrb[14].mxu0  ;;  %1752 = vmatpush1.bf16.msra.mxu0 %v5131_v63  ;;  %v1399_v26 = vadd.f32 %v1398_v23, %v4728_v15  ;;  %v1400_v28 = vpop.f32.mrb[13].mxu1  ;;  %v2401_v23 = vld [vmem:[%s6024_s4] sm:$0xff] }
 0x18a   :  { %vm2155_vm14 = vcmp.ge.f32.partialorder %v1358_v21, 0.0  ;;  %v2207_v30 = vmul.f32 0.01, %v1358_v21  ;;  %1793 = vmatpush1.bf16.msra.mxu1 %v5173_v17  ;;  %v1362_v31 = vpop.f32.mrb[15].mxu0  ;;  %v1401_v32 = vadd.f32 %v1400_v28, %v4728_v15  ;;  %3893 = vmatprep.subr.msk.bf16.mxu0 %vm731_vm0, %v3722_v61  ;;  %v1402_v33 = vpop.f32.mrb[14].mxu1 }
 0x18b   :  { %vm2156_vm15 = vcmp.ge.f32.partialorder %v1360_v24, 0.0  ;;  %v2208_v36 = vmul.f32 0.01, %v1360_v24  ;;  %vm2157_vm2 = vcmp.ge.f32.partialorder %v1399_v26, 0.0  ;;  %v2209_v39 = vmul.f32 0.01, %v1399_v26  ;;  %3895 = vmatprep.subr.msk.bf16.mxu1 %vm731_vm0, %v5182_v20  ;;  %2543 = vperm.xlu0 %3988, %v2401_v23  }
 0x18c   :  { %v2259_v42 = vsel %vm2155_vm14, %v1358_v21, %v2207_v30  ;;  %vm2158_vm3 = vcmp.ge.f32.partialorder %v1401_v32, 0.0  ;;  %v2210_v43 = vmul.f32 0.01, %v1401_v32  ;;  %v1403_v44 = vpop.f32.mrb[15].mxu1 }
 0x18d   :  { %v2329_v46 = vmax.f32 %v2304_v16, %v2259_v42  ;;  %v2260_v35 = vsel %vm2156_vm15, %v1360_v24, %v2208_v36  ;;  %v5199_v38 = vsel %vm2157_vm2, %v1399_v26, %v2209_v39  ;;  %1754 = vmatpush1.bf16.msra.mxu0 %v1035_v29 }
 0x18e   :  { %v2305_v6 = vmax.f32 %v2259_v42, %v2260_v35  ;;  %v5201_v7 = vsel %vm2158_vm3, %v1401_v32, %v2210_v43  ;;  %1795 = vmatpush1.bf16.msra.mxu1 %v1039_v34  ;;  %1815 = vmatprep.subr.bf16.mxu0 %v5015_v9  ;;  %v3219_v32 = vld [vmem:[%s6025_s6 + $0x8] sm:$0xff] }
 0x18f   :  { %v2354_v50 = vmax.f32 %v2329_v46, %v2260_v35  ;;  %v2306_v51 = vmax.f32 %v5199_v38, %v5201_v7  ;;  %1856 = vmatprep.subr.bf16.mxu1 %v5124_v60  ;;  %3229 = vperm.xlu0 %3988, %v3219_v32   ;;  %v120_v32 = vld [vmem:[%s6021_s0 + $0x288] sm:$0xff] }
 0x190   :  { %v2330_v45 = vmax.f32 %v2305_v6, %v5199_v38  ;;  %1766 = vmatmul.mubr.bf16.vlgmr.msra.gmra.mrb[32].mxu0 %v4408_v1 }
 0x191   :  { %1807 = vmatmul.mubr.bf16.vlgmr.msra.gmra.mrb[32].mxu1 %v4408_v1  ;;  %1816 = vmatpush1.bf16.msra.mxu0 %v5022_v10  ;;  %v2379_v41 = vpack.c.bf16 %v2354_v50, %v2354_v50  ;;  %v60_v10 = vld [vmem:[%s6021_s0 + $0xa8] sm:$0xff] }
 0x192   :  { %v2355_v14 = vmax.f32 %v2330_v45, %v5201_v7  ;;  %1857 = vmatpush1.bf16.msra.mxu1 %v5131_v63  ;;  %1817 = vmatprep.subr.bf16.mxu0 %v5093_v53  ;;  %v3776_v55 = vcombine.low %v60_v10, %v60_v10  ;;  %v3432_v7 = vld [vmem:[%s6026_s8 + $0x8] sm:$0xff] }
 0x193   :  { %1858 = vmatprep.subr.bf16.mxu1 %v5135_v3  ;;  %3898 = vmatprep.mubr.msk.bf16.mxu0 %vm967_vm1, %v4345_v37  ;;  %v2426_v9 = vrot.slane %v2379_v41, 4 }
 0x194   :  { %v5217_v16 = vpack.c.bf16 %v2355_v14, %v2355_v14  ;;  %3900 = vmatprep.mubr.msk.bf16.mxu1 %vm967_vm1, %v4345_v37 }
 0x195   :  { %1818 = vmatpush1.bf16.msra.mxu0 %v5107_v56  ;;  %v5227_v53 = vsel %vm731_vm0, %v5066_v40, %v2426_v9  ;;  %v3775_v40 = vcombine.high %v5115_v58, %v5115_v58  ;;  %v5244_v56 = vsel %vm731_vm0, %v5182_v20, %v3776_v55 }
 0x196   :  { %1859 = vmatpush1.bf16.msra.mxu1 %v5152_v8  ;;  %1819 = vmatprep.subr.bf16.mxu0 %v5109_v57  ;;  %v2427_v54 = vrot.slane %v5217_v16, 4  ;;  %v89_v57 = vld [vmem:[%s6021_s0 + $0x190] sm:$0xff] }
 0x197   :  { %1860 = vmatprep.subr.bf16.mxu1 %v5156_v11  ;;  %v5258_v58 = vsel %vm731_vm0, %v5177_v18, %v3775_v40  ;;  %v5275_v0 = vcombine.high %v60_v10, %v89_v57  ;;  %v5291_v18 = vld [vmem:[%s6021_s0 + $0x198] sm:$0xff] }
 0x198   :  { %v5234_v61 = vsel %vm731_vm0, %v2379_v41, %v2427_v54  ;;  %v5317_v22 = vcombine.high %v5266_v62, %v5291_v18  ;;  %v5327_v24 = vcombine.low %v5266_v62, %v5291_v18  ;;  %v3221_v40 = vld [vmem:[%s6025_s6 + $0x18] sm:$0xff] }
 0x199   :  { %1820 = vmatpush1.bf16.msra.mxu0 %v5121_v59  ;;  %v118_v59 = vld [vmem:[%s6021_s0 + $0x278] sm:$0xff]  ;;  %3239 = vperm.xlu0 %3988, %v3221_v40  }
 0x19a   :  { %1861 = vmatpush1.bf16.msra.mxu1 %v5161_v12  ;;  %1821 = vmatprep.subr.bf16.mxu0 %v5124_v60  ;;  %v5260_v60 = vcombine.low %v89_v57, %v118_v59  ;;  %v3726_v2 = vcombine.high %v118_v59, %v118_v59  ;;  %v5312_v21 = vcombine.high %v89_v57, %v118_v59 }
 0x19b   :  { %1862 = vmatprep.subr.bf16.mxu1 %v5166_v13 }
 0x19d   :  { %1822 = vmatpush1.bf16.msra.mxu0 %v5131_v63  ;;  %v5272_v63 = vcombine.high %v5140_v4, %v5145_v5  ;;  %v3725_v4 = vcombine.low %v118_v59, %v118_v59  ;;  %v3777_v5 = vcombine.high %v60_v10, %v60_v10  ;;  %3442 = vperm.xlu0 %3988, %v3432_v7  }
 0x19e   :  { %1863 = vmatpush1.bf16.msra.mxu1 %v5173_v17  ;;  %1823 = vmatprep.subr.bf16.mxu0 %v5135_v3  ;;  %v3778_v3 = vcombine.low %v5266_v62, %v5266_v62 }
 0x19f   :  { %1864 = vmatprep.subr.bf16.mxu1 %v5244_v56  ;;  %v5303_v19 = vsel %vm731_vm0, %v3725_v4, %v3777_v5  ;;  %v1043_v42 = vsel %vm731_vm0, %v3725_v4, 0  ;;  %v62_v5 = vld [vmem:[%s6021_s0 + $0xb8] sm:$0xff] }
 0x1a1   :  { %1824 = vmatpush1.bf16.msra.mxu0 %v5152_v8  ;;  %v5282_v8 = vcombine.low %v60_v10, %v89_v57 }
 0x1a2   :  { %1865 = vmatpush1.bf16.msra.mxu1 %v5258_v58  ;;  %1825 = vmatprep.subr.bf16.mxu0 %v5156_v11  ;;  %v5286_v11 = vsel %vm731_vm0, %v3726_v2, %v3778_v3 }
 0x1a3   :  { %1866 = vmatprep.subr.bf16.mxu1 %v5260_v60 }
 0x1a5   :  { %1826 = vmatpush1.bf16.msra.mxu0 %v5161_v12  ;;  %v5296_v12 = vld [vmem:[%s6021_s0 + $0x280] sm:$0xff] }
 0x1a6   :  { %1867 = vmatpush1.bf16.msra.mxu1 %v5272_v63  ;;  %1827 = vmatprep.subr.bf16.mxu0 %v5166_v13  ;;  %v5307_v20 = vcombine.low %v5291_v18, %v5296_v12  ;;  %v5331_v25 = vcombine.low %v5296_v12, %v5296_v12  ;;  %v5336_v28 = vcombine.high %v5296_v12, %v5296_v12 }
 0x1a7   :  { %1868 = vmatprep.subr.bf16.mxu1 %v5275_v0 }
 0x1a8   :  { %v1047_v6 = vsel %vm731_vm0, %v5331_v25, 0 }
 0x1a9   :  { %1828 = vmatpush1.bf16.msra.mxu0 %v5173_v17 }
 0x1aa   :  { %1869 = vmatpush1.bf16.msra.mxu1 %v5282_v8  ;;  %1829 = vmatprep.subr.bf16.mxu0 %v5244_v56 }
 0x1ab   :  { %1870 = vmatprep.subr.bf16.mxu1 %v5286_v11 }
 0x1ad   :  { %1830 = vmatpush1.bf16.msra.mxu0 %v5258_v58 }
 0x1ae   :  { %1871 = vmatpush1.bf16.msra.mxu1 %v5303_v19  ;;  %1831 = vmatprep.subr.bf16.mxu0 %v5260_v60 }
 0x1af   :  { %1872 = vmatprep.subr.bf16.mxu1 %v5307_v20 }
 0x1b1   :  { %1832 = vmatpush1.bf16.msra.mxu0 %v5272_v63 }
 0x1b2   :  { %1873 = vmatpush1.bf16.msra.mxu1 %v5312_v21  ;;  %1833 = vmatprep.subr.bf16.mxu0 %v5275_v0 }
 0x1b3   :  { %v1439_v26 = vpop.f32.mrb[16].mxu0  ;;  %1874 = vmatprep.subr.bf16.mxu1 %v5317_v22 }
 0x1b4   :  { %v1440_v29 = vadd.f32 %v1439_v26, %v4728_v15  ;;  %v1441_v30 = vpop.f32.mrb[17].mxu0  ;;  %v1480_v31 = vpop.f32.mrb[16].mxu1 }
 0x1b5   :  { %v1442_v33 = vadd.f32 %v1441_v30, %v4728_v15  ;;  %v1443_v34 = vpop.f32.mrb[18].mxu0  ;;  %1834 = vmatpush1.bf16.msra.mxu0 %v5282_v8  ;;  %v1481_v36 = vadd.f32 %v1480_v31, %v4728_v15  ;;  %v1482_v39 = vpop.f32.mrb[17].mxu1  ;;  %v3537_v30 = vld [vmem:[%s6027_s10] sm:$0xff] }
 0x1b6   :  { %vm2159_vm4 = vcmp.ge.f32.partialorder %v1440_v29, 0.0  ;;  %v2211_v43 = vmul.f32 0.01, %v1440_v29  ;;  %1875 = vmatpush1.bf16.msra.mxu1 %v5327_v24  ;;  %v1444_v44 = vpop.f32.mrb[19].mxu0  ;;  %v1483_v46 = vadd.f32 %v1482_v39, %v4728_v15  ;;  %3897 = vmatprep.subr.msk.bf16.mxu0 %vm731_vm0, %v3726_v2  ;;  %v1484_v35 = vpop.f32.mrb[18].mxu1  ;;  %v5464_v34 = vld [vmem:[%s6021_s0 + $0x1a8] sm:$0xff] }
 0x1b7   :  { %vm2160_vm5 = vcmp.ge.f32.partialorder %v1442_v33, 0.0  ;;  %v2212_v50 = vmul.f32 0.01, %v1442_v33  ;;  %vm2161_vm6 = vcmp.ge.f32.partialorder %v1481_v36, 0.0  ;;  %v2213_v45 = vmul.f32 0.01, %v1481_v36  ;;  %3899 = vmatprep.subr.msk.bf16.mxu1 %vm731_vm0, %v5336_v28 }
 0x1b8   :  { %v2263_v41 = vsel %vm2159_vm4, %v1440_v29, %v2211_v43  ;;  %vm2162_vm7 = vcmp.ge.f32.partialorder %v1483_v46, 0.0  ;;  %v2214_v14 = vmul.f32 0.01, %v1483_v46  ;;  %v1485_v9 = vpop.f32.mrb[19].mxu1 }
 0x1b9   :  { %v2331_v10 = vmax.f32 %v2306_v51, %v2263_v41  ;;  %v2264_v54 = vsel %vm2160_vm5, %v1442_v33, %v2212_v50  ;;  %v5356_v55 = vsel %vm2161_vm6, %v1481_v36, %v2213_v45  ;;  %1836 = vmatpush1.bf16.msra.mxu0 %v1043_v42  ;;  %vm2556_vm5 = vcmask 457728  }
 0x1ba   :  { %v2307_v57 = vmax.f32 %v2263_v41, %v2264_v54  ;;  %v5361_v59 = vsel %vm2162_vm7, %v1483_v46, %v2214_v14  ;;  %1877 = vmatpush1.bf16.msra.mxu1 %v1047_v6  ;;  %1897 = vmatprep.subr.bf16.mxu0 %v5166_v13 }
 0x1bb   :  { %v2356_v2 = vmax.f32 %v2331_v10, %v2264_v54  ;;  %v2308_v3 = vmax.f32 %v5356_v55, %v5361_v59  ;;  %1938 = vmatprep.subr.bf16.mxu1 %v5275_v0 }
 0x1bc   :  { %v2332_v38 = vmax.f32 %v2307_v57, %v5356_v55  ;;  %1848 = vmatmul.mubr.bf16.vlgmr.msra.gmra.mrb[36].mxu0 %v4408_v1 }
 0x1bd   :  { %1889 = vmatmul.mubr.bf16.vlgmr.msra.gmra.mrb[36].mxu1 %v4408_v1  ;;  %1898 = vmatpush1.bf16.msra.mxu0 %v5173_v17  ;;  %v5374_v13 = vpack.c.bf16 %v2356_v2, %v2356_v2 }
 0x1be   :  { %v2357_v51 = vmax.f32 %v2332_v38, %v5361_v59  ;;  %1939 = vmatpush1.bf16.msra.mxu1 %v5282_v8  ;;  %1899 = vmatprep.subr.bf16.mxu0 %v5244_v56  ;;  %v3434_v56 = vld [vmem:[%s6026_s8 + $0x18] sm:$0xff] }
 0x1bf   :  { %1940 = vmatprep.subr.bf16.mxu1 %v5286_v11  ;;  %3902 = vmatprep.mubr.msk.bf16.mxu0 %vm967_vm1, %v4345_v37  ;;  %v2428_v4 = vrot.slane %v5374_v13, 4 }
 0x1c0   :  { %v5383_v17 = vpack.c.bf16 %v2357_v51, %v2357_v51  ;;  %3904 = vmatprep.mubr.msk.bf16.mxu1 %vm967_vm1, %v4345_v37  ;;  %3452 = vperm.xlu0 %3988, %v3434_v56  }
 0x1c1   :  { %1900 = vmatpush1.bf16.msra.mxu0 %v5258_v58  ;;  %v5396_v23 = vsel %vm731_vm0, %v5217_v16, %v2428_v4  ;;  %v3780_v58 = vcombine.low %v62_v5, %v62_v5 }
 0x1c2   :  { %1941 = vmatpush1.bf16.msra.mxu1 %v5303_v19  ;;  %1901 = vmatprep.subr.bf16.mxu0 %v5260_v60  ;;  %v2429_v26 = vrot.slane %v5383_v17, 4  ;;  %v3779_v60 = vcombine.high %v5266_v62, %v5266_v62 }
 0x1c3   :  { %1942 = vmatprep.subr.bf16.mxu1 %v5307_v20  ;;  %v5417_v31 = vsel %vm731_vm0, %v5336_v28, %v3780_v58  ;;  %v5439_v28 = vld [vmem:[%s6021_s0 + $0xc0] sm:$0xff] }
 0x1c4   :  { %v5404_v29 = vsel %vm731_vm0, %v5374_v13, %v2429_v26  ;;  %3541 = vperm.xlu0 %3988, %v3537_v30   ;;  %v5431_v62 = vsel %vm731_vm0, %v5331_v25, %v3779_v60  ;;  %v3730_v25 = vcombine.high %v120_v32, %v120_v32  ;;  %v5490_v43 = vcombine.high %v5439_v28, %v5464_v34 }
 0x1c5   :  { %1902 = vmatpush1.bf16.msra.mxu0 %v5272_v63  ;;  %v91_v63 = vld [vmem:[%s6021_s0 + $0x1a0] sm:$0xff]  ;;  %v5497_v44 = vcombine.low %v5439_v28, %v5464_v34 }
 0x1c6   :  { %1943 = vmatpush1.bf16.msra.mxu1 %v5312_v21  ;;  %1903 = vmatprep.subr.bf16.mxu0 %v5275_v0  ;;  %v5433_v0 = vcombine.low %v91_v63, %v120_v32  ;;  %v5455_v33 = vcombine.low %v62_v5, %v91_v63  ;;  %v5485_v42 = vcombine.high %v91_v63, %v120_v32 }
 0x1c7   :  { %1944 = vmatprep.subr.bf16.mxu1 %v5317_v22 }
 0x1c9   :  { %1904 = vmatpush1.bf16.msra.mxu0 %v5282_v8  ;;  %v5445_v8 = vcombine.high %v5291_v18, %v5296_v12  ;;  %v3729_v18 = vcombine.low %v120_v32, %v120_v32  ;;  %v3781_v12 = vcombine.high %v62_v5, %v62_v5 }
 0x1ca   :  { %1945 = vmatpush1.bf16.msra.mxu1 %v5327_v24  ;;  %1905 = vmatprep.subr.bf16.mxu0 %v5286_v11  ;;  %v5448_v11 = vcombine.high %v62_v5, %v91_v63 }
 0x1cb   :  { %1946 = vmatprep.subr.bf16.mxu1 %v5417_v31  ;;  %v5476_v36 = vsel %vm731_vm0, %v3729_v18, %v3781_v12  ;;  %v1051_v40 = vsel %vm731_vm0, %v3729_v18, 0 }
 0x1cd   :  { %1906 = vmatpush1.bf16.msra.mxu0 %v5303_v19  ;;  %v3782_v19 = vcombine.low %v5439_v28, %v5439_v28 }
 0x1ce   :  { %1947 = vmatpush1.bf16.msra.mxu1 %v5431_v62  ;;  %1907 = vmatprep.subr.bf16.mxu0 %v5307_v20 }
 0x1cf   :  { %1948 = vmatprep.subr.bf16.mxu1 %v5433_v0  ;;  %v5459_v20 = vsel %vm731_vm0, %v3730_v25, %v3782_v19 }
 0x1d1   :  { %1908 = vmatpush1.bf16.msra.mxu0 %v5312_v21  ;;  %v5469_v21 = vld [vmem:[%s6021_s0 + $0x290] sm:$0xff] }
 0x1d2   :  { %1949 = vmatpush1.bf16.msra.mxu1 %v5445_v8  ;;  %1909 = vmatprep.subr.bf16.mxu0 %v5317_v22  ;;  %v5480_v39 = vcombine.low %v5464_v34, %v5469_v21  ;;  %v5501_v46 = vcombine.low %v5469_v21, %v5469_v21  ;;  %v5506_v6 = vcombine.high %v5469_v21, %v5469_v21 }
 0x1d3   :  { %1950 = vmatprep.subr.bf16.mxu1 %v5448_v11 }
 0x1d4   :  { %v1055_v51 = vsel %vm731_vm0, %v5501_v46, 0 }
 0x1d5   :  { %1910 = vmatpush1.bf16.msra.mxu0 %v5327_v24 }
 0x1d6   :  { %1951 = vmatpush1.bf16.msra.mxu1 %v5455_v33  ;;  %1911 = vmatprep.subr.bf16.mxu0 %v5417_v31 }
 0x1d7   :  { %1952 = vmatprep.subr.bf16.mxu1 %v5459_v20 }
 0x1d9   :  { %1912 = vmatpush1.bf16.msra.mxu0 %v5431_v62 }
 0x1da   :  { %1953 = vmatpush1.bf16.msra.mxu1 %v5476_v36  ;;  %1913 = vmatprep.subr.bf16.mxu0 %v5433_v0 }
 0x1db   :  { %1954 = vmatprep.subr.bf16.mxu1 %v5480_v39 }
 0x1dd   :  { %1914 = vmatpush1.bf16.msra.mxu0 %v5445_v8 }
 0x1de   :  { %1955 = vmatpush1.bf16.msra.mxu1 %v5485_v42  ;;  %1915 = vmatprep.subr.bf16.mxu0 %v5448_v11 }
 0x1df   :  { %v1521_v35 = vpop.f32.mrb[20].mxu0  ;;  %1956 = vmatprep.subr.bf16.mxu1 %v5490_v43 }
 0x1e0   :  { %v1522_v50 = vadd.f32 %v1521_v35, %v4728_v15  ;;  %v1523_v45 = vpop.f32.mrb[21].mxu0  ;;  %v1562_v41 = vpop.f32.mrb[20].mxu1 }
 0x1e1   :  { %v1524_v14 = vadd.f32 %v1523_v45, %v4728_v15  ;;  %v1525_v9 = vpop.f32.mrb[22].mxu0  ;;  %1916 = vmatpush1.bf16.msra.mxu0 %v5455_v33  ;;  %v1563_v10 = vadd.f32 %v1562_v41, %v4728_v15  ;;  %v1564_v54 = vpop.f32.mrb[21].mxu1  ;;  %v93_v41 = vld [vmem:[%s6021_s0 + $0x1b0] sm:$0xff] }
 0x1e2   :  { %vm2163_vm8 = vcmp.ge.f32.partialorder %v1522_v50, 0.0  ;;  %v2215_v57 = vmul.f32 0.01, %v1522_v50  ;;  %1957 = vmatpush1.bf16.msra.mxu1 %v5497_v44  ;;  %v1526_v2 = vpop.f32.mrb[23].mxu0  ;;  %v1565_v38 = vadd.f32 %v1564_v54, %v4728_v15  ;;  %3901 = vmatprep.subr.msk.bf16.mxu0 %vm731_vm0, %v3730_v25  ;;  %v1566_v7 = vpop.f32.mrb[22].mxu1  ;;  %v5619_v9 = vld [vmem:[%s6021_s0 + $0x1b8] sm:$0xff] }
 0x1e3   :  { %vm2164_vm9 = vcmp.ge.f32.partialorder %v1524_v14, 0.0  ;;  %v2216_v4 = vmul.f32 0.01, %v1524_v14  ;;  %vm2165_vm10 = vcmp.ge.f32.partialorder %v1563_v10, 0.0  ;;  %v2217_v5 = vmul.f32 0.01, %v1563_v10  ;;  %3903 = vmatprep.subr.msk.bf16.mxu1 %vm731_vm0, %v5506_v6 }
 0x1e4   :  { %v2267_v56 = vsel %vm2163_vm8, %v1522_v50, %v2215_v57  ;;  %vm2166_vm11 = vcmp.ge.f32.partialorder %v1565_v38, 0.0  ;;  %v2218_v26 = vmul.f32 0.01, %v1565_v38  ;;  %v1567_v58 = vpop.f32.mrb[23].mxu1 }
 0x1e5   :  { %v2333_v30 = vmax.f32 %v2308_v3, %v2267_v56  ;;  %v2268_v60 = vsel %vm2164_vm9, %v1524_v14, %v2216_v4  ;;  %v5523_v63 = vsel %vm2165_vm10, %v1563_v10, %v2217_v5  ;;  %1918 = vmatpush1.bf16.msra.mxu0 %v1051_v40 }
 0x1e6   :  { %v2309_v32 = vmax.f32 %v2267_v56, %v2268_v60  ;;  %v5525_v25 = vsel %vm2166_vm11, %v1565_v38, %v2218_v26  ;;  %1959 = vmatpush1.bf16.msra.mxu1 %v1055_v51  ;;  %1979 = vmatprep.subr.bf16.mxu0 %v5317_v22 }
 0x1e7   :  { %v2358_v19 = vmax.f32 %v2333_v30, %v2268_v60  ;;  %v2310_v18 = vmax.f32 %v5523_v63, %v5525_v25  ;;  %2020 = vmatprep.subr.bf16.mxu1 %v5448_v11 }
 0x1e8   :  { %v2334_v12 = vmax.f32 %v2309_v32, %v5523_v63  ;;  %1930 = vmatmul.mubr.bf16.vlgmr.msra.gmra.mrb[40].mxu0 %v4408_v1 }
 0x1e9   :  { %v5533_v55 = vpack.c.bf16 %v2358_v19, %v2358_v19  ;;  %1971 = vmatmul.mubr.bf16.vlgmr.msra.gmra.mrb[40].mxu1 %v4408_v1  ;;  %1980 = vmatpush1.bf16.msra.mxu0 %v5327_v24  ;;  %v64_v24 = vld [vmem:[%s6021_s0 + $0xc8] sm:$0xff] }
 0x1ea   :  { %v2359_v59 = vmax.f32 %v2334_v12, %v5525_v25  ;;  %2021 = vmatpush1.bf16.msra.mxu1 %v5455_v33  ;;  %1981 = vmatprep.subr.bf16.mxu0 %v5417_v31  ;;  %v3784_v50 = vcombine.low %v64_v24, %v64_v24  ;;  %v5610_v14 = vcombine.low %v64_v24, %v93_v41 }
 0x1eb   :  { %2022 = vmatprep.subr.bf16.mxu1 %v5459_v20  ;;  %3906 = vmatprep.mubr.msk.bf16.mxu0 %vm967_vm1, %v4345_v37  ;;  %v2430_v22 = vrot.slane %v5533_v55, 4 }
 0x1ec   :  { %v5544_v3 = vpack.c.bf16 %v2359_v59, %v2359_v59  ;;  %3908 = vmatprep.mubr.msk.bf16.mxu1 %vm967_vm1, %v4345_v37  ;;  %v5572_v45 = vsel %vm731_vm0, %v5506_v6, %v3784_v50  ;;  %v5594_v6 = vld [vmem:[%s6021_s0 + $0xd0] sm:$0xff] }
 0x1ed   :  { %1982 = vmatpush1.bf16.msra.mxu0 %v5431_v62  ;;  %v5554_v31 = vsel %vm731_vm0, %v5383_v17, %v2430_v22  ;;  %v5645_v57 = vcombine.high %v5594_v6, %v5619_v9  ;;  %v5652_v2 = vcombine.low %v5594_v6, %v5619_v9 }
 0x1ee   :  { %2023 = vmatpush1.bf16.msra.mxu1 %v5476_v36  ;;  %1983 = vmatprep.subr.bf16.mxu0 %v5433_v0  ;;  %v2431_v35 = vrot.slane %v5544_v3, 4  ;;  %v3783_v0 = vcombine.high %v5439_v28, %v5439_v28 }
 0x1ef   :  { %2024 = vmatprep.subr.bf16.mxu1 %v5480_v39 }
 0x1f0   :  { %v5562_v62 = vsel %vm731_vm0, %v5533_v55, %v2431_v35  ;;  %v5586_v28 = vsel %vm731_vm0, %v5501_v46, %v3783_v0 }
 0x1f1   :  { %1984 = vmatpush1.bf16.msra.mxu0 %v5445_v8  ;;  %v122_v8 = vld [vmem:[%s6021_s0 + $0x298] sm:$0xff] }
 0x1f2   :  { %2025 = vmatpush1.bf16.msra.mxu1 %v5485_v42  ;;  %1985 = vmatprep.subr.bf16.mxu0 %v5448_v11  ;;  %v5588_v11 = vcombine.low %v93_v41, %v122_v8  ;;  %v3734_v46 = vcombine.high %v122_v8, %v122_v8  ;;  %v5640_v40 = vcombine.high %v93_v41, %v122_v8 }
 0x1f3   :  { %2026 = vmatprep.subr.bf16.mxu1 %v5490_v43 }
 0x1f5   :  { %1986 = vmatpush1.bf16.msra.mxu0 %v5455_v33  ;;  %v5600_v33 = vcombine.high %v5464_v34, %v5469_v21  ;;  %v3733_v34 = vcombine.low %v122_v8, %v122_v8  ;;  %v3785_v21 = vcombine.high %v64_v24, %v64_v24 }
 0x1f6   :  { %2027 = vmatpush1.bf16.msra.mxu1 %v5497_v44  ;;  %1987 = vmatprep.subr.bf16.mxu0 %v5459_v20  ;;  %v5603_v20 = vcombine.high %v64_v24, %v93_v41 }
 0x1f7   :  { %2028 = vmatprep.subr.bf16.mxu1 %v5572_v45  ;;  %v5631_v10 = vsel %vm731_vm0, %v3733_v34, %v3785_v21  ;;  %v1059_v32 = vsel %vm731_vm0, %v3733_v34, 0 }
 0x1f9   :  { %1988 = vmatpush1.bf16.msra.mxu0 %v5476_v36  ;;  %v3786_v36 = vcombine.low %v5594_v6, %v5594_v6 }
 0x1fa   :  { %2029 = vmatpush1.bf16.msra.mxu1 %v5586_v28  ;;  %1989 = vmatprep.subr.bf16.mxu0 %v5480_v39 }
 0x1fb   :  { %2030 = vmatprep.subr.bf16.mxu1 %v5588_v11  ;;  %v5614_v39 = vsel %vm731_vm0, %v3734_v46, %v3786_v36 }
 0x1fd   :  { %1990 = vmatpush1.bf16.msra.mxu0 %v5485_v42  ;;  %v5624_v42 = vld [vmem:[%s6021_s0 + $0x2a0] sm:$0xff] }
 0x1fe   :  { %2031 = vmatpush1.bf16.msra.mxu1 %v5600_v33  ;;  %1991 = vmatprep.subr.bf16.mxu0 %v5490_v43  ;;  %v5635_v54 = vcombine.low %v5619_v9, %v5624_v42  ;;  %v5656_v38 = vcombine.low %v5624_v42, %v5624_v42  ;;  %v5661_v51 = vcombine.high %v5624_v42, %v5624_v42 }
 0x1ff   :  { %2032 = vmatprep.subr.bf16.mxu1 %v5603_v20 }
 0x200   :  { %v1063_v24 = vsel %vm731_vm0, %v5656_v38, 0 }
 0x201   :  { %1992 = vmatpush1.bf16.msra.mxu0 %v5497_v44 }
 0x202   :  { %2033 = vmatpush1.bf16.msra.mxu1 %v5610_v14  ;;  %1993 = vmatprep.subr.bf16.mxu0 %v5572_v45 }
 0x203   :  { %2034 = vmatprep.subr.bf16.mxu1 %v5614_v39 }
 0x205   :  { %1994 = vmatpush1.bf16.msra.mxu0 %v5586_v28 }
 0x206   :  { %2035 = vmatpush1.bf16.msra.mxu1 %v5631_v10  ;;  %1995 = vmatprep.subr.bf16.mxu0 %v5588_v11 }
 0x207   :  { %2036 = vmatprep.subr.bf16.mxu1 %v5635_v54 }
 0x209   :  { %1996 = vmatpush1.bf16.msra.mxu0 %v5600_v33 }
 0x20a   :  { %2037 = vmatpush1.bf16.msra.mxu1 %v5640_v40  ;;  %1997 = vmatprep.subr.bf16.mxu0 %v5603_v20 }
 0x20b   :  { %v1603_v7 = vpop.f32.mrb[24].mxu0  ;;  %2038 = vmatprep.subr.bf16.mxu1 %v5645_v57 }
 0x20c   :  { %v1604_v4 = vadd.f32 %v1603_v7, %v4728_v15  ;;  %v1605_v5 = vpop.f32.mrb[25].mxu0  ;;  %v1644_v56 = vpop.f32.mrb[24].mxu1 }
 0x20d   :  { %v1606_v26 = vadd.f32 %v1605_v5, %v4728_v15  ;;  %v1607_v58 = vpop.f32.mrb[26].mxu0  ;;  %1998 = vmatpush1.bf16.msra.mxu0 %v5610_v14  ;;  %v1645_v30 = vadd.f32 %v1644_v56, %v4728_v15  ;;  %v1646_v60 = vpop.f32.mrb[25].mxu1 }
 0x20e   :  { %vm2167_vm12 = vcmp.ge.f32.partialorder %v1604_v4, 0.0  ;;  %v2219_v19 = vmul.f32 0.01, %v1604_v4  ;;  %2039 = vmatpush1.bf16.msra.mxu1 %v5652_v2  ;;  %v1608_v12 = vpop.f32.mrb[27].mxu0  ;;  %v1647_v59 = vadd.f32 %v1646_v60, %v4728_v15  ;;  %3905 = vmatprep.subr.msk.bf16.mxu0 %vm731_vm0, %v3734_v46  ;;  %v1648_v22 = vpop.f32.mrb[26].mxu1  ;;  %v67_v60 = vld [vmem:[%s6021_s0 + $0xe0] sm:$0xff] }
 0x20f   :  { %vm2168_vm13 = vcmp.ge.f32.partialorder %v1606_v26, 0.0  ;;  %v2220_v35 = vmul.f32 0.01, %v1606_v26  ;;  %vm2169_vm14 = vcmp.ge.f32.partialorder %v1645_v30, 0.0  ;;  %v2221_v50 = vmul.f32 0.01, %v1645_v30  ;;  %3907 = vmatprep.subr.msk.bf16.mxu1 %vm731_vm0, %v5661_v51 }
 0x210   :  { %v2271_v0 = vsel %vm2167_vm12, %v1604_v4, %v2219_v19  ;;  %vm2170_vm15 = vcmp.ge.f32.partialorder %v1647_v59, 0.0  ;;  %v2222_v41 = vmul.f32 0.01, %v1647_v59  ;;  %v1649_v8 = vpop.f32.mrb[27].mxu1 }
 0x211   :  { %v2335_v36 = vmax.f32 %v2310_v18, %v2271_v0  ;;  %v2272_v46 = vsel %vm2168_vm13, %v1606_v26, %v2220_v35  ;;  %v5678_v34 = vsel %vm2169_vm14, %v1645_v30, %v2221_v50  ;;  %2000 = vmatpush1.bf16.msra.mxu0 %v1059_v32  ;;  %v95_v30 = vld [vmem:[%s6021_s0 + $0x1c0] sm:$0xff]  ;;  %v3852_v32 = vcombine.low %v67_v60, %v67_v60 }
 0x212   :  { %v2311_v21 = vmax.f32 %v2271_v0, %v2272_v46  ;;  %v5680_v7 = vsel %vm2170_vm15, %v1647_v59, %v2222_v41  ;;  %2041 = vmatpush1.bf16.msra.mxu1 %v1063_v24  ;;  %2061 = vmatprep.subr.bf16.mxu0 %v5490_v43 }
 0x213   :  { %v2360_v5 = vmax.f32 %v2335_v36, %v2272_v46  ;;  %v2312_v4 = vmax.f32 %v5678_v34, %v5680_v7  ;;  %2102 = vmatprep.subr.bf16.mxu1 %v5603_v20 }
 0x214   :  { %v2336_v56 = vmax.f32 %v2311_v21, %v5678_v34  ;;  %2012 = vmatmul.mubr.bf16.vlgmr.msra.gmra.mrb[44].mxu0 %v4408_v1 }
 0x215   :  { %2053 = vmatmul.mubr.bf16.vlgmr.msra.gmra.mrb[44].mxu1 %v4408_v1  ;;  %2062 = vmatpush1.bf16.msra.mxu0 %v5497_v44  ;;  %v5690_v63 = vpack.c.bf16 %v2360_v5, %v2360_v5  ;;  %v66_v44 = vld [vmem:[%s6021_s0 + $0xd8] sm:$0xff] }
 0x216   :  { %v2361_v25 = vmax.f32 %v2336_v56, %v5680_v7  ;;  %2103 = vmatpush1.bf16.msra.mxu1 %v5610_v14  ;;  %2063 = vmatprep.subr.bf16.mxu0 %v5572_v45  ;;  %v3844_v58 = vcombine.low %v66_v44, %v66_v44  ;;  %v3851_v12 = vcombine.high %v66_v44, %v66_v44 }
 0x217   :  { %2104 = vmatprep.subr.bf16.mxu1 %v5614_v39  ;;  %3910 = vmatprep.mubr.msk.bf16.mxu0 %vm967_vm1, %v4345_v37  ;;  %v2432_v43 = vrot.slane %v5690_v63, 4 }
 0x218   :  { %v5699_v18 = vpack.c.bf16 %v2361_v25, %v2361_v25  ;;  %3912 = vmatprep.mubr.msk.bf16.mxu1 %vm967_vm1, %v4345_v37 }
 0x219   :  { %2064 = vmatpush1.bf16.msra.mxu0 %v5586_v28  ;;  %v5709_v45 = vsel %vm731_vm0, %v5544_v3, %v2432_v43  ;;  %v3843_v28 = vcombine.high %v5594_v6, %v5594_v6 }
 0x21a   :  { %2105 = vmatpush1.bf16.msra.mxu1 %v5631_v10  ;;  %2065 = vmatprep.subr.bf16.mxu0 %v5588_v11  ;;  %v2433_v26 = vrot.slane %v5699_v18, 4  ;;  %v946_v11 = vsel %vm731_vm0, %v5661_v51, %v3844_v58  ;;  %v2402_v51 = vld [vmem:[%s6024_s4 + $0x8] sm:$0xff] }
 0x21b   :  { %2106 = vmatprep.subr.bf16.mxu1 %v5635_v54  ;;  %v942_v6 = vsel %vm731_vm0, %v5656_v38, %v3843_v28  ;;  %2548 = vperm.xlu1 %3989, %v2402_v51  }
 0x21c   :  { %v5717_v37 = vsel %vm731_vm0, %v5690_v63, %v2433_v26 }
 0x21d   :  { %2066 = vmatpush1.bf16.msra.mxu0 %v5600_v33  ;;  %v124_v33 = vld [vmem:[%s6021_s0 + $0x2a8] sm:$0xff] }
 0x21e   :  { %2107 = vmatpush1.bf16.msra.mxu1 %v5640_v40  ;;  %2067 = vmatprep.subr.bf16.mxu0 %v5603_v20  ;;  %v3846_v20 = vcombine.low %v95_v30, %v124_v33  ;;  %v3850_v38 = vcombine.high %v124_v33, %v124_v33  ;;  %v3849_v19 = vcombine.low %v124_v33, %v124_v33 }
 0x21f   :  { %2108 = vmatprep.subr.bf16.mxu1 %v5645_v57 }
 0x220   :  { %v954_v59 = vsel %vm731_vm0, %v3850_v38, %v3852_v32  ;;  %v1067_v56 = vsel %vm731_vm0, %v3849_v19, 0 }
 0x221   :  { %2068 = vmatpush1.bf16.msra.mxu0 %v5610_v14  ;;  %v3845_v14 = vcombine.high %v5619_v9, %v5624_v42  ;;  %v125_v9 = vld [vmem:[%s6021_s0 + $0x2b0] sm:$0xff]  ;;  %v950_v42 = vsel %vm731_vm0, %v3849_v19, %v3851_v12  ;;  %v5813_v19 = vld [vmem:[%s6028_s3] sm:$0xff]   ;;  %v2564_v12 = vsel %vm731_vm0, %v5383_v17, 0 }
 0x222   :  { %2109 = vmatpush1.bf16.msra.mxu1 %v5652_v2  ;;  %2069 = vmatprep.subr.bf16.mxu0 %v5614_v39  ;;  %v3848_v39 = vcombine.high %v66_v44, %v95_v30  ;;  %v3857_v35 = vcombine.low %v125_v9, %v125_v9 }
 0x223   :  { %2110 = vmatprep.subr.bf16.mxu1 %v946_v11 }
 0x224   :  { %v1072_v58 = vsel %vm731_vm0, %v3857_v35, 0 }
 0x225   :  { %2070 = vmatpush1.bf16.msra.mxu0 %v5631_v10  ;;  %v3847_v10 = vcombine.low %v66_v44, %v95_v30 }
 0x226   :  { %2111 = vmatpush1.bf16.msra.mxu1 %v942_v6  ;;  %2071 = vmatprep.subr.bf16.mxu0 %v5635_v54  ;;  %v96_v54 = vld [vmem:[%s6021_s0 + $0x1c8] sm:$0xff] }
 0x227   :  { %2112 = vmatprep.subr.bf16.mxu1 %v3846_v20  ;;  %v3856_v22 = vcombine.high %v67_v60, %v96_v54  ;;  %v3855_v24 = vcombine.low %v67_v60, %v96_v54 }
 0x229   :  { %2072 = vmatpush1.bf16.msra.mxu0 %v5640_v40  ;;  %v3854_v40 = vcombine.low %v96_v54, %v125_v9 }
 0x22a   :  { %2113 = vmatpush1.bf16.msra.mxu1 %v3845_v14  ;;  %2073 = vmatprep.subr.bf16.mxu0 %v5645_v57  ;;  %v3853_v57 = vcombine.high %v95_v30, %v124_v33 }
 0x22b   :  { %2114 = vmatprep.subr.bf16.mxu1 %v3848_v39 }
 0x22d   :  { %2074 = vmatpush1.bf16.msra.mxu0 %v5652_v2  ;;  %v3858_v2 = vcombine.high %v125_v9, %v125_v9 }
 0x22e   :  { %2115 = vmatpush1.bf16.msra.mxu1 %v3847_v10  ;;  %2075 = vmatprep.subr.bf16.mxu0 %v946_v11 }
 0x22f   :  { %2116 = vmatprep.subr.bf16.mxu1 %v954_v59 }
 0x231   :  { %2076 = vmatpush1.bf16.msra.mxu0 %v942_v6 }
 0x232   :  { %2117 = vmatpush1.bf16.msra.mxu1 %v950_v42  ;;  %2077 = vmatprep.subr.bf16.mxu0 %v3846_v20 }
 0x233   :  { %2118 = vmatprep.subr.bf16.mxu1 %v3854_v40 }
 0x235   :  { %2078 = vmatpush1.bf16.msra.mxu0 %v3845_v14 }
 0x236   :  { %2119 = vmatpush1.bf16.msra.mxu1 %v3853_v57  ;;  %2079 = vmatprep.subr.bf16.mxu0 %v3848_v39 }
 0x237   :  { %v1685_v50 = vpop.f32.mrb[28].mxu0  ;;  %2120 = vmatprep.subr.bf16.mxu1 %v3856_v22 }
 0x238   :  { %v1686_v0 = vadd.f32 %v1685_v50, %v4728_v15  ;;  %v1687_v41 = vpop.f32.mrb[29].mxu0  ;;  %v1726_v8 = vpop.f32.mrb[28].mxu1 }
 0x239   :  { %v1688_v36 = vadd.f32 %v1687_v41, %v4728_v15  ;;  %v1689_v46 = vpop.f32.mrb[30].mxu0  ;;  %2080 = vmatpush1.bf16.msra.mxu0 %v3847_v10  ;;  %v1727_v21 = vadd.f32 %v1726_v8, %v4728_v15  ;;  %v1728_v5 = vpop.f32.mrb[29].mxu1 }
 0x23a   :  { %vm2171_vm1 = vcmp.ge.f32.partialorder %v1686_v0, 0.0  ;;  %v2223_v25 = vmul.f32 0.01, %v1686_v0  ;;  %2121 = vmatpush1.bf16.msra.mxu1 %v3855_v24  ;;  %v1690_v43 = vpop.f32.mrb[31].mxu0  ;;  %v1729_v44 = vadd.f32 %v1728_v5, %v4728_v15  ;;  %3909 = vmatprep.subr.msk.bf16.mxu0 %vm731_vm0, %v3850_v38  ;;  %v1730_v26 = vpop.f32.mrb[30].mxu1 }
 0x23b   :  { %vm2172_vm2 = vcmp.ge.f32.partialorder %v1688_v36, 0.0  ;;  %v2224_v28 = vmul.f32 0.01, %v1688_v36  ;;  %vm2173_vm3 = vcmp.ge.f32.partialorder %v1727_v21, 0.0  ;;  %v2225_v11 = vmul.f32 0.01, %v1727_v21  ;;  %3911 = vmatprep.subr.msk.bf16.mxu1 %vm731_vm0, %v3858_v2 }
 0x23c   :  { %v2275_v30 = vsel %vm2171_vm1, %v1686_v0, %v2223_v25  ;;  %vm2174_vm4 = vcmp.ge.f32.partialorder %v1729_v44, 0.0  ;;  %v2226_v33 = vmul.f32 0.01, %v1729_v44  ;;  %v1731_v6 = vpop.f32.mrb[31].mxu1 }
 0x23d   :  { %v2337_v20 = vmax.f32 %v2312_v4, %v2275_v30  ;;  %v2276_v51 = vsel %vm2172_vm2, %v1688_v36, %v2224_v28  ;;  %v5770_v60 = vsel %vm2173_vm3, %v1727_v21, %v2225_v11  ;;  %2082 = vmatpush1.bf16.msra.mxu0 %v1067_v56 }
 0x23e   :  { %v2313_v14 = vmax.f32 %v2275_v30, %v2276_v51  ;;  %v5772_v39 = vsel %vm2174_vm4, %v1729_v44, %v2226_v33  ;;  %2123 = vmatpush1.bf16.msra.mxu1 %v1072_v58  ;;  %2600 = vmatprep.subr.bf16.mxu0 %v4932_v49 }
 0x23f   :  { %v2362_v38 = vmax.f32 %v2337_v20, %v2276_v51  ;;  %v2314_v32 = vmax.f32 %v5770_v60, %v5772_v39  ;;  %2643 = vmatprep.subr.bf16.mxu1 %v5083_v52 }
 0x240   :  { %v2338_v10 = vmax.f32 %v2313_v14, %v5770_v60  ;;  %2094 = vmatmul.mubr.bf16.vlgmr.msra.gmra.mrb[48].mxu0 %v4408_v1 }
 0x241   :  { %v2387_v34 = vpack.c.bf16 %v2362_v38, %v2362_v38  ;;  %2135 = vmatmul.mubr.bf16.vlgmr.msra.gmra.mrb[48].mxu1 %v4408_v1  ;;  %2601 = vmatpush1.bf16.msra.mxu0 %v4925_v47 }
 0x242   :  { %v2363_v7 = vmax.f32 %v2338_v10, %v5772_v39  ;;  %2644 = vmatpush1.bf16.msra.mxu1 %v5076_v48  ;;  %2602 = vmatprep.subr.bf16.mxu0 %v5083_v52 }
 0x243   :  { %2645 = vmatprep.subr.bf16.mxu1 %v5234_v61  ;;  %2632 = vmatprep.mubr.bf16.mxu0 %v4232_v27  ;;  %v2434_v49 = vrot.slane %v2387_v34, 4 }
 0x244   :  { %v5787_v4 = vpack.c.bf16 %v2363_v7, %v2363_v7  ;;  %2675 = vmatprep.mubr.bf16.mxu1 %v4232_v27 }
 0x245   :  { %2603 = vmatpush1.bf16.msra.mxu0 %v5076_v48  ;;  %v5793_v1 = vsel %vm731_vm0, %v5699_v18, %v2434_v49  ;;  %v2560_v48 = vsel %vm731_vm0, %v5217_v16, 0  ;;  %v2568_v16 = vsel %vm731_vm0, %v5544_v3, 0 }
 0x246   :  { %2646 = vmatpush1.bf16.msra.mxu1 %v5227_v53  ;;  %2604 = vmatprep.subr.bf16.mxu0 %v5234_v61  ;;  %v2435_v47 = vrot.slane %v5787_v4, 4  ;;  %v2576_v36 = vsel %vm731_vm0, %v5787_v4, 0 }
 0x247   :  { %2647 = vmatprep.subr.bf16.mxu1 %v5404_v29 }
 0x248   :  { %v5800_v52 = vsel %vm731_vm0, %v2387_v34, %v2435_v47 }
 0x249   :  { %2605 = vmatpush1.bf16.msra.mxu0 %v5227_v53 }
 0x24a   :  { %2648 = vmatpush1.bf16.msra.mxu1 %v5396_v23  ;;  %3914 = vmatprep.subr.msk.bf16.mxu0 %vm731_vm0, %v5374_v13 }
 0x24b   :  { %3916 = vmatprep.subr.msk.bf16.mxu1 %vm731_vm0, %v5533_v55 }
 0x24d   :  { %2607 = vmatpush1.bf16.msra.mxu0 %v2560_v48 }
 0x24e   :  { %2650 = vmatpush1.bf16.msra.mxu1 %v2564_v12  ;;  %2686 = vmatprep.subr.bf16.mxu0 %v5234_v61 }
 0x24f   :  { %2729 = vmatprep.subr.bf16.mxu1 %v5404_v29 }
 0x250   :  { %3915 = vmatmul.mubr.msk.bf16.vlgmr.msra.gmra.mrb[52].mxu0 %vm2556_vm5, %v5813_v19 }
 0x251   :  { %3917 = vmatmul.mubr.msk.bf16.vlgmr.msra.gmra.mrb[52].mxu1 %vm2556_vm5, %v5813_v19  ;;  %2687 = vmatpush1.bf16.msra.mxu0 %v5227_v53  ;;  %v2572_v53 = vsel %vm731_vm0, %v5699_v18, 0 }
 0x252   :  { %2730 = vmatpush1.bf16.msra.mxu1 %v5396_v23  ;;  %2688 = vmatprep.subr.bf16.mxu0 %v5404_v29 }
 0x253   :  { %2731 = vmatprep.subr.bf16.mxu1 %v5562_v62  ;;  %2718 = vmatprep.mubr.bf16.mxu0 %v4232_v27 }
 0x254   :  { %2761 = vmatprep.mubr.bf16.mxu1 %v4232_v27 }
 0x255   :  { %2689 = vmatpush1.bf16.msra.mxu0 %v5396_v23 }
 0x256   :  { %2732 = vmatpush1.bf16.msra.mxu1 %v5554_v31  ;;  %2690 = vmatprep.subr.bf16.mxu0 %v5562_v62 }
 0x257   :  { %2733 = vmatprep.subr.bf16.mxu1 %v5717_v37 }
 0x259   :  { %2691 = vmatpush1.bf16.msra.mxu0 %v5554_v31 }
 0x25a   :  { %2734 = vmatpush1.bf16.msra.mxu1 %v5709_v45  ;;  %3918 = vmatprep.subr.msk.bf16.mxu0 %vm731_vm0, %v5690_v63 }
 0x25b   :  { %3920 = vmatprep.subr.msk.bf16.mxu1 %vm731_vm0, %v2387_v34 }
 0x25d   :  { %2693 = vmatpush1.bf16.msra.mxu0 %v2568_v16 }
 0x25e   :  { %2736 = vmatpush1.bf16.msra.mxu1 %v2572_v53  ;;  %2772 = vmatprep.subr.bf16.mxu0 %v5562_v62 }
 0x25f   :  { %2815 = vmatprep.subr.bf16.mxu1 %v5717_v37 }
 0x260   :  { %3919 = vmatmul.mubr.msk.bf16.vlgmr.msra.gmra.mrb[56].mxu0 %vm2556_vm5, %v5813_v19 }
 0x261   :  { %3921 = vmatmul.mubr.msk.bf16.vlgmr.msra.gmra.mrb[56].mxu1 %vm2556_vm5, %v5813_v19  ;;  %2773 = vmatpush1.bf16.msra.mxu0 %v5554_v31 }
 0x262   :  { %2816 = vmatpush1.bf16.msra.mxu1 %v5709_v45  ;;  %2774 = vmatprep.subr.bf16.mxu0 %v5717_v37 }
 0x263   :  { %2817 = vmatprep.subr.bf16.mxu1 %v5800_v52  ;;  %v1767_v61 = vpop.f32.mrb[32].mxu0  ;;  %2804 = vmatprep.mubr.bf16.mxu0 %v4232_v27 }
 0x264   :  { %v1768_v13 = vadd.f32 %v1767_v61, %v4728_v15  ;;  %v1769_v17 = vpop.f32.mrb[33].mxu0  ;;  %v1808_v23 = vpop.f32.mrb[32].mxu1  ;;  %2847 = vmatprep.mubr.bf16.mxu1 %v4232_v27 }
 0x265   :  { %v1770_v29 = vadd.f32 %v1769_v17, %v4728_v15  ;;  %v1771_v55 = vpop.f32.mrb[34].mxu0  ;;  %2775 = vmatpush1.bf16.msra.mxu0 %v5709_v45  ;;  %v1809_v3 = vadd.f32 %v1808_v23, %v4728_v15  ;;  %v1810_v31 = vpop.f32.mrb[33].mxu1 }
 0x266   :  { %vm2175_vm6 = vcmp.ge.f32.partialorder %v1768_v13, 0.0  ;;  %v2227_v62 = vmul.f32 0.01, %v1768_v13  ;;  %2818 = vmatpush1.bf16.msra.mxu1 %v5793_v1  ;;  %v1772_v63 = vpop.f32.mrb[35].mxu0  ;;  %2776 = vmatprep.subr.bf16.mxu0 %v5800_v52  ;;  %v1811_v18 = vadd.f32 %v1810_v31, %v4728_v15  ;;  %v1812_v37 = vpop.f32.mrb[34].mxu1 }
 0x267   :  { %vm2176_vm7 = vcmp.ge.f32.partialorder %v1770_v29, 0.0  ;;  %v2228_v59 = vmul.f32 0.01, %v1770_v29  ;;  %vm2177_vm8 = vcmp.ge.f32.partialorder %v1809_v3, 0.0  ;;  %v2229_v54 = vmul.f32 0.01, %v1809_v3 }
 0x268   :  { %v2279_v9 = vsel %vm2175_vm6, %v1768_v13, %v2227_v62  ;;  %vm2178_vm9 = vcmp.ge.f32.partialorder %v1811_v18, 0.0  ;;  %v2230_v45 = vmul.f32 0.01, %v1811_v18  ;;  %v1813_v42 = vpop.f32.mrb[35].mxu1 }
 0x269   :  { %v2339_v40 = vmax.f32 %v2314_v32, %v2279_v9  ;;  %v2280_v57 = vsel %vm2176_vm7, %v1770_v29, %v2228_v59  ;;  %v2281_v22 = vsel %vm2177_vm8, %v1809_v3, %v2229_v54  ;;  %2777 = vmatpush1.bf16.msra.mxu0 %v5793_v1  ;;  %vm4234_vm8 = vmmov 0  }
 0x26a   :  { %v2315_v24 = vmax.f32 %v2279_v9, %v2280_v57  ;;  %v2282_v35 = vsel %vm2178_vm9, %v1811_v18, %v2230_v45 }
 0x26b   :  { %v2364_v50 = vmax.f32 %v2339_v40, %v2280_v57  ;;  %v2316_v2 = vmax.f32 %v2281_v22, %v2282_v35 }
 0x26c   :  { %v2340_v0 = vmax.f32 %v2315_v24, %v2281_v22 }
 0x26d   :  { %v2389_v41 = vpack.c.bf16 %v2364_v50, %v2364_v50 }
 0x26e   :  { %v2365_v8 = vmax.f32 %v2340_v0, %v2282_v35 }
 0x26f   :  { %3922 = vmatprep.subr.msk.bf16.mxu0 %vm731_vm0, %v2389_v41  ;;  %v2436_v46 = vrot.slane %v2389_v41, 4 }
 0x270   :  { %v2390_v21 = vpack.c.bf16 %v2365_v8, %v2365_v8  ;;  %2779 = vmatpush1.bf16.msra.mxu0 %v2576_v36 }
 0x271   :  { %2858 = vmatprep.subr.bf16.mxu0 %v5800_v52  ;;  %v2507_v5 = vsel %vm731_vm0, %v5787_v4, %v2436_v46 }
 0x272   :  { %v2437_v56 = vrot.slane %v2390_v21, 4  ;;  %v2580_v53 = vsel %vm731_vm0, %v2390_v21, 0 }
 0x273   :  { %3923 = vmatmul.mubr.msk.bf16.vlgmr.msra.gmra.mrb[60].mxu0 %vm2556_vm5, %v5813_v19 }
 0x274   :  { %2859 = vmatpush1.bf16.msra.mxu0 %v5793_v1  ;;  %v2511_v25 = vsel %vm731_vm0, %v2389_v41, %v2437_v56  ;;  %2890 = vmatprep.mubr.bf16.mxu0 %v4232_v27 }
 0x275   :  { %2819 = vmatprep.subr.bf16.mxu1 %v2511_v25  ;;  %2860 = vmatprep.subr.bf16.mxu0 %v2511_v25 }
 0x276   :  { %2820 = vmatpush1.bf16.msra.mxu1 %v2507_v5 }
 0x278   :  { %2861 = vmatpush1.bf16.msra.mxu0 %v2507_v5 }
 0x28f   :  { %v1849_v43 = vpop.f32.mrb[36].mxu0 }
 0x290   :  { %v1850_v44 = vadd.f32 %v1849_v43, %v4728_v15  ;;  %v1851_v26 = vpop.f32.mrb[37].mxu0  ;;  %v1890_v58 = vpop.f32.mrb[36].mxu1 }
 0x291   :  { %v1852_v28 = vadd.f32 %v1851_v26, %v4728_v15  ;;  %v1853_v11 = vpop.f32.mrb[38].mxu0  ;;  %v1891_v30 = vadd.f32 %v1890_v58, %v4728_v15  ;;  %v1892_v33 = vpop.f32.mrb[37].mxu1 }
 0x292   :  { %vm2179_vm10 = vcmp.ge.f32.partialorder %v1850_v44, 0.0  ;;  %v2231_v6 = vmul.f32 0.01, %v1850_v44  ;;  %v1854_v20 = vpop.f32.mrb[39].mxu0  ;;  %v1893_v51 = vadd.f32 %v1892_v33, %v4728_v15  ;;  %v1894_v60 = vpop.f32.mrb[38].mxu1  ;;  %v3218_v11 = vld [vmem:[%s6025_s6] sm:$0xff] }
 0x293   :  { %vm2180_vm11 = vcmp.ge.f32.partialorder %v1852_v28, 0.0  ;;  %v2232_v14 = vmul.f32 0.01, %v1852_v28  ;;  %vm2181_vm12 = vcmp.ge.f32.partialorder %v1891_v30, 0.0  ;;  %v2233_v39 = vmul.f32 0.01, %v1891_v30  ;;  %3224 = vperm.xlu1 %3989, %v3218_v11  }
 0x294   :  { %v2283_v38 = vsel %vm2179_vm10, %v1850_v44, %v2231_v6  ;;  %vm2182_vm13 = vcmp.ge.f32.partialorder %v1893_v51, 0.0  ;;  %v2234_v32 = vmul.f32 0.01, %v1893_v51  ;;  %v1895_v10 = vpop.f32.mrb[39].mxu1  ;;  %v3431_v33 = vld [vmem:[%s6026_s8] sm:$0xff]  ;;  %v3433_v6 = vld [vmem:[%s6026_s8 + $0x10] sm:$0xff] }
 0x295   :  { %v2341_v34 = vmax.f32 %v2316_v2, %v2283_v38  ;;  %v2284_v7 = vsel %vm2180_vm11, %v1852_v28, %v2232_v14  ;;  %v2285_v49 = vsel %vm2181_vm12, %v1891_v30, %v2233_v39  ;;  %v3220_v30 = vld [vmem:[%s6025_s6 + $0x10] sm:$0xff]  ;;  %v3538_v20 = vld [vmem:[%s6027_s10 + $0x8] sm:$0x3] }
 0x296   :  { %v2317_v4 = vmax.f32 %v2283_v38, %v2284_v7  ;;  %v2286_v1 = vsel %vm2182_vm13, %v1893_v51, %v2234_v32 }
 0x297   :  { %v2366_v47 = vmax.f32 %v2341_v34, %v2284_v7  ;;  %v2318_v52 = vmax.f32 %v2285_v49, %v2286_v1  ;;  %3234 = vperm.xlu1 %3989, %v3220_v30  }
 0x298   :  { %v2342_v48 = vmax.f32 %v2317_v4, %v2285_v49 }
 0x299   :  { %v2391_v12 = vpack.c.bf16 %v2366_v47, %v2366_v47 }
 0x29a   :  { %v2367_v16 = vmax.f32 %v2342_v48, %v2286_v1 }
 0x29b   :  { %3924 = vmatprep.subr.msk.bf16.mxu1 %vm731_vm0, %v2391_v12  ;;  %v2438_v61 = vrot.slane %v2391_v12, 4  ;;  %3437 = vperm.xlu1 %3989, %v3431_v33  }
 0x29c   :  { %v2392_v13 = vpack.c.bf16 %v2367_v16, %v2367_v16  ;;  %2822 = vmatpush1.bf16.msra.mxu1 %v2580_v53 }
 0x29d   :  { %2901 = vmatprep.subr.bf16.mxu1 %v2511_v25  ;;  %v2515_v17 = vsel %vm731_vm0, %v2390_v21, %v2438_v61 }
 0x29e   :  { %v2439_v23 = vrot.slane %v2392_v13, 4  ;;  %v2584_v25 = vsel %vm731_vm0, %v2392_v13, 0 }
 0x29f   :  { %3925 = vmatmul.mubr.msk.bf16.vlgmr.msra.gmra.mrb[60].mxu1 %vm2556_vm5, %v5813_v19  ;;  %3447 = vperm.xlu1 %3989, %v3433_v6  }
 0x2a0   :  { %2902 = vmatpush1.bf16.msra.mxu1 %v2507_v5  ;;  %v2519_v29 = vsel %vm731_vm0, %v2391_v12, %v2439_v23  ;;  %2933 = vmatprep.mubr.bf16.mxu1 %v4232_v27 }
 0x2a1   :  { %2862 = vmatprep.subr.bf16.mxu0 %v2519_v29  ;;  %2903 = vmatprep.subr.bf16.mxu1 %v2519_v29 }
 0x2a2   :  { %2863 = vmatpush1.bf16.msra.mxu0 %v2515_v17 }
 0x2a3   :  { %3546 = vperm.xlu1 %3989, %v3538_v20  }
 0x2a4   :  { %2904 = vmatpush1.bf16.msra.mxu1 %v2515_v17 }
 0x2bb   :  { %v1931_v55 = vpop.f32.mrb[40].mxu0 }
 0x2bc   :  { %v1932_v3 = vadd.f32 %v1931_v55, %v4728_v15  ;;  %v1933_v31 = vpop.f32.mrb[41].mxu0  ;;  %v1972_v62 = vpop.f32.mrb[40].mxu1 }
 0x2bd   :  { %v1934_v63 = vadd.f32 %v1933_v31, %v4728_v15  ;;  %v1935_v18 = vpop.f32.mrb[42].mxu0  ;;  %v1973_v37 = vadd.f32 %v1972_v62, %v4728_v15  ;;  %v1974_v59 = vpop.f32.mrb[41].mxu1 }
 0x2be   :  { %vm2183_vm14 = vcmp.ge.f32.partialorder %v1932_v3, 0.0  ;;  %v2235_v54 = vmul.f32 0.01, %v1932_v3  ;;  %v1936_v9 = vpop.f32.mrb[43].mxu0  ;;  %v1975_v45 = vadd.f32 %v1974_v59, %v4728_v15  ;;  %v1976_v42 = vpop.f32.mrb[42].mxu1  ;;  %v4233_v59 = vmov 0.0  }
 0x2bf   :  { %vm2184_vm15 = vcmp.ge.f32.partialorder %v1934_v63, 0.0  ;;  %v2236_v40 = vmul.f32 0.01, %v1934_v63  ;;  %vm2185_vm1 = vcmp.ge.f32.partialorder %v1973_v37, 0.0  ;;  %v2237_v57 = vmul.f32 0.01, %v1973_v37 }
 0x2c0   :  { %v2287_v22 = vsel %vm2183_vm14, %v1932_v3, %v2235_v54  ;;  %vm2186_vm2 = vcmp.ge.f32.partialorder %v1975_v45, 0.0  ;;  %v2238_v24 = vmul.f32 0.01, %v1975_v45  ;;  %v1977_v35 = vpop.f32.mrb[43].mxu1 }
 0x2c1   :  { %v2343_v50 = vmax.f32 %v2318_v52, %v2287_v22  ;;  %v2288_v2 = vsel %vm2184_vm15, %v1934_v63, %v2236_v40  ;;  %v2289_v0 = vsel %vm2185_vm1, %v1973_v37, %v2237_v57 }
 0x2c2   :  { %v2319_v41 = vmax.f32 %v2287_v22, %v2288_v2  ;;  %v2290_v8 = vsel %vm2186_vm2, %v1975_v45, %v2238_v24 }
 0x2c3   :  { %v2368_v36 = vmax.f32 %v2343_v50, %v2288_v2  ;;  %v2320_v46 = vmax.f32 %v2289_v0, %v2290_v8 }
 0x2c4   :  { %v2344_v21 = vmax.f32 %v2319_v41, %v2289_v0 }
 0x2c5   :  { %v2393_v5 = vpack.c.bf16 %v2368_v36, %v2368_v36 }
 0x2c6   :  { %v2369_v56 = vmax.f32 %v2344_v21, %v2290_v8 }
 0x2c7   :  { %3926 = vmatprep.subr.msk.bf16.mxu0 %vm731_vm0, %v2393_v5  ;;  %v2440_v43 = vrot.slane %v2393_v5, 4 }
 0x2c8   :  { %v2394_v44 = vpack.c.bf16 %v2369_v56, %v2369_v56  ;;  %2865 = vmatpush1.bf16.msra.mxu0 %v2584_v25 }
 0x2c9   :  { %2944 = vmatprep.subr.bf16.mxu0 %v2519_v29  ;;  %v2523_v26 = vsel %vm731_vm0, %v2392_v13, %v2440_v43 }
 0x2ca   :  { %v2443_v58 = vrot.slane %v2394_v44, 4  ;;  %v2588_v63 = vsel %vm731_vm0, %v2394_v44, 0 }
 0x2cb   :  { %3927 = vmatmul.mubr.msk.bf16.vlgmr.msra.gmra.mrb[64].mxu0 %vm2556_vm5, %v5813_v19 }
 0x2cc   :  { %2945 = vmatpush1.bf16.msra.mxu0 %v2515_v17  ;;  %v2527_v28 = vsel %vm731_vm0, %v2393_v5, %v2443_v58  ;;  %2976 = vmatprep.mubr.bf16.mxu0 %v4232_v27 }
 0x2cd   :  { %2905 = vmatprep.subr.bf16.mxu1 %v2527_v28  ;;  %2946 = vmatprep.subr.bf16.mxu0 %v2527_v28 }
 0x2ce   :  { %2906 = vmatpush1.bf16.msra.mxu1 %v2523_v26 }
 0x2d0   :  { %2947 = vmatpush1.bf16.msra.mxu0 %v2523_v26 }
 0x2e7   :  { %v2013_v51 = vpop.f32.mrb[44].mxu0 }
 0x2e8   :  { %v2014_v60 = vadd.f32 %v2013_v51, %v4728_v15  ;;  %v2054_v14 = vpop.f32.mrb[44].mxu1  ;;  %v2015_v39 = vpop.f32.mrb[45].mxu0 }
 0x2e9   :  { %v2055_v38 = vadd.f32 %v2054_v14, %v4728_v15  ;;  %v2016_v32 = vadd.f32 %v2015_v39, %v4728_v15  ;;  %v2056_v10 = vpop.f32.mrb[45].mxu1  ;;  %v2017_v34 = vpop.f32.mrb[46].mxu0 }
 0x2ea   :  { %vm2187_vm3 = vcmp.ge.f32.partialorder %v2014_v60, 0.0  ;;  %v2239_v7 = vmul.f32 0.01, %v2014_v60  ;;  %v2057_v49 = vadd.f32 %v2056_v10, %v4728_v15  ;;  %v2018_v4 = vpop.f32.mrb[47].mxu0  ;;  %v2058_v1 = vpop.f32.mrb[46].mxu1 }
 0x2eb   :  { %vm2189_vm4 = vcmp.ge.f32.partialorder %v2055_v38, 0.0  ;;  %v2241_v47 = vmul.f32 0.01, %v2055_v38  ;;  %vm2188_vm6 = vcmp.ge.f32.partialorder %v2016_v32, 0.0  ;;  %v2240_v52 = vmul.f32 0.01, %v2016_v32  ;;  %v5935_v14 = vpop.permute.xlu0 %2543 }
 0x2ec   :  { %v2291_v48 = vsel %vm2187_vm3, %v2014_v60, %v2239_v7  ;;  %vm2190_vm7 = vcmp.ge.f32.partialorder %v2057_v49, 0.0  ;;  %v2242_v12 = vmul.f32 0.01, %v2057_v49  ;;  %v2059_v16 = vpop.f32.mrb[47].mxu1 }
 0x2ed   :  { %v2345_v53 = vmax.f32 %v2320_v46, %v2291_v48  ;;  %v2293_v61 = vsel %vm2189_vm4, %v2055_v38, %v2241_v47  ;;  %v2292_v13 = vsel %vm2188_vm6, %v2016_v32, %v2240_v52  ;;  %v5940_v38 = vpop.permute.xlu1 %2548 }
 0x2ee   :  { %v2321_v17 = vmax.f32 %v2291_v48, %v2292_v13  ;;  %v2294_v23 = vsel %vm2190_vm7, %v2057_v49, %v2242_v12 }
 0x2ef   :  { %v2370_v29 = vmax.f32 %v2345_v53, %v2292_v13  ;;  %v2322_v55 = vmax.f32 %v2293_v61, %v2294_v23 }
 0x2f0   :  { %v2346_v3 = vmax.f32 %v2321_v17, %v2293_v61 }
 0x2f1   :  { %v2395_v31 = vpack.c.bf16 %v2370_v29, %v2370_v29 }
 0x2f2   :  { %v2371_v62 = vmax.f32 %v2346_v3, %v2294_v23 }
 0x2f3   :  { %3928 = vmatprep.subr.msk.bf16.mxu1 %vm731_vm0, %v2395_v31  ;;  %v2444_v18 = vrot.slane %v2395_v31, 4 }
 0x2f4   :  { %v2396_v37 = vpack.c.bf16 %v2371_v62, %v2371_v62  ;;  %2908 = vmatpush1.bf16.msra.mxu1 %v2588_v63 }
 0x2f5   :  { %3957 = vmatprep.subr.bf16.mxu1 %v4233_v59  ;;  %v2531_v54 = vsel %vm731_vm0, %v2394_v44, %v2444_v18 }
 0x2f6   :  { %v2447_v9 = vrot.slane %v2396_v37, 4 }
 0x2f7   :  { %3929 = vmatmul.mubr.msk.bf16.vlgmr.msra.gmra.mrb[64].mxu1 %vm2556_vm5, %v5813_v19 }
 0x2f8   :  { %3958 = vmatpush3.bf16.msra.mxu1 %v2523_v26  ;;  %v2535_v45 = vsel %vm731_vm0, %v2395_v31, %v2447_v9  ;;  %3965 = vmatprep.mubr.msk.bf16.mxu1 %vm4234_vm8, %v4233_v59 }
 0x2f9   :  { %2948 = vmatprep.subr.bf16.mxu0 %v2535_v45  ;;  %3959 = vmatprep.subr.bf16.mxu1 %v4233_v59 }
 0x2fa   :  { %2949 = vmatpush1.bf16.msra.mxu0 %v2531_v54 }
 0x2fc   :  { %3960 = vmatpush3.bf16.msra.mxu1 %v2531_v54 }
 0x2fd   :  { %3961 = vmatprep.subr.bf16.mxu1 %v4233_v59 }
 0x313   :  { %v2095_v42 = vpop.f32.mrb[48].mxu0 }
 0x314   :  { %v2096_v40 = vadd.f32 %v2095_v42, %v4728_v15  ;;  %v2136_v57 = vpop.f32.mrb[48].mxu1  ;;  %v2097_v22 = vpop.f32.mrb[49].mxu0 }
 0x315   :  { %v2137_v24 = vadd.f32 %v2136_v57, %v4728_v15  ;;  %v2098_v35 = vadd.f32 %v2097_v22, %v4728_v15  ;;  %v2138_v50 = vpop.f32.mrb[49].mxu1  ;;  %v2099_v2 = vpop.f32.mrb[50].mxu0 }
 0x316   :  { %vm2191_vm9 = vcmp.ge.f32.partialorder %v2096_v40, 0.0  ;;  %v2243_v0 = vmul.f32 0.01, %v2096_v40  ;;  %v2139_v41 = vadd.f32 %v2138_v50, %v4728_v15  ;;  %v2100_v8 = vpop.f32.mrb[51].mxu0  ;;  %v2140_v36 = vpop.f32.mrb[50].mxu1  ;;  %v2592_v15 = vsel %vm731_vm0, %v2396_v37, 0 }
 0x317   :  { %v2245_v46 = vmul.f32 0.01, %v2137_v24  ;;  %vm2192_vm10 = vcmp.ge.f32.partialorder %v2098_v35, 0.0  ;;  %v2244_v21 = vmul.f32 0.01, %v2098_v35  ;;  %vm2193_vm11 = vcmp.ge.f32.partialorder %v2137_v24, 0.0 }
 0x318   :  { %v2295_v5 = vsel %vm2191_vm9, %v2096_v40, %v2243_v0  ;;  %v2141_v56 = vpop.f32.mrb[51].mxu1  ;;  %v2246_v44 = vmul.f32 0.01, %v2139_v41  ;;  %vm2194_vm12 = vcmp.ge.f32.partialorder %v2139_v41, 0.0 }
 0x319   :  { %v2347_v25 = vmax.f32 %v2322_v55, %v2295_v5  ;;  %v2296_v43 = vsel %vm2192_vm10, %v2098_v35, %v2244_v21  ;;  %v2297_v58 = vsel %vm2193_vm11, %v2137_v24, %v2245_v46 }
 0x31a   :  { %v2323_v26 = vmax.f32 %v2295_v5, %v2296_v43  ;;  %v2298_v33 = vsel %vm2194_vm12, %v2139_v41, %v2246_v44 }
 0x31b   :  { %v2372_v28 = vmax.f32 %v2347_v25, %v2296_v43 }
 0x31c   :  { %v2348_v11 = vmax.f32 %v2323_v26, %v2297_v58 }
 0x31d   :  { %v2397_v30 = vpack.c.bf16 %v2372_v28, %v2372_v28 }
 0x31e   :  { %v2373_v6 = vmax.f32 %v2348_v11, %v2298_v33 }
 0x31f   :  { %3930 = vmatprep.subr.msk.bf16.mxu0 %vm731_vm0, %v2397_v30  ;;  %v2448_v20 = vrot.slane %v2397_v30, 4 }
 0x320   :  { %2951 = vmatpush1.bf16.msra.mxu0 %v2592_v15  ;;  %v2398_v60 = vpack.c.bf16 %v2373_v6, %v2373_v6 }
 0x321   :  { %v2539_v51 = vsel %vm731_vm0, %v2396_v37, %v2448_v20 }
 0x322   :  { %3962 = vmatpush3.bf16.msra.mxu1 %v2539_v51  ;;  %v2598_v1 = vsel %vm731_vm0, %v2398_v60, 0 }
 0x323   :  { %v2634_v39 = vpop.f32.mrb[52].mxu0  ;;  %3931 = vmatmul.mubr.msk.bf16.vlgmr.msra.gmra.mrb[68].mxu0 %vm2556_vm5, %v5813_v19  ;;  %3963 = vmatprep.subr.bf16.mxu1 %v4233_v59 }
 0x324   :  { %v2635_v32 = vadd.f32 %v2634_v39, %v5935_v14  ;;  %v2677_v10 = vpop.f32.mrb[52].mxu1  ;;  %v2636_v34 = vpop.f32.mrb[53].mxu0  ;;  %3291 = vmatprep.mubr.bf16.mxu0 %v4232_v27 }
 0x325   :  { %v2678_v7 = vadd.f32 %v2677_v10, %v5935_v14  ;;  %v2637_v49 = vadd.f32 %v2636_v34, %v5935_v14  ;;  %v2679_v4 = vpop.f32.mrb[53].mxu1  ;;  %v2638_v47 = vpop.f32.mrb[54].mxu0 }
 0x326   :  { %vm3028_vm13 = vcmp.ge.f32.partialorder %v2635_v32, 0.0  ;;  %v3066_v52 = vmul.f32 0.01, %v2635_v32  ;;  %v2680_v48 = vadd.f32 %v2679_v4, %v5935_v14  ;;  %3964 = vmatpush3.bf16.msra.mxu1 %v2598_v1  ;;  %v2639_v12 = vadd.f32 %v2638_v47, %v5940_v38  ;;  %v2640_v16 = vpop.f32.mrb[55].mxu0  ;;  %v2681_v53 = vpop.f32.mrb[54].mxu1 }
 0x327   :  { %vm3030_vm14 = vcmp.ge.f32.partialorder %v2678_v7, 0.0  ;;  %v3068_v61 = vmul.f32 0.01, %v2678_v7  ;;  %vm3029_vm15 = vcmp.ge.f32.partialorder %v2637_v49, 0.0  ;;  %v3067_v13 = vmul.f32 0.01, %v2637_v49 }
 0x328   :  { %v3104_v17 = vsel %vm3028_vm13, %v2635_v32, %v3066_v52  ;;  %vm3031_vm1 = vcmp.ge.f32.partialorder %v2680_v48, 0.0  ;;  %v3069_v23 = vmul.f32 0.01, %v2680_v48  ;;  %v2641_v29 = vadd.f32 %v2640_v16, %v5940_v38  ;;  %v2683_v55 = vpop.f32.mrb[55].mxu1 }
 0x329   :  { %v3106_v3 = vsel %vm3030_vm14, %v2678_v7, %v3068_v61  ;;  %v3105_v31 = vsel %vm3029_vm15, %v2637_v49, %v3067_v13  ;;  %3966 = vmatmul.mubr.msk.bf16.vlgmr.msra.gmra.mrb[68].mxu1 %vm2556_vm5, %v5813_v19  ;;  %vm3047_vm0 = vcmp.ge.f32.partialorder %v2639_v12, 0.0  ;;  %v3085_v62 = vmul.f32 0.01, %v2639_v12 }
 0x32a   :  { %v3142_v63 = vmax.f32 %v3104_v17, %v3105_v31  ;;  %v3107_v18 = vsel %vm3031_vm1, %v2680_v48, %v3069_v23  ;;  %vm3048_vm2 = vcmp.ge.f32.partialorder %v2641_v29, 0.0  ;;  %v3086_v37 = vmul.f32 0.01, %v2641_v29  ;;  %3344 = vmatprep.mubr.bf16.mxu1 %v4232_v27 }
 0x32b   :  { %v3143_v54 = vmax.f32 %v3106_v3, %v3107_v18  ;;  %v3123_v9 = vsel %vm3047_vm0, %v2639_v12, %v3085_v62  ;;  %v2682_v45 = vadd.f32 %v2681_v53, %v5940_v38  ;;  %v2684_v42 = vadd.f32 %v2683_v55, %v5940_v38 }
 0x32c   :  { %v3158_v40 = vmax.f32 %v3142_v63, %v3106_v3  ;;  %v3124_v57 = vsel %vm3048_vm2, %v2641_v29, %v3086_v37 }
 0x32d   :  { %v3150_v22 = vmax.f32 %v3123_v9, %v3124_v57  ;;  %vm3049_vm3 = vcmp.ge.f32.partialorder %v2682_v45, 0.0  ;;  %v3087_v24 = vmul.f32 0.01, %v2682_v45  ;;  %vm3050_vm5 = vcmp.ge.f32.partialorder %v2684_v42, 0.0 }
 0x32e   :  { %v3174_v19 = vmax.f32 %v3158_v40, %v3107_v18  ;;  %v3088_v35 = vmul.f32 0.01, %v2684_v42 }
 0x32f   :  { %v3125_v50 = vsel %vm3049_vm3, %v2682_v45, %v3087_v24 }
 0x330   :  { %v3166_v2 = vmax.f32 %v3150_v22, %v3125_v50  ;;  %v3126_v0 = vsel %vm3050_vm5, %v2684_v42, %v3088_v35 }
 0x331   :  { %v3151_v41 = vmax.f32 %v3125_v50, %v3126_v0 }
 0x332   :  { %v3182_v8 = vmax.f32 %v3166_v2, %v3126_v0 }
 0x333   :  { %v2720_v36 = vpop.f32.mrb[56].mxu0 }
 0x334   :  { %v2721_v46 = vadd.f32 %v2720_v36, %v5935_v14  ;;  %v2763_v21 = vpop.f32.mrb[56].mxu1  ;;  %v2722_v5 = vpop.f32.mrb[57].mxu0 }
 0x335   :  { %v2764_v56 = vadd.f32 %v2763_v21, %v5935_v14  ;;  %v2723_v25 = vadd.f32 %v2722_v5, %v5935_v14  ;;  %v2765_v43 = vpop.f32.mrb[57].mxu1  ;;  %v2724_v44 = vpop.f32.mrb[58].mxu0 }
 0x336   :  { %vm3032_vm4 = vcmp.ge.f32.partialorder %v2721_v46, 0.0  ;;  %v3070_v26 = vmul.f32 0.01, %v2721_v46  ;;  %v2766_v58 = vadd.f32 %v2765_v43, %v5935_v14  ;;  %v2725_v28 = vadd.f32 %v2724_v44, %v5940_v38  ;;  %v2726_v11 = vpop.f32.mrb[59].mxu0  ;;  %v2767_v30 = vpop.f32.mrb[58].mxu1 }
 0x337   :  { %vm3034_vm6 = vcmp.ge.f32.partialorder %v2764_v56, 0.0  ;;  %v3072_v33 = vmul.f32 0.01, %v2764_v56  ;;  %vm3033_vm7 = vcmp.ge.f32.partialorder %v2723_v25, 0.0  ;;  %v3071_v6 = vmul.f32 0.01, %v2723_v25 }
 0x338   :  { %v3108_v15 = vsel %vm3032_vm4, %v2721_v46, %v3070_v26  ;;  %vm3035_vm9 = vcmp.ge.f32.partialorder %v2766_v58, 0.0  ;;  %v3073_v20 = vmul.f32 0.01, %v2766_v58  ;;  %vm3051_vm10 = vcmp.ge.f32.partialorder %v2725_v28, 0.0  ;;  %v2769_v51 = vpop.f32.mrb[59].mxu1 }
 0x339   :  { %v3159_v60 = vmax.f32 %v3143_v54, %v3108_v15  ;;  %v3190_v39 = vmax.f32 %v3174_v19, %v3108_v15  ;;  %v3110_v32 = vsel %vm3034_vm6, %v2764_v56, %v3072_v33  ;;  %v3109_v10 = vsel %vm3033_vm7, %v2723_v25, %v3071_v6 }
 0x33a   :  { %v3144_v34 = vmax.f32 %v3108_v15, %v3109_v10  ;;  %v3111_v7 = vsel %vm3035_vm9, %v2766_v58, %v3073_v20  ;;  %v3089_v49 = vmul.f32 0.01, %v2725_v28  ;;  %v2727_v4 = vadd.f32 %v2726_v11, %v5940_v38 }
 0x33b   :  { %v3175_v1 = vmax.f32 %v3159_v60, %v3109_v10  ;;  %v3145_v47 = vmax.f32 %v3110_v32, %v3111_v7  ;;  %v2768_v52 = vadd.f32 %v2767_v30, %v5940_v38  ;;  %v2770_v48 = vadd.f32 %v2769_v51, %v5940_v38 }
 0x33c   :  { %v3160_v12 = vmax.f32 %v3144_v34, %v3110_v32  ;;  %v3127_v16 = vsel %vm3051_vm10, %v2725_v28, %v3089_v49  ;;  %vm3052_vm11 = vcmp.ge.f32.partialorder %v2727_v4, 0.0  ;;  %v3090_v53 = vmul.f32 0.01, %v2727_v4 }
 0x33d   :  { %v3167_v61 = vmax.f32 %v3151_v41, %v3127_v16  ;;  %v3198_v13 = vmax.f32 %v3182_v8, %v3127_v16  ;;  %vm3053_vm12 = vcmp.ge.f32.partialorder %v2768_v52, 0.0  ;;  %v3091_v17 = vmul.f32 0.01, %v2768_v52 }
 0x33e   :  { %v3176_v23 = vmax.f32 %v3160_v12, %v3111_v7  ;;  %v3128_v29 = vsel %vm3052_vm11, %v2727_v4, %v3090_v53  ;;  %v3191_v55 = vmax.f32 %v3175_v1, %v3110_v32  ;;  %vm3054_vm13 = vcmp.ge.f32.partialorder %v2770_v48, 0.0 }
 0x33f   :  { %v3152_v3 = vmax.f32 %v3127_v16, %v3128_v29  ;;  %v3183_v31 = vmax.f32 %v3167_v61, %v3128_v29  ;;  %v3129_v62 = vsel %vm3053_vm12, %v2768_v52, %v3091_v17  ;;  %v3206_v63 = vpack.c.bf16 %v3198_v13, %v3190_v39 }
 0x340   :  { %v3092_v18 = vmul.f32 0.01, %v2770_v48 }
 0x341   :  { %v3168_v37 = vmax.f32 %v3152_v3, %v3129_v62  ;;  %v3199_v54 = vmax.f32 %v3183_v31, %v3129_v62 }
 0x342   :  { %v3130_v9 = vsel %vm3054_vm13, %v2770_v48, %v3092_v18 }
 0x343   :  { %v3207_v45 = vpack.c.bf16 %v3199_v54, %v3191_v55  ;;  %v3153_v42 = vmax.f32 %v3129_v62, %v3130_v9  ;;  %v3184_v40 = vmax.f32 %v3168_v37, %v3130_v9 }
 0x345   :  { %3259 = vmatprep.subr.bf16.mxu0 %v3207_v45 }
 0x346   :  { %3260 = vmatpush1.bf16.msra.mxu0 %v3206_v63  ;;  %v2806_v57 = vpop.f32.mrb[60].mxu0 }
 0x347   :  { %v2807_v22 = vadd.f32 %v2806_v57, %v5935_v14  ;;  %v2808_v24 = vpop.f32.mrb[61].mxu0 }
 0x348   :  { %v2809_v19 = vadd.f32 %v2808_v24, %v5935_v14  ;;  %v2810_v35 = vpop.f32.mrb[62].mxu0 }
 0x349   :  { %vm3036_vm14 = vcmp.ge.f32.partialorder %v2807_v22, 0.0  ;;  %v3074_v50 = vmul.f32 0.01, %v2807_v22  ;;  %v2811_v2 = vadd.f32 %v2810_v35, %v5940_v38  ;;  %v2812_v0 = vpop.f32.mrb[63].mxu0 }
 0x34a   :  { %vm3037_vm15 = vcmp.ge.f32.partialorder %v2809_v19, 0.0  ;;  %v3075_v41 = vmul.f32 0.01, %v2809_v19  ;;  %v2813_v8 = vadd.f32 %v2812_v0, %v5940_v38 }
 0x34b   :  { %v3112_v36 = vsel %vm3036_vm14, %v2807_v22, %v3074_v50  ;;  %vm3055_vm1 = vcmp.ge.f32.partialorder %v2811_v2, 0.0  ;;  %v3093_v46 = vmul.f32 0.01, %v2811_v2 }
 0x34c   :  { %v3161_v21 = vmax.f32 %v3145_v47, %v3112_v36  ;;  %v3113_v5 = vsel %vm3037_vm15, %v2809_v19, %v3075_v41  ;;  %v3192_v56 = vmax.f32 %v3176_v23, %v3112_v36  ;;  %vm3056_vm0 = vcmp.ge.f32.partialorder %v2813_v8, 0.0 }
 0x34d   :  { %v3146_v25 = vmax.f32 %v3112_v36, %v3113_v5  ;;  %v3131_v43 = vsel %vm3055_vm1, %v2811_v2, %v3093_v46  ;;  %v3094_v44 = vmul.f32 0.01, %v2813_v8  ;;  %vm3252_vm15 = vcmask 654336  }
 0x34e   :  { %v3177_v26 = vmax.f32 %v3161_v21, %v3113_v5  ;;  %v3169_v58 = vmax.f32 %v3153_v42, %v3131_v43  ;;  %v3200_v28 = vmax.f32 %v3184_v40, %v3131_v43 }
 0x34f   :  { %v3132_v11 = vsel %vm3056_vm0, %v2813_v8, %v3094_v44 }
 0x350   :  { %v3208_v30 = vpack.c.bf16 %v3200_v28, %v3192_v56  ;;  %v3154_v33 = vmax.f32 %v3131_v43, %v3132_v11  ;;  %v3185_v6 = vmax.f32 %v3169_v58, %v3132_v11 }
 0x352   :  { %3261 = vmatprep.subr.bf16.mxu0 %v3208_v30 }
 0x353   :  { %3262 = vmatpush1.bf16.msra.mxu0 %v3207_v45 }
 0x372   :  { %v2849_v15 = vpop.f32.mrb[60].mxu1 }
 0x373   :  { %v2850_v20 = vadd.f32 %v2849_v15, %v5935_v14  ;;  %v2851_v51 = vpop.f32.mrb[61].mxu1 }
 0x374   :  { %v2852_v60 = vadd.f32 %v2851_v51, %v5935_v14  ;;  %v2853_v39 = vpop.f32.mrb[62].mxu1 }
 0x375   :  { %vm3038_vm2 = vcmp.ge.f32.partialorder %v2850_v20, 0.0  ;;  %v3076_v32 = vmul.f32 0.01, %v2850_v20  ;;  %v2854_v10 = vadd.f32 %v2853_v39, %v5940_v38  ;;  %v2855_v34 = vpop.f32.mrb[63].mxu1 }
 0x376   :  { %vm3039_vm3 = vcmp.ge.f32.partialorder %v2852_v60, 0.0  ;;  %v3077_v7 = vmul.f32 0.01, %v2852_v60  ;;  %v2856_v49 = vadd.f32 %v2855_v34, %v5940_v38 }
 0x377   :  { %v3114_v4 = vsel %vm3038_vm2, %v2850_v20, %v3076_v32  ;;  %vm3057_vm5 = vcmp.ge.f32.partialorder %v2854_v10, 0.0  ;;  %v3095_v1 = vmul.f32 0.01, %v2854_v10 }
 0x378   :  { %v3162_v47 = vmax.f32 %v3146_v25, %v3114_v4  ;;  %v3193_v52 = vmax.f32 %v3177_v26, %v3114_v4  ;;  %v3115_v48 = vsel %vm3039_vm3, %v2852_v60, %v3077_v7  ;;  %vm3058_vm4 = vcmp.ge.f32.partialorder %v2856_v49, 0.0 }
 0x379   :  { %v3147_v12 = vmax.f32 %v3114_v4, %v3115_v48  ;;  %v3133_v16 = vsel %vm3057_vm5, %v2854_v10, %v3095_v1  ;;  %v3096_v53 = vmul.f32 0.01, %v2856_v49 }
 0x37a   :  { %v3178_v61 = vmax.f32 %v3162_v47, %v3115_v48  ;;  %v3170_v13 = vmax.f32 %v3154_v33, %v3133_v16  ;;  %v3201_v17 = vmax.f32 %v3185_v6, %v3133_v16 }
 0x37b   :  { %v3134_v23 = vsel %vm3058_vm4, %v2856_v49, %v3096_v53 }
 0x37c   :  { %v3209_v29 = vpack.c.bf16 %v3201_v17, %v3193_v52  ;;  %v3155_v55 = vmax.f32 %v3133_v16, %v3134_v23  ;;  %v3186_v3 = vmax.f32 %v3170_v13, %v3134_v23  ;;  %v4222_v16 = vld [vmem:[%s6029_s5 + $0x8] sm:$0xff]  }
 0x37e   :  { %3263 = vmatprep.subr.bf16.mxu0 %v3209_v29  ;;  %3312 = vmatprep.subr.bf16.mxu1 %v3209_v29 }
 0x37f   :  { %3264 = vmatpush1.bf16.msra.mxu0 %v3208_v30  ;;  %3313 = vmatpush1.bf16.msra.mxu1 %v3208_v30 }
 0x39e   :  { %v2892_v31 = vpop.f32.mrb[64].mxu0 }
 0x39f   :  { %v2893_v62 = vadd.f32 %v2892_v31, %v5935_v14  ;;  %v2894_v63 = vpop.f32.mrb[65].mxu0 }
 0x3a0   :  { %v2895_v18 = vadd.f32 %v2894_v63, %v5935_v14  ;;  %v2896_v37 = vpop.f32.mrb[66].mxu0 }
 0x3a1   :  { %vm3040_vm6 = vcmp.ge.f32.partialorder %v2893_v62, 0.0  ;;  %v3078_v54 = vmul.f32 0.01, %v2893_v62  ;;  %v2897_v9 = vadd.f32 %v2896_v37, %v5940_v38  ;;  %v2898_v45 = vpop.f32.mrb[67].mxu0 }
 0x3a2   :  { %vm3041_vm7 = vcmp.ge.f32.partialorder %v2895_v18, 0.0  ;;  %v3079_v42 = vmul.f32 0.01, %v2895_v18  ;;  %v2899_v40 = vadd.f32 %v2898_v45, %v5940_v38 }
 0x3a3   :  { %v3116_v57 = vsel %vm3040_vm6, %v2893_v62, %v3078_v54  ;;  %vm3059_vm9 = vcmp.ge.f32.partialorder %v2897_v9, 0.0  ;;  %v3097_v22 = vmul.f32 0.01, %v2897_v9  ;;  %vm3465_vm6 = vcmask 261120  }
 0x3a4   :  { %v3163_v24 = vmax.f32 %v3147_v12, %v3116_v57  ;;  %v3194_v19 = vmax.f32 %v3178_v61, %v3116_v57  ;;  %v3117_v35 = vsel %vm3041_vm7, %v2895_v18, %v3079_v42  ;;  %vm3060_vm10 = vcmp.ge.f32.partialorder %v2899_v40, 0.0  ;;  %v4221_v12 = vld [vmem:[%s6029_s5] sm:$0xff]  }
 0x3a5   :  { %v3148_v50 = vmax.f32 %v3116_v57, %v3117_v35  ;;  %v3135_v2 = vsel %vm3059_vm9, %v2897_v9, %v3097_v22  ;;  %v3098_v0 = vmul.f32 0.01, %v2899_v40 }
 0x3a6   :  { %v3179_v41 = vmax.f32 %v3163_v24, %v3117_v35  ;;  %v3171_v8 = vmax.f32 %v3155_v55, %v3135_v2  ;;  %v3202_v36 = vmax.f32 %v3186_v3, %v3135_v2 }
 0x3a7   :  { %v3136_v46 = vsel %vm3060_vm10, %v2899_v40, %v3098_v0 }
 0x3a8   :  { %v3210_v21 = vpack.c.bf16 %v3202_v36, %v3194_v19  ;;  %v3156_v5 = vmax.f32 %v3135_v2, %v3136_v46  ;;  %v3187_v56 = vmax.f32 %v3171_v8, %v3136_v46 }
 0x3aa   :  { %3265 = vmatprep.subr.bf16.mxu0 %v3210_v21  ;;  %3314 = vmatprep.subr.bf16.mxu1 %v3210_v21 }
 0x3ab   :  { %3266 = vmatpush1.bf16.msra.mxu0 %v3209_v29  ;;  %3315 = vmatpush1.bf16.msra.mxu1 %v3209_v29 }
 0x3ca   :  { %v2935_v25 = vpop.f32.mrb[64].mxu1 }
 0x3cb   :  { %v2936_v43 = vadd.f32 %v2935_v25, %v5935_v14  ;;  %v2937_v44 = vpop.f32.mrb[65].mxu1 }
 0x3cc   :  { %v2938_v26 = vadd.f32 %v2937_v44, %v5935_v14  ;;  %v2939_v58 = vpop.f32.mrb[66].mxu1  ;;  %v3225_v44 = vpop.permute.xlu1 %3224 }
 0x3cd   :  { %vm3042_vm11 = vcmp.ge.f32.partialorder %v2936_v43, 0.0  ;;  %v3080_v28 = vmul.f32 0.01, %v2936_v43  ;;  %v2940_v11 = vadd.f32 %v2939_v58, %v5940_v38  ;;  %v2941_v30 = vpop.f32.mrb[67].mxu1 }
 0x3ce   :  { %vm3043_vm12 = vcmp.ge.f32.partialorder %v2938_v26, 0.0  ;;  %v3081_v33 = vmul.f32 0.01, %v2938_v26  ;;  %v2942_v6 = vadd.f32 %v2941_v30, %v5940_v38 }
 0x3cf   :  { %v3118_v15 = vsel %vm3042_vm11, %v2936_v43, %v3080_v28  ;;  %vm3061_vm13 = vcmp.ge.f32.partialorder %v2940_v11, 0.0  ;;  %v3099_v20 = vmul.f32 0.01, %v2940_v11 }
 0x3d0   :  { %v3164_v51 = vmax.f32 %v3148_v50, %v3118_v15  ;;  %v3119_v60 = vsel %vm3043_vm12, %v2938_v26, %v3081_v33  ;;  %v3195_v39 = vmax.f32 %v3179_v41, %v3118_v15  ;;  %vm3062_vm14 = vcmp.ge.f32.partialorder %v2942_v6, 0.0 }
 0x3d1   :  { %v3149_v32 = vmax.f32 %v3118_v15, %v3119_v60  ;;  %v3137_v10 = vsel %vm3061_vm13, %v2940_v11, %v3099_v20  ;;  %v3100_v34 = vmul.f32 0.01, %v2942_v6  ;;  %v3230_v11 = vpop.permute.xlu0 %3229 }
 0x3d2   :  { %v3180_v7 = vmax.f32 %v3164_v51, %v3119_v60  ;;  %v3172_v49 = vmax.f32 %v3156_v5, %v3137_v10  ;;  %v3203_v4 = vmax.f32 %v3187_v56, %v3137_v10 }
 0x3d3   :  { %v3138_v1 = vsel %vm3062_vm14, %v2942_v6, %v3100_v34 }
 0x3d4   :  { %v3211_v47 = vpack.c.bf16 %v3203_v4, %v3195_v39  ;;  %v3157_v52 = vmax.f32 %v3137_v10, %v3138_v1  ;;  %v3188_v48 = vmax.f32 %v3172_v49, %v3138_v1  ;;  %v3235_v49 = vpop.permute.xlu1 %3234 }
 0x3d6   :  { %3267 = vmatprep.subr.bf16.mxu0 %v3211_v47  ;;  %3316 = vmatprep.subr.bf16.mxu1 %v3211_v47 }
 0x3d7   :  { %3268 = vmatpush1.bf16.msra.mxu0 %v3210_v21  ;;  %3317 = vmatpush1.bf16.msra.mxu1 %v3210_v21 }
 0x3da   :  { %3935 = vmatmul.mubr.msk.bf16.vlgmr.msra.gmra.mrb[72].mxu0 %vm3252_vm15, %v4221_v12 }
 0x3db   :  { %3301 = vmatprep.mubr.bf16.mxu0 %v4232_v27 }
 0x3e2   :  { %3936 = vmatmul.mubr.msk.bf16.gmra.mrb[76].mxu0 %vm3252_vm15, %v4222_v16 }
 0x3f6   :  { %v2978_v53 = vpop.f32.mrb[68].mxu0 }
 0x3f7   :  { %v2979_v61 = vadd.f32 %v2978_v53, %v5935_v14  ;;  %v2980_v13 = vpop.f32.mrb[69].mxu0 }
 0x3f8   :  { %v2981_v17 = vadd.f32 %v2980_v13, %v5935_v14  ;;  %v2982_v23 = vpop.f32.mrb[70].mxu0 }
 0x3f9   :  { %vm3044_vm1 = vcmp.ge.f32.partialorder %v2979_v61, 0.0  ;;  %v3082_v29 = vmul.f32 0.01, %v2979_v61  ;;  %v2983_v55 = vadd.f32 %v2982_v23, %v5940_v38  ;;  %v2984_v3 = vpop.f32.mrb[71].mxu0 }
 0x3fa   :  { %vm3045_vm0 = vcmp.ge.f32.partialorder %v2981_v17, 0.0  ;;  %v3083_v31 = vmul.f32 0.01, %v2981_v17  ;;  %v2985_v62 = vadd.f32 %v2984_v3, %v5940_v38 }
 0x3fb   :  { %v3120_v63 = vsel %vm3044_vm1, %v2979_v61, %v3082_v29  ;;  %vm3063_vm2 = vcmp.ge.f32.partialorder %v2983_v55, 0.0  ;;  %v3101_v18 = vmul.f32 0.01, %v2983_v55 }
 0x3fc   :  { %v3165_v37 = vmax.f32 %v3149_v32, %v3120_v63  ;;  %v3121_v54 = vsel %vm3045_vm0, %v2981_v17, %v3083_v31  ;;  %vm3064_vm3 = vcmp.ge.f32.partialorder %v2985_v62, 0.0  ;;  %v3102_v9 = vmul.f32 0.01, %v2985_v62  ;;  %v3021_v45 = vpop.f32.mrb[68].mxu1 }
 0x3fd   :  { %v3139_v42 = vsel %vm3063_vm2, %v2983_v55, %v3101_v18  ;;  %v3022_v40 = vadd.f32 %v3021_v45, %v5935_v14  ;;  %v3967_v57 = vpop.f32.mrb[69].mxu1  ;;  %v3196_v22 = vmax.f32 %v3180_v7, %v3120_v63 }
 0x3fe   :  { %v3181_v24 = vmax.f32 %v3165_v37, %v3121_v54  ;;  %v3173_v19 = vmax.f32 %v3157_v52, %v3139_v42  ;;  %v3140_v35 = vsel %vm3064_vm3, %v2985_v62, %v3102_v9  ;;  %v3024_v50 = vpop.f32.mrb[70].mxu1  ;;  %v3204_v2 = vmax.f32 %v3188_v48, %v3139_v42 }
 0x3ff   :  { %vm3046_vm5 = vcmp.ge.f32.partialorder %v3022_v40, 0.0  ;;  %v3084_v0 = vmul.f32 0.01, %v3022_v40  ;;  %v3025_v41 = vadd.f32 %v3024_v50, %v5940_v38  ;;  %v3968_v8 = vpop.f32.mrb[71].mxu1  ;;  %v4223_v38 = vld [vmem:[%s6030_s7] sm:$0xff]  }
 0x400   :  { %v3189_v36 = vmax.f32 %v3173_v19, %v3140_v35  ;;  %v3212_v46 = vpack.c.bf16 %v3204_v2, %v3196_v22  ;;  %3973 = vmatprep.mubr.msk.bf16.mxu0 %vm3465_vm6, %v4223_v38 }
 0x401   :  { %v3122_v21 = vsel %vm3046_vm5, %v3022_v40, %v3084_v0  ;;  %vm3065_vm4 = vcmp.ge.f32.partialorder %v3025_v41, 0.0  ;;  %v3103_v5 = vmul.f32 0.01, %v3025_v41 }
 0x402   :  { %3318 = vmatprep.subr.bf16.mxu1 %v3212_v46  ;;  %v3197_v56 = vmax.f32 %v3181_v24, %v3122_v21 }
 0x403   :  { %v3141_v14 = vsel %vm3065_vm4, %v3025_v41, %v3103_v5  ;;  %3319 = vmatpush1.bf16.msra.mxu1 %v3211_v47 }
 0x404   :  { %v3205_v25 = vmax.f32 %v3189_v36, %v3141_v14 }
 0x406   :  { %v3213_v43 = vpack.c.bf16 %v3205_v25, %v3197_v56 }
 0x408   :  { %3320 = vmatprep.subr.bf16.mxu1 %v3213_v43 }
 0x409   :  { %3321 = vmatpush1.bf16.msra.mxu1 %v3212_v46 }
 0x40a   :  { %3977 = vmatprep.subr.bf16.mxu1 %v4233_v59 }
 0x40c   :  { %3937 = vmatmul.mubr.msk.bf16.vlgmr.msra.gmra.mrb[72].mxu1 %vm3252_vm15, %v4221_v12  ;;  %v3240_v12 = vpop.permute.xlu0 %3239 }
 0x40d   :  { %3354 = vmatprep.mubr.bf16.mxu1 %v4232_v27 }
 0x414   :  { %3938 = vmatmul.mubr.msk.bf16.gmra.mrb[76].mxu1 %vm3252_vm15, %v4222_v16 }
 0x415   :  { %3981 = vmatprep.mubr.msk.bf16.mxu1 %vm4234_vm8, %v4233_v59 }
 0x4ad   :  { %v3293_v26 = vpop.f32.mrb[72].mxu0 }
 0x4ae   :  { %v3294_v58 = vadd.f32 %v3293_v26, %v3225_v44  ;;  %v3295_v28 = vpop.f32.mrb[73].mxu0 }
 0x4af   :  { %v3296_v30 = vadd.f32 %v3295_v28, %v3225_v44  ;;  %v3297_v33 = vpop.f32.mrb[74].mxu0 }
 0x4b0   :  { %vm3365_vm7 = vcmp.ge.f32.partialorder %v3294_v58, 0.0  ;;  %v3381_v27 = vmul.f32 0.01, %v3294_v58  ;;  %v3298_v6 = vadd.f32 %v3297_v33, %v3230_v11  ;;  %v3299_v15 = vpop.f32.mrb[75].mxu0 }
 0x4b1   :  { %vm3366_vm9 = vcmp.ge.f32.partialorder %v3296_v30, 0.0  ;;  %v3382_v20 = vmul.f32 0.01, %v3296_v30  ;;  %v3300_v51 = vadd.f32 %v3299_v15, %v3230_v11 }
 0x4b2   :  { %v3397_v60 = vsel %vm3365_vm7, %v3294_v58, %v3381_v27  ;;  %vm3369_vm8 = vcmp.ge.f32.partialorder %v3298_v6, 0.0  ;;  %v3385_v39 = vmul.f32 0.01, %v3298_v6 }
 0x4b3   :  { %v3398_v32 = vsel %vm3366_vm9, %v3296_v30, %v3382_v20  ;;  %vm3370_vm10 = vcmp.ge.f32.partialorder %v3300_v51, 0.0  ;;  %v3386_v10 = vmul.f32 0.01, %v3300_v51 }
 0x4b4   :  { %v3413_v34 = vmax.f32 %v3397_v60, %v3398_v32  ;;  %v3401_v7 = vsel %vm3369_vm8, %v3298_v6, %v3385_v39 }
 0x4b5   :  { %v3402_v4 = vsel %vm3370_vm10, %v3300_v51, %v3386_v10  ;;  %v3303_v1 = vpop.f32.mrb[76].mxu0 }
 0x4b6   :  { %v3414_v47 = vmax.f32 %v3401_v7, %v3402_v4  ;;  %v3304_v52 = vadd.f32 %v3303_v1, %v3235_v49  ;;  %v3305_v48 = vpop.f32.mrb[77].mxu0  ;;  %v4224_v4 = vld [vmem:[%s6030_s7 + $0x8] sm:$0xff]   ;;  %v3438_v1 = vpop.permute.xlu1 %3437 }
 0x4b7   :  { %v3306_v16 = vadd.f32 %v3305_v48, %v3235_v49  ;;  %v3307_v53 = vpop.f32.mrb[78].mxu0 }
 0x4b8   :  { %vm3373_vm11 = vcmp.ge.f32.partialorder %v3304_v52, 0.0  ;;  %v3389_v61 = vmul.f32 0.01, %v3304_v52  ;;  %v3308_v13 = vadd.f32 %v3307_v53, %v3240_v12  ;;  %v3309_v17 = vpop.f32.mrb[79].mxu0 }
 0x4b9   :  { %vm3374_vm12 = vcmp.ge.f32.partialorder %v3306_v16, 0.0  ;;  %v3390_v23 = vmul.f32 0.01, %v3306_v16  ;;  %v3310_v29 = vadd.f32 %v3309_v17, %v3240_v12 }
 0x4ba   :  { %v3405_v55 = vsel %vm3373_vm11, %v3304_v52, %v3389_v61  ;;  %vm3377_vm13 = vcmp.ge.f32.partialorder %v3308_v13, 0.0  ;;  %v3393_v3 = vmul.f32 0.01, %v3308_v13  ;;  %v3448_v52 = vpop.permute.xlu1 %3447 }
 0x4bb   :  { %v3406_v31 = vsel %vm3374_vm12, %v3306_v16, %v3390_v23  ;;  %vm3378_vm14 = vcmp.ge.f32.partialorder %v3310_v29, 0.0  ;;  %v3394_v62 = vmul.f32 0.01, %v3310_v29  ;;  %vm3598_vm12 = vcmask 1041408  }
 0x4bc   :  { %v3415_v63 = vmax.f32 %v3405_v55, %v3406_v31  ;;  %v3409_v18 = vsel %vm3377_vm13, %v3308_v13, %v3393_v3 }
 0x4bd   :  { %v3410_v37 = vsel %vm3378_vm14, %v3310_v29, %v3394_v62 }
 0x4be   :  { %v3416_v54 = vmax.f32 %v3409_v18, %v3410_v37 }
 0x4df   :  { %v3346_v9 = vpop.f32.mrb[72].mxu1 }
 0x4e0   :  { %v3347_v45 = vadd.f32 %v3346_v9, %v3225_v44  ;;  %v3348_v42 = vpop.f32.mrb[73].mxu1 }
 0x4e1   :  { %v3349_v40 = vadd.f32 %v3348_v42, %v3225_v44  ;;  %v3350_v57 = vpop.f32.mrb[74].mxu1  ;;  %v4225_v42 = vld [vmem:[%s6031_s9] sm:$0x1f]  }
 0x4e2   :  { %vm3367_vm15 = vcmp.ge.f32.partialorder %v3347_v45, 0.0  ;;  %v3383_v22 = vmul.f32 0.01, %v3347_v45  ;;  %v3351_v24 = vadd.f32 %v3350_v57, %v3230_v11  ;;  %v3352_v19 = vpop.f32.mrb[75].mxu1 }
 0x4e3   :  { %vm3368_vm1 = vcmp.ge.f32.partialorder %v3349_v40, 0.0  ;;  %v3384_v35 = vmul.f32 0.01, %v3349_v40  ;;  %v3353_v50 = vadd.f32 %v3352_v19, %v3230_v11 }
 0x4e4   :  { %v3399_v2 = vsel %vm3367_vm15, %v3347_v45, %v3383_v22  ;;  %vm3371_vm0 = vcmp.ge.f32.partialorder %v3351_v24, 0.0  ;;  %v3387_v0 = vmul.f32 0.01, %v3351_v24  ;;  %v3547_v22 = vpop.permute.xlu1 %3546 }
 0x4e5   :  { %v3417_v41 = vmax.f32 %v3413_v34, %v3399_v2  ;;  %v3400_v8 = vsel %vm3368_vm1, %v3349_v40, %v3384_v35  ;;  %vm3372_vm2 = vcmp.ge.f32.partialorder %v3353_v50, 0.0  ;;  %v3388_v36 = vmul.f32 0.01, %v3353_v50 }
 0x4e6   :  { %v3403_v46 = vsel %vm3371_vm0, %v3351_v24, %v3387_v0 }
 0x4e7   :  { %v3418_v21 = vmax.f32 %v3414_v47, %v3403_v46  ;;  %v3404_v5 = vsel %vm3372_vm2, %v3353_v50, %v3388_v36  ;;  %v3356_v56 = vpop.f32.mrb[76].mxu1  ;;  %v3421_v14 = vmax.f32 %v3417_v41, %v3400_v8  ;;  %v3443_v47 = vpop.permute.xlu0 %3442 }
 0x4e8   :  { %v3357_v25 = vadd.f32 %v3356_v56, %v3235_v49  ;;  %v3358_v43 = vpop.f32.mrb[77].mxu1 }
 0x4e9   :  { %v3359_v38 = vadd.f32 %v3358_v43, %v3235_v49  ;;  %v3360_v44 = vpop.f32.mrb[78].mxu1  ;;  %v3422_v26 = vmax.f32 %v3418_v21, %v3404_v5 }
 0x4ea   :  { %vm3375_vm3 = vcmp.ge.f32.partialorder %v3357_v25, 0.0  ;;  %v3391_v58 = vmul.f32 0.01, %v3357_v25  ;;  %v3361_v28 = vadd.f32 %v3360_v44, %v3240_v12  ;;  %v3362_v11 = vpop.f32.mrb[79].mxu1 }
 0x4eb   :  { %vm3376_vm5 = vcmp.ge.f32.partialorder %v3359_v38, 0.0  ;;  %v3392_v30 = vmul.f32 0.01, %v3359_v38  ;;  %v3363_v33 = vadd.f32 %v3362_v11, %v3240_v12  ;;  %v3429_v27 = vpack.c.bf16 %v3422_v26, %v3421_v14  ;;  %v3453_v53 = vpop.permute.xlu0 %3452 }
 0x4ec   :  { %v3407_v6 = vsel %vm3375_vm3, %v3357_v25, %v3391_v58  ;;  %vm3379_vm4 = vcmp.ge.f32.partialorder %v3361_v28, 0.0  ;;  %v3395_v15 = vmul.f32 0.01, %v3361_v28 }
 0x4ed   :  { %v3419_v20 = vmax.f32 %v3415_v63, %v3407_v6  ;;  %v3408_v51 = vsel %vm3376_vm5, %v3359_v38, %v3392_v30  ;;  %vm3380_vm7 = vcmp.ge.f32.partialorder %v3363_v33, 0.0  ;;  %v3396_v60 = vmul.f32 0.01, %v3363_v33  ;;  %3969 = vmatprep.subr.bf16.mxu0 %v3429_v27 }
 0x4ee   :  { %v3411_v39 = vsel %vm3379_vm4, %v3361_v28, %v3395_v15  ;;  %3970 = vmatpush3.bf16.msra.mxu0 %v3429_v27 }
 0x4ef   :  { %v3420_v32 = vmax.f32 %v3416_v54, %v3411_v39  ;;  %v3412_v10 = vsel %vm3380_vm7, %v3363_v33, %v3396_v60  ;;  %v3423_v34 = vmax.f32 %v3419_v20, %v3408_v51  ;;  %v3542_v19 = vpop.permute.xlu0 %3541 }
 0x4f1   :  { %v3424_v7 = vmax.f32 %v3420_v32, %v3412_v10 }
 0x4f3   :  { %v3430_v49 = vpack.c.bf16 %v3424_v7, %v3423_v34 }
 0x4f5   :  { %3971 = vmatprep.subr.bf16.mxu0 %v3430_v49 }
 0x4f6   :  { %3972 = vmatpush3.bf16.msra.mxu0 %v3430_v49 }
 0x4f9   :  { %3974 = vmatmul.mubr.msk.bf16.vlgmr.msra.gmra.mrb[80].mxu0 %vm3465_vm6, %v4224_v4 }
 0x5cc   :  { %v3975_v48 = vpop.f32.mrb[80].mxu0 }
 0x5cd   :  { %v3515_v12 = vadd.f32 %v3975_v48, %v3448_v52  ;;  %v3506_v16 = vpop.f32.mrb[81].mxu0 }
 0x5ce   :  { %v3507_v61 = vadd.f32 %v3506_v16, %v3438_v1  ;;  %v3976_v13 = vpop.f32.mrb[82].mxu0 }
 0x5cf   :  { %v3527_v17 = vmul.f32 0.01, %v3515_v12  ;;  %v3518_v23 = vadd.f32 %v3976_v13, %v3453_v53  ;;  %v3509_v29 = vpop.f32.mrb[83].mxu0  ;;  %vm3523_vm9 = vcmp.ge.f32.partialorder %v3515_v12, 0.0 }
 0x5d0   :  { %v3525_v55 = vmul.f32 0.01, %v3507_v61  ;;  %v3510_v3 = vadd.f32 %v3509_v29, %v3443_v47  ;;  %vm3521_vm8 = vcmp.ge.f32.partialorder %v3507_v61, 0.0 }
 0x5d1   :  { %vm3524_vm10 = vcmp.ge.f32.partialorder %v3518_v23, 0.0  ;;  %v3528_v31 = vmul.f32 0.01, %v3518_v23  ;;  %v3531_v63 = vsel %vm3523_vm9, %v3515_v12, %v3527_v17 }
 0x5d2   :  { %vm3522_vm11 = vcmp.ge.f32.partialorder %v3510_v3, 0.0  ;;  %v3526_v62 = vmul.f32 0.01, %v3510_v3  ;;  %v3529_v37 = vsel %vm3521_vm8, %v3507_v61, %v3525_v55 }
 0x5d3   :  { %v3532_v18 = vsel %vm3524_vm10, %v3518_v23, %v3528_v31 }
 0x5d4   :  { %v3536_v54 = vpack.c.bf16 %v3532_v18, %v3531_v63  ;;  %v3530_v9 = vsel %vm3522_vm11, %v3510_v3, %v3526_v62 }
 0x5d5   :  { %v3535_v45 = vpack.c.bf16 %v3530_v9, %v3529_v37 }
 0x5d7   :  { %3978 = vmatpush3.bf16.msra.mxu1 %v3535_v45 }
 0x5d8   :  { %3979 = vmatprep.subr.bf16.mxu1 %v4233_v59 }
 0x5db   :  { %3980 = vmatpush3.bf16.msra.mxu1 %v3536_v54 }
 0x5de   :  { %3982 = vmatmul.mubr.msk.bf16.vlgmr.msra.gmra.mrb[80].mxu1 %vm3465_vm6, %v4225_v42 }
 0x6b1   :  { %v3591_v40 = vpop.f32.mrb[80].mxu1 }
 0x6b2   :  { %v3983_v57 = vpop.f32.mrb[81].mxu1  ;;  %v3592_v2 = vadd.f32 %v3591_v40, %v3542_v19 }
 0x6b3   :  { %v3594_v24 = vpop.f32.mrb[82].mxu1 }
 0x6b4   :  { %v3595_v35 = vadd.f32 %v3594_v24, %v3547_v22  ;;  %v3984_v50 = vpop.f32.mrb[83].mxu1 }
 0x6b6   :  { %v3599_v0 = vsel %vm3598_vm12, %v3595_v35, -inf }
 0x6b7   :  { %v3600_v41 = vmax.f32 %v3592_v2, %v3599_v0 }
 0x6b9   :  { %v3601_v59 = vrot.slane %v3600_v41, 4 }
 0x6bb   :  { %v3602_v8 = vmax.f32 %v3600_v41, %v3601_v59 }
 0x6bd   :  { %v3603_v36 = vrot.slane %v3602_v8, 2 }
 0x6bf   :  { %v3604_v46 = vmax.f32 %v3602_v8, %v3603_v36 }
 0x6c1   :  { %v3605_v21 = vrot.slane %v3604_v46, 1 }
 0x6c3   :  { %v3606_v5 = vmax.f32 %v3604_v46, %v3605_v21 }
 0x6c5   :  { %v3607_v56 = vsub.f32 %v3592_v2, %v3606_v5  ;;  %v3608_v14 = vsub.f32 %v3595_v35, %v3606_v5 }
 0x6c7   :  { %v3609_v25 = vmul.f32 1.442695, %v3607_v56  ;;  %v3611_v43 = vmul.f32 1.442695, %v3608_v14 }
 0x6c9   :  { %4226 = vpow2.f32 %v3609_v25 }
 0x6ca   :  { %4228 = vpow2.f32 %v3611_v43 }
 0x6d3   :  { %v4227_v38 = vpop.eup %4226 }
 0x6d4   :  { %v4229_v44 = vpop.eup %4228 }
 0x6d5   :  { %v3613_v26 = vsel %vm3598_vm12, %v4229_v44, 0.0 }
 0x6d6   :  { %v3614_v58 = vadd.f32 %v4227_v38, %v3613_v26 }
 0x6d8   :  { %v3615_v28 = vrot.slane %v3614_v58, 4 }
 0x6da   :  { %v3616_v11 = vadd.f32 %v3615_v28, %v3614_v58 }
 0x6dc   :  { %v3617_v30 = vrot.slane %v3616_v11, 2 }
 0x6de   :  { %v3618_v33 = vadd.f32 %v3617_v30, %v3616_v11 }
 0x6e0   :  { %v3619_v27 = vrot.slane %v3618_v33, 1 }
 0x6e2   :  { %v3620_v6 = vadd.f32 %v3619_v27, %v3618_v33 }
 0x6e4   :  { %4230 = vlog2.f32 %v3620_v6 }
 0x6ee   :  { %v4231_v15 = vpop.eup %4230 }
 0x6ef   :  { %v3622_v20 = vmul.f32 0.6931472, %v4231_v15 }
 0x6f1   :  { %v3623_v51 = vsub.f32 %v3607_v56, %v3622_v20  ;;  %v3624_v60 = vsub.f32 %v3608_v14, %v3622_v20 }
 0x6f3   :  { %3625 = vst [vmem:[%s6032_s11] sm:$0xff] %v3623_v51  ;;  %3626 = vst [vmem:[%s6032_s11 + $0x8] sm:$0x3] %v3624_v60 }

</bundles_post_ra>
